<compile_context>
chip_gen: v7x
topology: tpu7x:2x2x1
jax: 0.10.0
libtpu: 0.0.40
codegen_flags: <defaults>
</compile_context>

<pallas_src>
import functools
import math
from typing import NamedTuple

import jax
import jax.numpy as jnp
from jax import lax
from jax.experimental import pallas as pl
from jax.experimental.pallas import tpu as pltpu

LANE = 128      # vreg lane width (last dim)
SUBLANE = 8     # vreg sublane width (second-to-last dim)


def _round_up(x: int, m: int) -> int:
    return (x + m - 1) // m * m


def _pick_tile(padded_dim: int, max_tile: int, quantum: int) -> int:
    """Largest multiple of `quantum` <= max_tile that divides padded_dim."""
    t = min(max_tile, padded_dim)
    t = max(quantum, (t // quantum) * quantum)
    while padded_dim % t:
        t -= quantum
    return t


def _pick_seq_tile(s: int, cap: int) -> int:
    t = min(cap, s)
    t = max(SUBLANE, (t // SUBLANE) * SUBLANE)
    while s % t:
        t -= SUBLANE
    return t


_VMEM_BYTES_CACHE = None


def _detect_vmem_bytes() -> int:
    """Per-core VMEM capacity (conservative 64 MiB fallback, i.e. v7x-safe)."""
    global _VMEM_BYTES_CACHE
    if _VMEM_BYTES_CACHE is None:
        vmem = None
        try:
            info = pltpu.get_tpu_info()
            for attr in ("vmem_capacity_bytes", "vmem_size_bytes", "vmem_bytes"):
                v = getattr(info, attr, None)
                if v:
                    vmem = int(v)
                    break
        except Exception:
            vmem = None
        _VMEM_BYTES_CACHE = vmem if vmem else 64 * 1024 * 1024
    return _VMEM_BYTES_CACHE


# --------------------------------------------------------------------------
# Tiled linear:  y = x @ W + b  (+ optional fused ReLU)
#   x is already [Mp, Kp] (padded), W is pre-transposed/pre-padded/pre-cast
#   [Kp, Np], bias is f32 [1, Np] with zero padding.  Output is padded [Mp, Np]
#   and keeps the zero-column invariant (padded W cols + padded bias are zero).
# --------------------------------------------------------------------------
def _linear_kernel(x_ref, w_ref, b_ref, o_ref, acc_ref, *, activation):
    @pl.when(pl.program_id(2) == 0)
    def _init():
        acc_ref[...] = jnp.zeros_like(acc_ref)

    acc_ref[...] += jnp.dot(x_ref[...], w_ref[...],
                            preferred_element_type=jnp.float32)

    @pl.when(pl.program_id(2) == pl.num_programs(2) - 1)
    def _finalize():
        out = acc_ref[...] + b_ref[...]          # bias added exactly once
        if activation == "relu":
            out = jnp.maximum(out, 0.0)
        o_ref[...] = out.astype(o_ref.dtype)


def _linear_tiles(mp, kp, np_, bytes_in, budget):
    tm = _pick_tile(mp, 256, SUBLANE)
    tn = _pick_tile(np_, 512, LANE)
    tk = _pick_tile(kp, 1024, LANE)

    def usage(tm_, tn_, tk_):
        # double-buffered x, w, out blocks + f32 accumulator + bias
        return (2 * (tm_ * tk_ + tk_ * tn_ + tm_ * tn_) * bytes_in
                + tm_ * tn_ * 4 + 2 * tn_ * 4)

    while usage(tm, tn, tk) > budget and tk > LANE:
        tk = _pick_tile(kp, tk - LANE, LANE)
    while usage(tm, tn, tk) > budget and tn > LANE:
        tn = _pick_tile(np_, tn - LANE, LANE)
    while usage(tm, tn, tk) > budget and tm > SUBLANE:
        tm = _pick_tile(mp, tm - SUBLANE, SUBLANE)
    return tm, tn, tk


def pallas_linear(x_pad, w_pad, b_pad, *, activation=None):
    mp, kp = x_pad.shape
    kp_w, np_ = w_pad.shape
    assert kp == kp_w, (kp, kp_w)

    vmem = _detect_vmem_bytes()
    budget = int(0.45 * vmem)                       # tile working-set budget
    limit = int(min(0.70 * vmem, 110 * 1024 * 1024))  # scoped VMEM limit
    bytes_in = jnp.dtype(x_pad.dtype).itemsize
    tm, tn, tk = _linear_tiles(mp, kp, np_, bytes_in, budget)
    grid = (mp // tm, np_ // tn, kp // tk)

    return pl.pallas_call(
        functools.partial(_linear_kernel, activation=activation),
        out_shape=jax.ShapeDtypeStruct((mp, np_), x_pad.dtype),
        grid=grid,
        in_specs=[
            pl.BlockSpec((tm, tk), lambda i, j, k: (i, k)),
            pl.BlockSpec((tk, tn), lambda i, j, k: (k, j)),
            pl.BlockSpec((1, tn), lambda i, j, k: (0, j)),
        ],
        out_specs=pl.BlockSpec((tm, tn), lambda i, j, k: (i, j)),
        scratch_shapes=[pltpu.VMEM((tm, tn), jnp.float32)],
        compiler_params=pltpu.CompilerParams(
            dimension_semantics=("parallel", "parallel", "arbitrary"),
            vmem_limit_bytes=limit,
        ),
    )(x_pad, w_pad, b_pad)


# --------------------------------------------------------------------------
# Fused multi-head flash attention.
#   q  : [Mp, Cq_p]   lane-packed heads  [h0 | h1 | ... | pad], scale folded in
#   kv : [Mp, Ckv_p]  lane-packed        [K heads | V heads | pad]
#   out: [Mp, Cv_p]   lane-packed context (directly consumed by W_o), tail = 0
#   grid = (batch, q blocks, kv blocks); online softmax over the kv axis,
#   normalization after PV via EUP reciprocal (+ one Newton step).
# --------------------------------------------------------------------------
def _mha_flash_kernel(q_ref, kv_ref, o_ref, m_sc, l_sc, acc_sc, *,
                      n_heads, d_qk, d_v, c_out):
    ki = pl.program_id(2)

    @pl.when(ki == 0)
    def _init():
        m_sc[...] = jnp.full(m_sc.shape, -jnp.inf, jnp.float32)
        l_sc[...] = jnp.zeros_like(l_sc)
        acc_sc[...] = jnp.zeros_like(acc_sc)

    v_base = n_heads * d_qk
    for h in range(n_heads):
        q = q_ref[:, h * d_qk:(h + 1) * d_qk]                       # [tq, dqk]
        k = kv_ref[:, h * d_qk:(h + 1) * d_qk]                      # [tkv, dqk]
        v = kv_ref[:, v_base + h * d_v: v_base + (h + 1) * d_v]     # [tkv, dv]

        # scale (1/sqrt(d_model)) was folded into W_q/b_q at pack time.
        s = lax.dot_general(q, k, (((1,), (1,)), ((), ())),
                            preferred_element_type=jnp.float32)     # [tq, tkv]

        m_h = m_sc[h]                                               # [tq, 1]
        m_new = jnp.maximum(m_h, jnp.max(s, axis=-1, keepdims=True))
        alpha = jnp.exp(m_h - m_new)
        p = jnp.exp(s - m_new)

        l_sc[h] = alpha * l_sc[h] + jnp.sum(p, axis=-1, keepdims=True)
        pv = jnp.dot(p.astype(v.dtype), v, preferred_element_type=jnp.float32)
        acc_sc[h] = alpha * acc_sc[h] + pv
        m_sc[h] = m_new

    @pl.when(ki == pl.num_programs(2) - 1)
    def _finalize():
        outs = []
        for h in range(n_heads):
            l_h = l_sc[h]
            r = pl.reciprocal(l_h, approx=True)
            r = r * (2.0 - l_h * r)              # one Newton step -> ~f32 exact
            outs.append((acc_sc[h] * r).astype(o_ref.dtype))
        tail = c_out - n_heads * d_v
        if tail:                                 # keep padded lanes exactly 0
            outs.append(jnp.zeros((o_ref.shape[0], tail), o_ref.dtype))
        o_ref[...] = jnp.concatenate(outs, axis=-1)


def pallas_mha(q, kv, *, batch, seq, n_heads, d_qk, d_v):
    mp, cq_p = q.shape
    _, ckv_p = kv.shape
    cv_p = _round_up(n_heads * d_v, LANE)

    vmem = _detect_vmem_bytes()
    kv_cap = 1024 if vmem >= 96 * 1024 * 1024 else 512   # per-generation kv block
    tq = _pick_seq_tile(seq, 256)
    tkv = _pick_seq_tile(seq, kv_cap)
    nq = seq // tq
    nkv = seq // tkv

    kernel = functools.partial(_mha_flash_kernel, n_heads=n_heads,
                               d_qk=d_qk, d_v=d_v, c_out=cv_p)
    return pl.pallas_call(
        kernel,
        out_shape=jax.ShapeDtypeStruct((mp, cv_p), q.dtype),
        grid=(batch, nq, nkv),
        in_specs=[
            pl.BlockSpec((tq, cq_p), lambda b, qi, ki: (b * nq + qi, 0)),
            pl.BlockSpec((tkv, ckv_p), lambda b, qi, ki: (b * nkv + ki, 0)),
        ],
        out_specs=pl.BlockSpec((tq, cv_p), lambda b, qi, ki: (b * nq + qi, 0)),
        scratch_shapes=[
            pltpu.VMEM((n_heads, tq, 1), jnp.float32),       # running max
            pltpu.VMEM((n_heads, tq, 1), jnp.float32),       # running sum
            pltpu.VMEM((n_heads, tq, d_v), jnp.float32),     # un-normalized PV
        ],
        compiler_params=pltpu.CompilerParams(
            dimension_semantics=("parallel", "parallel", "arbitrary")),
    )(q, kv)


# --------------------------------------------------------------------------
# Fused residual-add + LayerNorm, lane-dense over padded d_model.
# Statistics use sum / true d_model with a column mask so padded lanes stay 0.
# --------------------------------------------------------------------------
def _add_ln_kernel(y_ref, r_ref, g_ref, b_ref, o_ref, *, d_valid, eps):
    x = y_ref[...].astype(jnp.float32) + r_ref[...].astype(jnp.float32)
    col = lax.broadcasted_iota(jnp.int32, x.shape, 1)
    mask = col < d_valid
    inv_d = 1.0 / d_valid
    mu = jnp.sum(jnp.where(mask, x, 0.0), axis=-1, keepdims=True) * inv_d
    xc = jnp.where(mask, x - mu, 0.0)
    var = jnp.sum(xc * xc, axis=-1, keepdims=True) * inv_d
    inv = lax.rsqrt(var + eps)
    o_ref[...] = (xc * inv * g_ref[...] + b_ref[...]).astype(o_ref.dtype)


def pallas_add_layernorm(y_pad, r_pad, g_pad, b_pad, *, d_valid, eps=1e-5):
    mp, dp = y_pad.shape
    tm = _pick_tile(mp, 512, SUBLANE)
    return pl.pallas_call(
        functools.partial(_add_ln_kernel, d_valid=d_valid, eps=eps),
        out_shape=jax.ShapeDtypeStruct((mp, dp), y_pad.dtype),
        grid=(mp // tm,),
        in_specs=[
            pl.BlockSpec((tm, dp), lambda i: (i, 0)),
            pl.BlockSpec((tm, dp), lambda i: (i, 0)),
            pl.BlockSpec((1, dp), lambda i: (0, 0)),
            pl.BlockSpec((1, dp), lambda i: (0, 0)),
        ],
        out_specs=pl.BlockSpec((tm, dp), lambda i: (i, 0)),
        compiler_params=pltpu.CompilerParams(
            dimension_semantics=("parallel",)),
    )(y_pad, r_pad, g_pad, b_pad)


# --------------------------------------------------------------------------
# EncoderLayer parameters + forward
# --------------------------------------------------------------------------
class EncoderConfig(NamedTuple):
    d_model: int
    d_qk: int
    d_v: int
    d_ff: int
    n_heads: int


def _torch_linear_init(key, fan_in, fan_out):
    kw, kb = jax.random.split(key)
    bound = 1.0 / math.sqrt(fan_in)
    w = jax.random.uniform(kw, (fan_out, fan_in), jnp.float32, -bound, bound)
    b = jax.random.uniform(kb, (fan_out,), jnp.float32, -bound, bound)
    return w, b


def init_encoder_raw(key, cfg: EncoderConfig):
    D, dqk, dv, dff, H = cfg.d_model, cfg.d_qk, cfg.d_v, cfg.d_ff, cfg.n_heads
    keys = jax.random.split(key, 3 * H + 4)
    raw = {"wq": [], "bq": [], "wk": [], "bk": [], "wv": [], "bv": []}
    idx = 0
    for _ in range(H):
        w, b = _torch_linear_init(keys[idx], D, dqk); idx += 1
        raw["wq"].append(w); raw["bq"].append(b)
        w, b = _torch_linear_init(keys[idx], D, dqk); idx += 1
        raw["wk"].append(w); raw["bk"].append(b)
        w, b = _torch_linear_init(keys[idx], D, dv); idx += 1
        raw["wv"].append(w); raw["bv"].append(b)
    raw["wo"], raw["bo"] = _torch_linear_init(keys[idx], H * dv, D); idx += 1
    raw["w1"], raw["b1"] = _torch_linear_init(keys[idx], D, dff); idx += 1
    raw["w2"], raw["b2"] = _torch_linear_init(keys[idx], dff, D); idx += 1
    kg, kb = jax.random.split(keys[idx])
    raw["ln_g"] = 1.0 + 0.1 * jax.random.normal(kg, (D,), jnp.float32)
    raw["ln_b"] = 0.1 * jax.random.normal(kb, (D,), jnp.float32)
    return raw


def _pack_linear(w_torch, b_torch, dtype):
    """One-time transpose to [in, out], zero-pad to lane multiples, cast weight
    to the operand dtype (bias stays f32: it is added to the f32 accumulator)."""
    fan_out, fan_in = w_torch.shape
    kp = _round_up(fan_in, LANE)
    np_ = _round_up(fan_out, LANE)
    w_io = jnp.pad(w_torch.T, ((0, kp - fan_in), (0, np_ - fan_out))).astype(dtype)
    b_p = jnp.pad(b_torch.reshape(1, fan_out),
                  ((0, 0), (0, np_ - fan_out))).astype(jnp.float32)
    return w_io, b_p


def pack_encoder_params(raw, cfg: EncoderConfig, operand_dtype=jnp.float32):
    D = cfg.d_model
    scale = 1.0 / math.sqrt(D)      # reference module scales QK^T by 1/sqrt(d_model)

    w_q = jnp.concatenate(raw["wq"], axis=0)        # [H*dqk, D] (torch layout)
    b_q = jnp.concatenate(raw["bq"], axis=0)
    w_k = jnp.concatenate(raw["wk"], axis=0)
    b_k = jnp.concatenate(raw["bk"], axis=0)
    w_v = jnp.concatenate(raw["wv"], axis=0)
    b_v = jnp.concatenate(raw["bv"], axis=0)
    w_kv = jnp.concatenate([w_k, w_v], axis=0)      # [K heads | V heads]
    b_kv = jnp.concatenate([b_k, b_v], axis=0)

    p = {}
    # fold the attention scale into the Q projection at pack time (free)
    p["w_q"], p["b_q"] = _pack_linear(w_q * scale, b_q * scale, operand_dtype)
    p["w_kv"], p["b_kv"] = _pack_linear(w_kv, b_kv, operand_dtype)
    p["w_o"], p["b_o"] = _pack_linear(raw["wo"], raw["bo"], operand_dtype)
    p["w_ff1"], p["b_ff1"] = _pack_linear(raw["w1"], raw["b1"], operand_dtype)
    p["w_ff2"], p["b_ff2"] = _pack_linear(raw["w2"], raw["b2"], operand_dtype)

    dp = _round_up(D, LANE)
    p["ln_g"] = jnp.pad(raw["ln_g"].reshape(1, D), ((0, 0), (0, dp - D))
                        ).astype(jnp.float32)
    p["ln_b"] = jnp.pad(raw["ln_b"].reshape(1, D), ((0, 0), (0, dp - D))
                        ).astype(jnp.float32)
    return p


def encoder_layer_forward(x, params, *, config: EncoderConfig,
                          compute_dtype=jnp.float32):
    B, S, D = x.shape
    H, dqk, dv = config.n_heads, config.d_qk, config.d_v
    assert S % SUBLANE == 0, "fused attention path expects seq % 8 == 0"
    # TODO(synk): ragged / non-multiple-of-8 sequence lengths would need a
    # padded-S path with -inf key masking inside the attention kernel.

    M = B * S
    Mp = _round_up(M, SUBLANE)
    Dp = _round_up(D, LANE)

    # Single pad at layer entry; activations stay padded [Mp, *] end-to-end.
    x_pad = jnp.pad(x.reshape(M, D).astype(compute_dtype),
                    ((0, Mp - M), (0, Dp - D)))

    # --- attention projections (scale pre-folded into W_q / b_q)
    q = pallas_linear(x_pad, params["w_q"], params["b_q"])       # [Mp, Cq_p]
    kv = pallas_linear(x_pad, params["w_kv"], params["b_kv"])    # [Mp, Ckv_p]

    # --- fused multi-head flash attention; output already in [M, H*dv] layout
    ctx = pallas_mha(q, kv, batch=B, seq=S, n_heads=H, d_qk=dqk, d_v=dv)

    mha = pallas_linear(ctx, params["w_o"], params["b_o"])       # [Mp, Dp]

    # --- residual + LayerNorm (fused, lane-dense, true-D statistics)
    inter = pallas_add_layernorm(mha, x_pad, params["ln_g"], params["ln_b"],
                                 d_valid=D)

    # --- FFN (bias + ReLU fused into the first matmul epilogue)
    hid = pallas_linear(inter, params["w_ff1"], params["b_ff1"],
                        activation="relu")
    ff = pallas_linear(hid, params["w_ff2"], params["b_ff2"])

    # --- residual + LayerNorm (same norm applied twice, as in the module)
    out = pallas_add_layernorm(ff, inter, params["ln_g"], params["ln_b"],
                               d_valid=D)

    # Single slice at layer exit.
    return out[:M, :D].reshape(B, S, D)


# --------------------------------------------------------------------------
# Pure-JAX reference mirroring the PyTorch module (per-head loop, torch layout)
# --------------------------------------------------------------------------
def encoder_layer_ref(x, raw, cfg: EncoderConfig, eps=1e-5):
    D = cfg.d_model
    heads_out = []
    for h in range(cfg.n_heads):
        Q = x @ raw["wq"][h].T + raw["bq"][h]
        K = x @ raw["wk"][h].T + raw["bk"][h]
        V = x @ raw["wv"][h].T + raw["bv"][h]
        scores = jnp.einsum("bqd,bkd->bqk", Q, K) / math.sqrt(D)
        p = jax.nn.softmax(scores, axis=-1)
        heads_out.append(jnp.einsum("bqk,bkd->bqd", p, V))
    concat = jnp.concatenate(heads_out, axis=-1)
    mha = concat @ raw["wo"].T + raw["bo"]

    def ln(z):
        mu = z.mean(-1, keepdims=True)
        var = jnp.mean((z - mu) ** 2, -1, keepdims=True)
        return (z - mu) / jnp.sqrt(var + eps) * raw["ln_g"] + raw["ln_b"]

    inter = ln(mha + x)
    ff = jnp.maximum(inter @ raw["w1"].T + raw["b1"], 0.0) @ raw["w2"].T + raw["b2"]
    return ln(inter + ff)


if __name__ == "__main__":
    jax.config.update("jax_default_matmul_precision", "highest")

    cfg = EncoderConfig(d_model=32, d_qk=16, d_v=16, d_ff=64, n_heads=4)
    batch, seq = 2, 8

    key = jax.random.PRNGKey(0)
    kp, kx = jax.random.split(key)
    raw = init_encoder_raw(kp, cfg)
    x = jax.random.normal(kx, (batch, seq, cfg.d_model), jnp.float32)

    ref = encoder_layer_ref(x, raw, cfg)

    # f32 operand path
    params_f32 = pack_encoder_params(raw, cfg, jnp.float32)
    fwd_f32 = jax.jit(functools.partial(encoder_layer_forward, config=cfg,
                                        compute_dtype=jnp.float32))
    y = jax.block_until_ready(fwd_f32(x, params_f32))
    assert y.shape == (batch, seq, cfg.d_model)
    err = float(jnp.max(jnp.abs(y - ref)))
    assert jnp.allclose(y, ref, atol=5e-3, rtol=5e-3), f"f32 max abs err {err}"

    # bf16 operand path (MXU fast path): all matmuls incl. attention run with
    # bf16 operands and f32 accumulation; activations stay bf16 end-to-end.
    params_bf16 = pack_encoder_params(raw, cfg, jnp.bfloat16)
    fwd_bf16 = jax.jit(functools.partial(encoder_layer_forward, config=cfg,
                                         compute_dtype=jnp.bfloat16))
    y16 = jax.block_until_ready(fwd_bf16(x, params_bf16)).astype(jnp.float32)
    assert bool(jnp.all(jnp.isfinite(y16)))
    err16 = float(jnp.max(jnp.abs(y16 - ref)))
    assert jnp.allclose(y16, ref, atol=2e-1, rtol=2e-1), f"bf16 max abs err {err16}"

    print("KERNEL_OK")
</pallas_src>

<mosaic_0001>
module attributes {stable_mosaic.version = 11 : i64} {
  func.func @_linear_kernel(%arg0: i32, %arg1: i32, %arg2: i32, %arg3: memref<16x128xf32, #tpu.memory_space<vmem>>, %arg4: memref<128x128xf32, #tpu.memory_space<vmem>>, %arg5: memref<1x128xf32, #tpu.memory_space<vmem>>, %arg6: memref<16x128xf32, #tpu.memory_space<vmem>>, %arg7: memref<16x128xf32, #tpu.memory_space<vmem>>) attributes {dimension_semantics = [#tpu.dimension_semantics<parallel>, #tpu.dimension_semantics<parallel>, #tpu.dimension_semantics<arbitrary>], iteration_bounds = array<i64: 1, 1, 1>, scalar_prefetch = 0 : i64, scratch_operands = 1 : i64, tpu.core_type = #tpu.core_type<tc>, window_params = [{transform_indices = @transform_0, window_bounds = array<i64: 16, 128>}, {transform_indices = @transform_1, window_bounds = array<i64: 128, 128>}, {transform_indices = @transform_2, window_bounds = array<i64: 1, 128>}, {transform_indices = @transform_3, window_bounds = array<i64: 16, 128>}]} {
    %c0_i32 = arith.constant 0 : i32
    %0 = arith.cmpi eq, %arg2, %c0_i32 : i32
    %1 = arith.extui %0 : i1 to i32
    %c0_i32_0 = arith.constant 0 : i32
    %2 = arith.cmpi ne, %1, %c0_i32_0 : i32
    scf.if %2 {
      %cst_10 = arith.constant 0.000000e+00 : f32
      %12 = vector.broadcast %cst_10 : f32 to vector<16x128xf32>
      %c0_11 = arith.constant 0 : index
      %c0_12 = arith.constant 0 : index
      %13 = vector.load %arg7[%c0_11, %c0_12] : memref<16x128xf32, #tpu.memory_space<vmem>>, vector<16x128xf32>
      tpu.vector_store %arg7[%c0_11, %c0_12], %12 {strides = array<i32>} : memref<16x128xf32, #tpu.memory_space<vmem>>, vector<16x128xf32>,
    } else {
    }
    %c0 = arith.constant 0 : index
    %c0_1 = arith.constant 0 : index
    %3 = vector.load %arg7[%c0, %c0_1] : memref<16x128xf32, #tpu.memory_space<vmem>>, vector<16x128xf32>
    %c0_2 = arith.constant 0 : index
    %c0_3 = arith.constant 0 : index
    %4 = vector.load %arg3[%c0_2, %c0_3] : memref<16x128xf32, #tpu.memory_space<vmem>>, vector<16x128xf32>
    %c0_4 = arith.constant 0 : index
    %c0_5 = arith.constant 0 : index
    %5 = vector.load %arg4[%c0_4, %c0_5] : memref<128x128xf32, #tpu.memory_space<vmem>>, vector<128x128xf32>
    %cst = arith.constant dense<0.000000e+00> : vector<16x128xf32>
    %6 = tpu.matmul %4, %5, %cst {dimension_numbers = #tpu.dot_dimension_numbers<[1], [0], [0], [1], [0, 0, 1, 1], [], []>, precision = #tpu.contract_precision<fp32>} : vector<16x128xf32>, vector<128x128xf32>, vector<16x128xf32> -> vector<16x128xf32>
    %7 = arith.addf %3, %6 : vector<16x128xf32>
    %c0_6 = arith.constant 0 : index
    %c0_7 = arith.constant 0 : index
    %8 = vector.load %arg7[%c0_6, %c0_7] : memref<16x128xf32, #tpu.memory_space<vmem>>, vector<16x128xf32>
    tpu.vector_store %arg7[%c0_6, %c0_7], %7 {strides = array<i32>} : memref<16x128xf32, #tpu.memory_space<vmem>>, vector<16x128xf32>,
    %c0_i32_8 = arith.constant 0 : i32
    %9 = arith.cmpi eq, %arg2, %c0_i32_8 : i32
    %10 = arith.extui %9 : i1 to i32
    %c0_i32_9 = arith.constant 0 : i32
    %11 = arith.cmpi ne, %10, %c0_i32_9 : i32
    scf.if %11 {
      %c0_10 = arith.constant 0 : index
      %c0_11 = arith.constant 0 : index
      %12 = vector.load %arg7[%c0_10, %c0_11] : memref<16x128xf32, #tpu.memory_space<vmem>>, vector<16x128xf32>
      %c0_12 = arith.constant 0 : index
      %c0_13 = arith.constant 0 : index
      %13 = vector.load %arg5[%c0_12, %c0_13] : memref<1x128xf32, #tpu.memory_space<vmem>>, vector<1x128xf32>
      %14 = vector.broadcast %13 : vector<1x128xf32> to vector<16x128xf32>
      %15 = arith.addf %12, %14 : vector<16x128xf32>
      %c0_14 = arith.constant 0 : index
      %c0_15 = arith.constant 0 : index
      %16 = vector.load %arg6[%c0_14, %c0_15] : memref<16x128xf32, #tpu.memory_space<vmem>>, vector<16x128xf32>
      tpu.vector_store %arg6[%c0_14, %c0_15], %15 {strides = array<i32>} : memref<16x128xf32, #tpu.memory_space<vmem>>, vector<16x128xf32>,
    } else {
    }
    return
  }
  func.func @transform_0(%arg0: i32, %arg1: i32, %arg2: i32) -> (i32, i32) {
    %c0_i32 = arith.constant 0 : i32
    return %arg0, %arg2 : i32, i32
  }
  func.func @transform_1(%arg0: i32, %arg1: i32, %arg2: i32) -> (i32, i32) {
    %c0_i32 = arith.constant 0 : i32
    return %arg2, %arg1 : i32, i32
  }
  func.func @transform_2(%arg0: i32, %arg1: i32, %arg2: i32) -> (i32, i32) {
    %c0_i32 = arith.constant 0 : i32
    %c0_i32_0 = arith.constant 0 : i32
    return %c0_i32, %arg1 : i32, i32
  }
  func.func @transform_3(%arg0: i32, %arg1: i32, %arg2: i32) -> (i32, i32) {
    %c0_i32 = arith.constant 0 : i32
    return %arg0, %arg1 : i32, i32
  }
}

module attributes {stable_mosaic.version = 11 : i64} {
  func.func @_linear_kernel(%arg0: i32, %arg1: i32, %arg2: i32, %arg3: memref<16x128xf32, #tpu.memory_space<vmem>>, %arg4: memref<128x128xf32, #tpu.memory_space<vmem>>, %arg5: memref<1x128xf32, #tpu.memory_space<vmem>>, %arg6: memref<16x128xf32, #tpu.memory_space<vmem>>, %arg7: memref<16x128xf32, #tpu.memory_space<vmem>>) attributes {dimension_semantics = [#tpu.dimension_semantics<parallel>, #tpu.dimension_semantics<parallel>, #tpu.dimension_semantics<arbitrary>], iteration_bounds = array<i64: 1, 1, 1>, scalar_prefetch = 0 : i64, scratch_operands = 1 : i64, tpu.core_type = #tpu.core_type<tc>, window_params = [{transform_indices = @transform_0, window_bounds = array<i64: 16, 128>}, {transform_indices = @transform_1, window_bounds = array<i64: 128, 128>}, {transform_indices = @transform_2, window_bounds = array<i64: 1, 128>}, {transform_indices = @transform_3, window_bounds = array<i64: 16, 128>}]} {
    %c0_i32 = arith.constant 0 : i32
    %0 = arith.cmpi eq, %arg2, %c0_i32 : i32
    %1 = arith.extui %0 : i1 to i32
    %c0_i32_0 = arith.constant 0 : i32
    %2 = arith.cmpi ne, %1, %c0_i32_0 : i32
    scf.if %2 {
      %cst_10 = arith.constant 0.000000e+00 : f32
      %12 = vector.broadcast %cst_10 : f32 to vector<16x128xf32>
      %c0_11 = arith.constant 0 : index
      %c0_12 = arith.constant 0 : index
      %13 = vector.load %arg7[%c0_11, %c0_12] : memref<16x128xf32, #tpu.memory_space<vmem>>, vector<16x128xf32>
      tpu.vector_store %arg7[%c0_11, %c0_12], %12 {strides = array<i32>} : memref<16x128xf32, #tpu.memory_space<vmem>>, vector<16x128xf32>,
    } else {
    }
    %c0 = arith.constant 0 : index
    %c0_1 = arith.constant 0 : index
    %3 = vector.load %arg7[%c0, %c0_1] : memref<16x128xf32, #tpu.memory_space<vmem>>, vector<16x128xf32>
    %c0_2 = arith.constant 0 : index
    %c0_3 = arith.constant 0 : index
    %4 = vector.load %arg3[%c0_2, %c0_3] : memref<16x128xf32, #tpu.memory_space<vmem>>, vector<16x128xf32>
    %c0_4 = arith.constant 0 : index
    %c0_5 = arith.constant 0 : index
    %5 = vector.load %arg4[%c0_4, %c0_5] : memref<128x128xf32, #tpu.memory_space<vmem>>, vector<128x128xf32>
    %cst = arith.constant dense<0.000000e+00> : vector<16x128xf32>
    %6 = tpu.matmul %4, %5, %cst {dimension_numbers = #tpu.dot_dimension_numbers<[1], [0], [0], [1], [0, 0, 1, 1], [], []>, precision = #tpu.contract_precision<fp32>} : vector<16x128xf32>, vector<128x128xf32>, vector<16x128xf32> -> vector<16x128xf32>
    %7 = arith.addf %3, %6 : vector<16x128xf32>
    %c0_6 = arith.constant 0 : index
    %c0_7 = arith.constant 0 : index
    %8 = vector.load %arg7[%c0_6, %c0_7] : memref<16x128xf32, #tpu.memory_space<vmem>>, vector<16x128xf32>
    tpu.vector_store %arg7[%c0_6, %c0_7], %7 {strides = array<i32>} : memref<16x128xf32, #tpu.memory_space<vmem>>, vector<16x128xf32>,
    %c0_i32_8 = arith.constant 0 : i32
    %9 = arith.cmpi eq, %arg2, %c0_i32_8 : i32
    %10 = arith.extui %9 : i1 to i32
    %c0_i32_9 = arith.constant 0 : i32
    %11 = arith.cmpi ne, %10, %c0_i32_9 : i32
    scf.if %11 {
      %c0_10 = arith.constant 0 : index
      %c0_11 = arith.constant 0 : index
      %12 = vector.load %arg7[%c0_10, %c0_11] : memref<16x128xf32, #tpu.memory_space<vmem>>, vector<16x128xf32>
      %c0_12 = arith.constant 0 : index
      %c0_13 = arith.constant 0 : index
      %13 = vector.load %arg5[%c0_12, %c0_13] : memref<1x128xf32, #tpu.memory_space<vmem>>, vector<1x128xf32>
      %14 = vector.broadcast %13 : vector<1x128xf32> to vector<16x128xf32>
      %15 = arith.addf %12, %14 : vector<16x128xf32>
      %c0_14 = arith.constant 0 : index
      %c0_15 = arith.constant 0 : index
      %16 = vector.load %arg6[%c0_14, %c0_15] : memref<16x128xf32, #tpu.memory_space<vmem>>, vector<16x128xf32>
      tpu.vector_store %arg6[%c0_14, %c0_15], %15 {strides = array<i32>} : memref<16x128xf32, #tpu.memory_space<vmem>>, vector<16x128xf32>,
    } else {
    }
    return
  }
  func.func @transform_0(%arg0: i32, %arg1: i32, %arg2: i32) -> (i32, i32) {
    %c0_i32 = arith.constant 0 : i32
    return %arg0, %arg2 : i32, i32
  }
  func.func @transform_1(%arg0: i32, %arg1: i32, %arg2: i32) -> (i32, i32) {
    %c0_i32 = arith.constant 0 : i32
    return %arg2, %arg1 : i32, i32
  }
  func.func @transform_2(%arg0: i32, %arg1: i32, %arg2: i32) -> (i32, i32) {
    %c0_i32 = arith.constant 0 : i32
    %c0_i32_0 = arith.constant 0 : i32
    return %c0_i32, %arg1 : i32, i32
  }
  func.func @transform_3(%arg0: i32, %arg1: i32, %arg2: i32) -> (i32, i32) {
    %c0_i32 = arith.constant 0 : i32
    return %arg0, %arg1 : i32, i32
  }
}

module attributes {stable_mosaic.version = 11 : i64} {
  func.func @_mha_flash_kernel(%arg0: i32, %arg1: i32, %arg2: i32, %arg3: memref<8x128xf32, #tpu.memory_space<vmem>>, %arg4: memref<8x128xf32, #tpu.memory_space<vmem>>, %arg5: memref<8x128xf32, #tpu.memory_space<vmem>>, %arg6: memref<4x8x1xf32, #tpu.memory_space<vmem>>, %arg7: memref<4x8x1xf32, #tpu.memory_space<vmem>>, %arg8: memref<4x8x16xf32, #tpu.memory_space<vmem>>) attributes {dimension_semantics = [#tpu.dimension_semantics<parallel>, #tpu.dimension_semantics<parallel>, #tpu.dimension_semantics<arbitrary>], iteration_bounds = array<i64: 2, 1, 1>, scalar_prefetch = 0 : i64, scratch_operands = 3 : i64, tpu.core_type = #tpu.core_type<tc>, window_params = [{transform_indices = @transform_0, window_bounds = array<i64: 8, 128>}, {transform_indices = @transform_1, window_bounds = array<i64: 8, 128>}, {transform_indices = @transform_2, window_bounds = array<i64: 8, 128>}]} {
    %c0_i32 = arith.constant 0 : i32
    %0 = arith.cmpi eq, %arg2, %c0_i32 : i32
    %1 = arith.extui %0 : i1 to i32
    %c0_i32_0 = arith.constant 0 : i32
    %2 = arith.cmpi ne, %1, %c0_i32_0 : i32
    scf.if %2 {
      %cst_103 = arith.constant 0xFF800000 : f32
      %146 = vector.broadcast %cst_103 : f32 to vector<4x8x1xf32>
      %c0_104 = arith.constant 0 : index
      %c0_105 = arith.constant 0 : index
      %c0_106 = arith.constant 0 : index
      %147 = vector.load %arg6[%c0_104, %c0_105, %c0_106] : memref<4x8x1xf32, #tpu.memory_space<vmem>>, vector<4x8x1xf32>
      tpu.vector_store %arg6[%c0_104, %c0_105, %c0_106], %146 {strides = array<i32>} : memref<4x8x1xf32, #tpu.memory_space<vmem>>, vector<4x8x1xf32>,
      %cst_107 = arith.constant 0.000000e+00 : f32
      %148 = vector.broadcast %cst_107 : f32 to vector<4x8x1xf32>
      %c0_108 = arith.constant 0 : index
      %c0_109 = arith.constant 0 : index
      %c0_110 = arith.constant 0 : index
      %149 = vector.load %arg7[%c0_108, %c0_109, %c0_110] : memref<4x8x1xf32, #tpu.memory_space<vmem>>, vector<4x8x1xf32>
      tpu.vector_store %arg7[%c0_108, %c0_109, %c0_110], %148 {strides = array<i32>} : memref<4x8x1xf32, #tpu.memory_space<vmem>>, vector<4x8x1xf32>,
      %cst_111 = arith.constant 0.000000e+00 : f32
      %150 = vector.broadcast %cst_111 : f32 to vector<4x8x16xf32>
      %c0_112 = arith.constant 0 : index
      %c0_113 = arith.constant 0 : index
      %c0_114 = arith.constant 0 : index
      %151 = vector.load %arg8[%c0_112, %c0_113, %c0_114] : memref<4x8x16xf32, #tpu.memory_space<vmem>>, vector<4x8x16xf32>
      tpu.vector_store %arg8[%c0_112, %c0_113, %c0_114], %150 {strides = array<i32>} : memref<4x8x16xf32, #tpu.memory_space<vmem>>, vector<4x8x16xf32>,
    } else {
    }
    %c0 = arith.constant 0 : index
    %c0_1 = arith.constant 0 : index
    %3 = vector.load %arg3[%c0, %c0_1] : memref<8x128xf32, #tpu.memory_space<vmem>>, vector<8x16xf32>
    %c0_2 = arith.constant 0 : index
    %c0_3 = arith.constant 0 : index
    %4 = vector.load %arg4[%c0_2, %c0_3] : memref<8x128xf32, #tpu.memory_space<vmem>>, vector<8x16xf32>
    %c0_4 = arith.constant 0 : index
    %c64 = arith.constant 64 : index
    %5 = vector.load %arg4[%c0_4, %c64] : memref<8x128xf32, #tpu.memory_space<vmem>>, vector<8x16xf32>
    %cst = arith.constant dense<0.000000e+00> : vector<8x8xf32>
    %6 = tpu.matmul %3, %4, %cst {dimension_numbers = #tpu.dot_dimension_numbers<[1], [1], [0], [0], [0, 0, 1, 0], [], []>, precision = #tpu.contract_precision<fp32>} : vector<8x16xf32>, vector<8x16xf32>, vector<8x8xf32> -> vector<8x8xf32>
    %c0_5 = arith.constant 0 : index
    %c0_6 = arith.constant 0 : index
    %c0_7 = arith.constant 0 : index
    %7 = vector.load %arg6[%c0_5, %c0_6, %c0_7] : memref<4x8x1xf32, #tpu.memory_space<vmem>>, vector<1x8x1xf32>
    %8 = vector.shape_cast %7 : vector<1x8x1xf32> to vector<8x1xf32>
    %cst_8 = arith.constant dense<0xFF800000> : vector<8xf32>
    %9 = vector.multi_reduction <maximumf>, %6, %cst_8 [1] : vector<8x8xf32> to vector<8xf32>
    %10 = vector.shape_cast %9 : vector<8xf32> to vector<8x1xf32>
    %11 = arith.maximumf %8, %10 : vector<8x1xf32>
    %12 = arith.subf %8, %11 : vector<8x1xf32>
    %13 = math.exp %12 : vector<8x1xf32>
    %14 = vector.broadcast %11 : vector<8x1xf32> to vector<8x8xf32>
    %15 = arith.subf %6, %14 : vector<8x8xf32>
    %16 = math.exp %15 : vector<8x8xf32>
    %c0_9 = arith.constant 0 : index
    %c0_10 = arith.constant 0 : index
    %c0_11 = arith.constant 0 : index
    %17 = vector.load %arg7[%c0_9, %c0_10, %c0_11] : memref<4x8x1xf32, #tpu.memory_space<vmem>>, vector<1x8x1xf32>
    %18 = vector.shape_cast %17 : vector<1x8x1xf32> to vector<8x1xf32>
    %19 = arith.mulf %13, %18 : vector<8x1xf32>
    %cst_12 = arith.constant dense<0.000000e+00> : vector<8xf32>
    %20 = vector.multi_reduction <add>, %16, %cst_12 [1] : vector<8x8xf32> to vector<8xf32>
    %21 = vector.shape_cast %20 : vector<8xf32> to vector<8x1xf32>
    %22 = arith.addf %19, %21 : vector<8x1xf32>
    %c0_13 = arith.constant 0 : index
    %c0_14 = arith.constant 0 : index
    %c0_15 = arith.constant 0 : index
    %23 = vector.load %arg7[%c0_13, %c0_14, %c0_15] : memref<4x8x1xf32, #tpu.memory_space<vmem>>, vector<1x8x1xf32>
    %24 = vector.shape_cast %23 : vector<1x8x1xf32> to vector<8x1xf32>
    %25 = vector.shape_cast %22 : vector<8x1xf32> to vector<1x8x1xf32>
    tpu.vector_store %arg7[%c0_13, %c0_14, %c0_15], %25 {strides = array<i32>} : memref<4x8x1xf32, #tpu.memory_space<vmem>>, vector<1x8x1xf32>,
    %cst_16 = arith.constant dense<0.000000e+00> : vector<8x16xf32>
    %26 = tpu.matmul %16, %5, %cst_16 {dimension_numbers = #tpu.dot_dimension_numbers<[1], [0], [0], [1], [0, 0, 1, 1], [], []>, precision = #tpu.contract_precision<fp32>} : vector<8x8xf32>, vector<8x16xf32>, vector<8x16xf32> -> vector<8x16xf32>
    %c0_17 = arith.constant 0 : index
    %c0_18 = arith.constant 0 : index
    %c0_19 = arith.constant 0 : index
    %27 = vector.load %arg8[%c0_17, %c0_18, %c0_19] : memref<4x8x16xf32, #tpu.memory_space<vmem>>, vector<1x8x16xf32>
    %28 = vector.shape_cast %27 : vector<1x8x16xf32> to vector<8x16xf32>
    %29 = vector.broadcast %13 : vector<8x1xf32> to vector<8x16xf32>
    %30 = arith.mulf %29, %28 : vector<8x16xf32>
    %31 = arith.addf %30, %26 : vector<8x16xf32>
    %c0_20 = arith.constant 0 : index
    %c0_21 = arith.constant 0 : index
    %c0_22 = arith.constant 0 : index
    %32 = vector.load %arg8[%c0_20, %c0_21, %c0_22] : memref<4x8x16xf32, #tpu.memory_space<vmem>>, vector<1x8x16xf32>
    %33 = vector.shape_cast %32 : vector<1x8x16xf32> to vector<8x16xf32>
    %34 = vector.shape_cast %31 : vector<8x16xf32> to vector<1x8x16xf32>
    tpu.vector_store %arg8[%c0_20, %c0_21, %c0_22], %34 {strides = array<i32>} : memref<4x8x16xf32, #tpu.memory_space<vmem>>, vector<1x8x16xf32>,
    %c0_23 = arith.constant 0 : index
    %c0_24 = arith.constant 0 : index
    %c0_25 = arith.constant 0 : index
    %35 = vector.load %arg6[%c0_23, %c0_24, %c0_25] : memref<4x8x1xf32, #tpu.memory_space<vmem>>, vector<1x8x1xf32>
    %36 = vector.shape_cast %35 : vector<1x8x1xf32> to vector<8x1xf32>
    %37 = vector.shape_cast %11 : vector<8x1xf32> to vector<1x8x1xf32>
    tpu.vector_store %arg6[%c0_23, %c0_24, %c0_25], %37 {strides = array<i32>} : memref<4x8x1xf32, #tpu.memory_space<vmem>>, vector<1x8x1xf32>,
    %c0_26 = arith.constant 0 : index
    %c16 = arith.constant 16 : index
    %38 = vector.load %arg3[%c0_26, %c16] : memref<8x128xf32, #tpu.memory_space<vmem>>, vector<8x16xf32>
    %c0_27 = arith.constant 0 : index
    %c16_28 = arith.constant 16 : index
    %39 = vector.load %arg4[%c0_27, %c16_28] : memref<8x128xf32, #tpu.memory_space<vmem>>, vector<8x16xf32>
    %c0_29 = arith.constant 0 : index
    %c80 = arith.constant 80 : index
    %40 = vector.load %arg4[%c0_29, %c80] : memref<8x128xf32, #tpu.memory_space<vmem>>, vector<8x16xf32>
    %cst_30 = arith.constant dense<0.000000e+00> : vector<8x8xf32>
    %41 = tpu.matmul %38, %39, %cst_30 {dimension_numbers = #tpu.dot_dimension_numbers<[1], [1], [0], [0], [0, 0, 1, 0], [], []>, precision = #tpu.contract_precision<fp32>} : vector<8x16xf32>, vector<8x16xf32>, vector<8x8xf32> -> vector<8x8xf32>
    %c1 = arith.constant 1 : index
    %c0_31 = arith.constant 0 : index
    %c0_32 = arith.constant 0 : index
    %42 = vector.load %arg6[%c1, %c0_31, %c0_32] : memref<4x8x1xf32, #tpu.memory_space<vmem>>, vector<1x8x1xf32>
    %43 = vector.shape_cast %42 : vector<1x8x1xf32> to vector<8x1xf32>
    %cst_33 = arith.constant dense<0xFF800000> : vector<8xf32>
    %44 = vector.multi_reduction <maximumf>, %41, %cst_33 [1] : vector<8x8xf32> to vector<8xf32>
    %45 = vector.shape_cast %44 : vector<8xf32> to vector<8x1xf32>
    %46 = arith.maximumf %43, %45 : vector<8x1xf32>
    %47 = arith.subf %43, %46 : vector<8x1xf32>
    %48 = math.exp %47 : vector<8x1xf32>
    %49 = vector.broadcast %46 : vector<8x1xf32> to vector<8x8xf32>
    %50 = arith.subf %41, %49 : vector<8x8xf32>
    %51 = math.exp %50 : vector<8x8xf32>
    %c1_34 = arith.constant 1 : index
    %c0_35 = arith.constant 0 : index
    %c0_36 = arith.constant 0 : index
    %52 = vector.load %arg7[%c1_34, %c0_35, %c0_36] : memref<4x8x1xf32, #tpu.memory_space<vmem>>, vector<1x8x1xf32>
    %53 = vector.shape_cast %52 : vector<1x8x1xf32> to vector<8x1xf32>
    %54 = arith.mulf %48, %53 : vector<8x1xf32>
    %cst_37 = arith.constant dense<0.000000e+00> : vector<8xf32>
    %55 = vector.multi_reduction <add>, %51, %cst_37 [1] : vector<8x8xf32> to vector<8xf32>
    %56 = vector.shape_cast %55 : vector<8xf32> to vector<8x1xf32>
    %57 = arith.addf %54, %56 : vector<8x1xf32>
    %c1_38 = arith.constant 1 : index
    %c0_39 = arith.constant 0 : index
    %c0_40 = arith.constant 0 : index
    %58 = vector.load %arg7[%c1_38, %c0_39, %c0_40] : memref<4x8x1xf32, #tpu.memory_space<vmem>>, vector<1x8x1xf32>
    %59 = vector.shape_cast %58 : vector<1x8x1xf32> to vector<8x1xf32>
    %60 = vector.shape_cast %57 : vector<8x1xf32> to vector<1x8x1xf32>
    tpu.vector_store %arg7[%c1_38, %c0_39, %c0_40], %60 {strides = array<i32>} : memref<4x8x1xf32, #tpu.memory_space<vmem>>, vector<1x8x1xf32>,
    %cst_41 = arith.constant dense<0.000000e+00> : vector<8x16xf32>
    %61 = tpu.matmul %51, %40, %cst_41 {dimension_numbers = #tpu.dot_dimension_numbers<[1], [0], [0], [1], [0, 0, 1, 1], [], []>, precision = #tpu.contract_precision<fp32>} : vector<8x8xf32>, vector<8x16xf32>, vector<8x16xf32> -> vector<8x16xf32>
    %c1_42 = arith.constant 1 : index
    %c0_43 = arith.constant 0 : index
    %c0_44 = arith.constant 0 : index
    %62 = vector.load %arg8[%c1_42, %c0_43, %c0_44] : memref<4x8x16xf32, #tpu.memory_space<vmem>>, vector<1x8x16xf32>
    %63 = vector.shape_cast %62 : vector<1x8x16xf32> to vector<8x16xf32>
    %64 = vector.broadcast %48 : vector<8x1xf32> to vector<8x16xf32>
    %65 = arith.mulf %64, %63 : vector<8x16xf32>
    %66 = arith.addf %65, %61 : vector<8x16xf32>
    %c1_45 = arith.constant 1 : index
    %c0_46 = arith.constant 0 : index
    %c0_47 = arith.constant 0 : index
    %67 = vector.load %arg8[%c1_45, %c0_46, %c0_47] : memref<4x8x16xf32, #tpu.memory_space<vmem>>, vector<1x8x16xf32>
    %68 = vector.shape_cast %67 : vector<1x8x16xf32> to vector<8x16xf32>
    %69 = vector.shape_cast %66 : vector<8x16xf32> to vector<1x8x16xf32>
    tpu.vector_store %arg8[%c1_45, %c0_46, %c0_47], %69 {strides = array<i32>} : memref<4x8x16xf32, #tpu.memory_space<vmem>>, vector<1x8x16xf32>,
    %c1_48 = arith.constant 1 : index
    %c0_49 = arith.constant 0 : index
    %c0_50 = arith.constant 0 : index
    %70 = vector.load %arg6[%c1_48, %c0_49, %c0_50] : memref<4x8x1xf32, #tpu.memory_space<vmem>>, vector<1x8x1xf32>
    %71 = vector.shape_cast %70 : vector<1x8x1xf32> to vector<8x1xf32>
    %72 = vector.shape_cast %46 : vector<8x1xf32> to vector<1x8x1xf32>
    tpu.vector_store %arg6[%c1_48, %c0_49, %c0_50], %72 {strides = array<i32>} : memref<4x8x1xf32, #tpu.memory_space<vmem>>, vector<1x8x1xf32>,
    %c0_51 = arith.constant 0 : index
    %c32 = arith.constant 32 : index
    %73 = vector.load %arg3[%c0_51, %c32] : memref<8x128xf32, #tpu.memory_space<vmem>>, vector<8x16xf32>
    %c0_52 = arith.constant 0 : index
    %c32_53 = arith.constant 32 : index
    %74 = vector.load %arg4[%c0_52, %c32_53] : memref<8x128xf32, #tpu.memory_space<vmem>>, vector<8x16xf32>
    %c0_54 = arith.constant 0 : index
    %c96 = arith.constant 96 : index
    %75 = vector.load %arg4[%c0_54, %c96] : memref<8x128xf32, #tpu.memory_space<vmem>>, vector<8x16xf32>
    %cst_55 = arith.constant dense<0.000000e+00> : vector<8x8xf32>
    %76 = tpu.matmul %73, %74, %cst_55 {dimension_numbers = #tpu.dot_dimension_numbers<[1], [1], [0], [0], [0, 0, 1, 0], [], []>, precision = #tpu.contract_precision<fp32>} : vector<8x16xf32>, vector<8x16xf32>, vector<8x8xf32> -> vector<8x8xf32>
    %c2 = arith.constant 2 : index
    %c0_56 = arith.constant 0 : index
    %c0_57 = arith.constant 0 : index
    %77 = vector.load %arg6[%c2, %c0_56, %c0_57] : memref<4x8x1xf32, #tpu.memory_space<vmem>>, vector<1x8x1xf32>
    %78 = vector.shape_cast %77 : vector<1x8x1xf32> to vector<8x1xf32>
    %cst_58 = arith.constant dense<0xFF800000> : vector<8xf32>
    %79 = vector.multi_reduction <maximumf>, %76, %cst_58 [1] : vector<8x8xf32> to vector<8xf32>
    %80 = vector.shape_cast %79 : vector<8xf32> to vector<8x1xf32>
    %81 = arith.maximumf %78, %80 : vector<8x1xf32>
    %82 = arith.subf %78, %81 : vector<8x1xf32>
    %83 = math.exp %82 : vector<8x1xf32>
    %84 = vector.broadcast %81 : vector<8x1xf32> to vector<8x8xf32>
    %85 = arith.subf %76, %84 : vector<8x8xf32>
    %86 = math.exp %85 : vector<8x8xf32>
    %c2_59 = arith.constant 2 : index
    %c0_60 = arith.constant 0 : index
    %c0_61 = arith.constant 0 : index
    %87 = vector.load %arg7[%c2_59, %c0_60, %c0_61] : memref<4x8x1xf32, #tpu.memory_space<vmem>>, vector<1x8x1xf32>
    %88 = vector.shape_cast %87 : vector<1x8x1xf32> to vector<8x1xf32>
    %89 = arith.mulf %83, %88 : vector<8x1xf32>
    %cst_62 = arith.constant dense<0.000000e+00> : vector<8xf32>
    %90 = vector.multi_reduction <add>, %86, %cst_62 [1] : vector<8x8xf32> to vector<8xf32>
    %91 = vector.shape_cast %90 : vector<8xf32> to vector<8x1xf32>
    %92 = arith.addf %89, %91 : vector<8x1xf32>
    %c2_63 = arith.constant 2 : index
    %c0_64 = arith.constant 0 : index
    %c0_65 = arith.constant 0 : index
    %93 = vector.load %arg7[%c2_63, %c0_64, %c0_65] : memref<4x8x1xf32, #tpu.memory_space<vmem>>, vector<1x8x1xf32>
    %94 = vector.shape_cast %93 : vector<1x8x1xf32> to vector<8x1xf32>
    %95 = vector.shape_cast %92 : vector<8x1xf32> to vector<1x8x1xf32>
    tpu.vector_store %arg7[%c2_63, %c0_64, %c0_65], %95 {strides = array<i32>} : memref<4x8x1xf32, #tpu.memory_space<vmem>>, vector<1x8x1xf32>,
    %cst_66 = arith.constant dense<0.000000e+00> : vector<8x16xf32>
    %96 = tpu.matmul %86, %75, %cst_66 {dimension_numbers = #tpu.dot_dimension_numbers<[1], [0], [0], [1], [0, 0, 1, 1], [], []>, precision = #tpu.contract_precision<fp32>} : vector<8x8xf32>, vector<8x16xf32>, vector<8x16xf32> -> vector<8x16xf32>
    %c2_67 = arith.constant 2 : index
    %c0_68 = arith.constant 0 : index
    %c0_69 = arith.constant 0 : index
    %97 = vector.load %arg8[%c2_67, %c0_68, %c0_69] : memref<4x8x16xf32, #tpu.memory_space<vmem>>, vector<1x8x16xf32>
    %98 = vector.shape_cast %97 : vector<1x8x16xf32> to vector<8x16xf32>
    %99 = vector.broadcast %83 : vector<8x1xf32> to vector<8x16xf32>
    %100 = arith.mulf %99, %98 : vector<8x16xf32>
    %101 = arith.addf %100, %96 : vector<8x16xf32>
    %c2_70 = arith.constant 2 : index
    %c0_71 = arith.constant 0 : index
    %c0_72 = arith.constant 0 : index
    %102 = vector.load %arg8[%c2_70, %c0_71, %c0_72] : memref<4x8x16xf32, #tpu.memory_space<vmem>>, vector<1x8x16xf32>
    %103 = vector.shape_cast %102 : vector<1x8x16xf32> to vector<8x16xf32>
    %104 = vector.shape_cast %101 : vector<8x16xf32> to vector<1x8x16xf32>
    tpu.vector_store %arg8[%c2_70, %c0_71, %c0_72], %104 {strides = array<i32>} : memref<4x8x16xf32, #tpu.memory_space<vmem>>, vector<1x8x16xf32>,
    %c2_73 = arith.constant 2 : index
    %c0_74 = arith.constant 0 : index
    %c0_75 = arith.constant 0 : index
    %105 = vector.load %arg6[%c2_73, %c0_74, %c0_75] : memref<4x8x1xf32, #tpu.memory_space<vmem>>, vector<1x8x1xf32>
    %106 = vector.shape_cast %105 : vector<1x8x1xf32> to vector<8x1xf32>
    %107 = vector.shape_cast %81 : vector<8x1xf32> to vector<1x8x1xf32>
    tpu.vector_store %arg6[%c2_73, %c0_74, %c0_75], %107 {strides = array<i32>} : memref<4x8x1xf32, #tpu.memory_space<vmem>>, vector<1x8x1xf32>,
    %c0_76 = arith.constant 0 : index
    %c48 = arith.constant 48 : index
    %108 = vector.load %arg3[%c0_76, %c48] : memref<8x128xf32, #tpu.memory_space<vmem>>, vector<8x16xf32>
    %c0_77 = arith.constant 0 : index
    %c48_78 = arith.constant 48 : index
    %109 = vector.load %arg4[%c0_77, %c48_78] : memref<8x128xf32, #tpu.memory_space<vmem>>, vector<8x16xf32>
    %c0_79 = arith.constant 0 : index
    %c112 = arith.constant 112 : index
    %110 = vector.load %arg4[%c0_79, %c112] : memref<8x128xf32, #tpu.memory_space<vmem>>, vector<8x16xf32>
    %cst_80 = arith.constant dense<0.000000e+00> : vector<8x8xf32>
    %111 = tpu.matmul %108, %109, %cst_80 {dimension_numbers = #tpu.dot_dimension_numbers<[1], [1], [0], [0], [0, 0, 1, 0], [], []>, precision = #tpu.contract_precision<fp32>} : vector<8x16xf32>, vector<8x16xf32>, vector<8x8xf32> -> vector<8x8xf32>
    %c3 = arith.constant 3 : index
    %c0_81 = arith.constant 0 : index
    %c0_82 = arith.constant 0 : index
    %112 = vector.load %arg6[%c3, %c0_81, %c0_82] : memref<4x8x1xf32, #tpu.memory_space<vmem>>, vector<1x8x1xf32>
    %113 = vector.shape_cast %112 : vector<1x8x1xf32> to vector<8x1xf32>
    %cst_83 = arith.constant dense<0xFF800000> : vector<8xf32>
    %114 = vector.multi_reduction <maximumf>, %111, %cst_83 [1] : vector<8x8xf32> to vector<8xf32>
    %115 = vector.shape_cast %114 : vector<8xf32> to vector<8x1xf32>
    %116 = arith.maximumf %113, %115 : vector<8x1xf32>
    %117 = arith.subf %113, %116 : vector<8x1xf32>
    %118 = math.exp %117 : vector<8x1xf32>
    %119 = vector.broadcast %116 : vector<8x1xf32> to vector<8x8xf32>
    %120 = arith.subf %111, %119 : vector<8x8xf32>
    %121 = math.exp %120 : vector<8x8xf32>
    %c3_84 = arith.constant 3 : index
    %c0_85 = arith.constant 0 : index
    %c0_86 = arith.constant 0 : index
    %122 = vector.load %arg7[%c3_84, %c0_85, %c0_86] : memref<4x8x1xf32, #tpu.memory_space<vmem>>, vector<1x8x1xf32>
    %123 = vector.shape_cast %122 : vector<1x8x1xf32> to vector<8x1xf32>
    %124 = arith.mulf %118, %123 : vector<8x1xf32>
    %cst_87 = arith.constant dense<0.000000e+00> : vector<8xf32>
    %125 = vector.multi_reduction <add>, %121, %cst_87 [1] : vector<8x8xf32> to vector<8xf32>
    %126 = vector.shape_cast %125 : vector<8xf32> to vector<8x1xf32>
    %127 = arith.addf %124, %126 : vector<8x1xf32>
    %c3_88 = arith.constant 3 : index
    %c0_89 = arith.constant 0 : index
    %c0_90 = arith.constant 0 : index
    %128 = vector.load %arg7[%c3_88, %c0_89, %c0_90] : memref<4x8x1xf32, #tpu.memory_space<vmem>>, vector<1x8x1xf32>
    %129 = vector.shape_cast %128 : vector<1x8x1xf32> to vector<8x1xf32>
    %130 = vector.shape_cast %127 : vector<8x1xf32> to vector<1x8x1xf32>
    tpu.vector_store %arg7[%c3_88, %c0_89, %c0_90], %130 {strides = array<i32>} : memref<4x8x1xf32, #tpu.memory_space<vmem>>, vector<1x8x1xf32>,
    %cst_91 = arith.constant dense<0.000000e+00> : vector<8x16xf32>
    %131 = tpu.matmul %121, %110, %cst_91 {dimension_numbers = #tpu.dot_dimension_numbers<[1], [0], [0], [1], [0, 0, 1, 1], [], []>, precision = #tpu.contract_precision<fp32>} : vector<8x8xf32>, vector<8x16xf32>, vector<8x16xf32> -> vector<8x16xf32>
    %c3_92 = arith.constant 3 : index
    %c0_93 = arith.constant 0 : index
    %c0_94 = arith.constant 0 : index
    %132 = vector.load %arg8[%c3_92, %c0_93, %c0_94] : memref<4x8x16xf32, #tpu.memory_space<vmem>>, vector<1x8x16xf32>
    %133 = vector.shape_cast %132 : vector<1x8x16xf32> to vector<8x16xf32>
    %134 = vector.broadcast %118 : vector<8x1xf32> to vector<8x16xf32>
    %135 = arith.mulf %134, %133 : vector<8x16xf32>
    %136 = arith.addf %135, %131 : vector<8x16xf32>
    %c3_95 = arith.constant 3 : index
    %c0_96 = arith.constant 0 : index
    %c0_97 = arith.constant 0 : index
    %137 = vector.load %arg8[%c3_95, %c0_96, %c0_97] : memref<4x8x16xf32, #tpu.memory_space<vmem>>, vector<1x8x16xf32>
    %138 = vector.shape_cast %137 : vector<1x8x16xf32> to vector<8x16xf32>
    %139 = vector.shape_cast %136 : vector<8x16xf32> to vector<1x8x16xf32>
    tpu.vector_store %arg8[%c3_95, %c0_96, %c0_97], %139 {strides = array<i32>} : memref<4x8x16xf32, #tpu.memory_space<vmem>>, vector<1x8x16xf32>,
    %c3_98 = arith.constant 3 : index
    %c0_99 = arith.constant 0 : index
    %c0_100 = arith.constant 0 : index
    %140 = vector.load %arg6[%c3_98, %c0_99, %c0_100] : memref<4x8x1xf32, #tpu.memory_space<vmem>>, vector<1x8x1xf32>
    %141 = vector.shape_cast %140 : vector<1x8x1xf32> to vector<8x1xf32>
    %142 = vector.shape_cast %116 : vector<8x1xf32> to vector<1x8x1xf32>
    tpu.vector_store %arg6[%c3_98, %c0_99, %c0_100], %142 {strides = array<i32>} : memref<4x8x1xf32, #tpu.memory_space<vmem>>, vector<1x8x1xf32>,
    %c0_i32_101 = arith.constant 0 : i32
    %143 = arith.cmpi eq, %arg2, %c0_i32_101 : i32
    %144 = arith.extui %143 : i1 to i32
    %c0_i32_102 = arith.constant 0 : i32
    %145 = arith.cmpi ne, %144, %c0_i32_102 : i32
    scf.if %145 {
      %c0_103 = arith.constant 0 : index
      %c0_104 = arith.constant 0 : index
      %c0_105 = arith.constant 0 : index
      %146 = vector.load %arg7[%c0_103, %c0_104, %c0_105] : memref<4x8x1xf32, #tpu.memory_space<vmem>>, vector<1x8x1xf32>
      %147 = vector.shape_cast %146 : vector<1x8x1xf32> to vector<8x1xf32>
      %148 = tpu.reciprocal %147 {approx = true} : vector<8x1xf32> -> vector<8x1xf32>
      %149 = arith.mulf %147, %148 : vector<8x1xf32>
      %cst_106 = arith.constant 2.000000e+00 : f32
      %150 = vector.broadcast %cst_106 : f32 to vector<8x1xf32>
      %151 = arith.subf %150, %149 : vector<8x1xf32>
      %152 = arith.mulf %148, %151 : vector<8x1xf32>
      %c0_107 = arith.constant 0 : index
      %c0_108 = arith.constant 0 : index
      %c0_109 = arith.constant 0 : index
      %153 = vector.load %arg8[%c0_107, %c0_108, %c0_109] : memref<4x8x16xf32, #tpu.memory_space<vmem>>, vector<1x8x16xf32>
      %154 = vector.shape_cast %153 : vector<1x8x16xf32> to vector<8x16xf32>
      %155 = vector.broadcast %152 : vector<8x1xf32> to vector<8x16xf32>
      %156 = arith.mulf %154, %155 : vector<8x16xf32>
      %c1_110 = arith.constant 1 : index
      %c0_111 = arith.constant 0 : index
      %c0_112 = arith.constant 0 : index
      %157 = vector.load %arg7[%c1_110, %c0_111, %c0_112] : memref<4x8x1xf32, #tpu.memory_space<vmem>>, vector<1x8x1xf32>
      %158 = vector.shape_cast %157 : vector<1x8x1xf32> to vector<8x1xf32>
      %159 = tpu.reciprocal %158 {approx = true} : vector<8x1xf32> -> vector<8x1xf32>
      %160 = arith.mulf %158, %159 : vector<8x1xf32>
      %cst_113 = arith.constant 2.000000e+00 : f32
      %161 = vector.broadcast %cst_113 : f32 to vector<8x1xf32>
      %162 = arith.subf %161, %160 : vector<8x1xf32>
      %163 = arith.mulf %159, %162 : vector<8x1xf32>
      %c1_114 = arith.constant 1 : index
      %c0_115 = arith.constant 0 : index
      %c0_116 = arith.constant 0 : index
      %164 = vector.load %arg8[%c1_114, %c0_115, %c0_116] : memref<4x8x16xf32, #tpu.memory_space<vmem>>, vector<1x8x16xf32>
      %165 = vector.shape_cast %164 : vector<1x8x16xf32> to vector<8x16xf32>
      %166 = vector.broadcast %163 : vector<8x1xf32> to vector<8x16xf32>
      %167 = arith.mulf %165, %166 : vector<8x16xf32>
      %c2_117 = arith.constant 2 : index
      %c0_118 = arith.constant 0 : index
      %c0_119 = arith.constant 0 : index
      %168 = vector.load %arg7[%c2_117, %c0_118, %c0_119] : memref<4x8x1xf32, #tpu.memory_space<vmem>>, vector<1x8x1xf32>
      %169 = vector.shape_cast %168 : vector<1x8x1xf32> to vector<8x1xf32>
      %170 = tpu.reciprocal %169 {approx = true} : vector<8x1xf32> -> vector<8x1xf32>
      %171 = arith.mulf %169, %170 : vector<8x1xf32>
      %cst_120 = arith.constant 2.000000e+00 : f32
      %172 = vector.broadcast %cst_120 : f32 to vector<8x1xf32>
      %173 = arith.subf %172, %171 : vector<8x1xf32>
      %174 = arith.mulf %170, %173 : vector<8x1xf32>
      %c2_121 = arith.constant 2 : index
      %c0_122 = arith.constant 0 : index
      %c0_123 = arith.constant 0 : index
      %175 = vector.load %arg8[%c2_121, %c0_122, %c0_123] : memref<4x8x16xf32, #tpu.memory_space<vmem>>, vector<1x8x16xf32>
      %176 = vector.shape_cast %175 : vector<1x8x16xf32> to vector<8x16xf32>
      %177 = vector.broadcast %174 : vector<8x1xf32> to vector<8x16xf32>
      %178 = arith.mulf %176, %177 : vector<8x16xf32>
      %c3_124 = arith.constant 3 : index
      %c0_125 = arith.constant 0 : index
      %c0_126 = arith.constant 0 : index
      %179 = vector.load %arg7[%c3_124, %c0_125, %c0_126] : memref<4x8x1xf32, #tpu.memory_space<vmem>>, vector<1x8x1xf32>
      %180 = vector.shape_cast %179 : vector<1x8x1xf32> to vector<8x1xf32>
      %181 = tpu.reciprocal %180 {approx = true} : vector<8x1xf32> -> vector<8x1xf32>
      %182 = arith.mulf %180, %181 : vector<8x1xf32>
      %cst_127 = arith.constant 2.000000e+00 : f32
      %183 = vector.broadcast %cst_127 : f32 to vector<8x1xf32>
      %184 = arith.subf %183, %182 : vector<8x1xf32>
      %185 = arith.mulf %181, %184 : vector<8x1xf32>
      %c3_128 = arith.constant 3 : index
      %c0_129 = arith.constant 0 : index
      %c0_130 = arith.constant 0 : index
      %186 = vector.load %arg8[%c3_128, %c0_129, %c0_130] : memref<4x8x16xf32, #tpu.memory_space<vmem>>, vector<1x8x16xf32>
      %187 = vector.shape_cast %186 : vector<1x8x16xf32> to vector<8x16xf32>
      %188 = vector.broadcast %185 : vector<8x1xf32> to vector<8x16xf32>
      %189 = arith.mulf %187, %188 : vector<8x16xf32>
      %cst_131 = arith.constant 0.000000e+00 : f32
      %190 = vector.broadcast %cst_131 : f32 to vector<8x64xf32>
      %191 = tpu.concatenate %156, %167, %178, %189, %190 in 1 : vector<8x16xf32>, vector<8x16xf32>, vector<8x16xf32>, vector<8x16xf32>, vector<8x64xf32> -> vector<8x128xf32>
      %c0_132 = arith.constant 0 : index
      %c0_133 = arith.constant 0 : index
      %192 = vector.load %arg5[%c0_132, %c0_133] : memref<8x128xf32, #tpu.memory_space<vmem>>, vector<8x128xf32>
      tpu.vector_store %arg5[%c0_132, %c0_133], %191 {strides = array<i32>} : memref<8x128xf32, #tpu.memory_space<vmem>>, vector<8x128xf32>,
    } else {
    }
    return
  }
  func.func @transform_0(%arg0: i32, %arg1: i32, %arg2: i32) -> (i32, i32) {
    %c1_i32 = arith.constant 1 : i32
    %0 = arith.muli %arg0, %c1_i32 : i32
    %1 = arith.addi %0, %arg1 : i32
    %c0_i32 = arith.constant 0 : i32
    %c0_i32_0 = arith.constant 0 : i32
    return %1, %c0_i32 : i32, i32
  }
  func.func @transform_1(%arg0: i32, %arg1: i32, %arg2: i32) -> (i32, i32) {
    %c1_i32 = arith.constant 1 : i32
    %0 = arith.muli %arg0, %c1_i32 : i32
    %1 = arith.addi %0, %arg2 : i32
    %c0_i32 = arith.constant 0 : i32
    %c0_i32_0 = arith.constant 0 : i32
    return %1, %c0_i32 : i32, i32
  }
  func.func @transform_2(%arg0: i32, %arg1: i32, %arg2: i32) -> (i32, i32) {
    %c1_i32 = arith.constant 1 : i32
    %0 = arith.muli %arg0, %c1_i32 : i32
    %1 = arith.addi %0, %arg1 : i32
    %c0_i32 = arith.constant 0 : i32
    %c0_i32_0 = arith.constant 0 : i32
    return %1, %c0_i32 : i32, i32
  }
}

module attributes {stable_mosaic.version = 11 : i64} {
  func.func @_add_ln_kernel(%arg0: i32, %arg1: memref<16x128xf32, #tpu.memory_space<vmem>>, %arg2: memref<16x128xf32, #tpu.memory_space<vmem>>, %arg3: memref<1x128xf32, #tpu.memory_space<vmem>>, %arg4: memref<1x128xf32, #tpu.memory_space<vmem>>, %arg5: memref<16x128xf32, #tpu.memory_space<vmem>>) attributes {dimension_semantics = [#tpu.dimension_semantics<parallel>], iteration_bounds = array<i64: 1>, scalar_prefetch = 0 : i64, scratch_operands = 0 : i64, tpu.core_type = #tpu.core_type<tc>, window_params = [{transform_indices = @transform_0, window_bounds = array<i64: 16, 128>}, {transform_indices = @transform_1, window_bounds = array<i64: 16, 128>}, {pipeline_mode = #tpu.pipeline_mode<synchronous>, transform_indices = @transform_2, window_bounds = array<i64: 1, 128>}, {pipeline_mode = #tpu.pipeline_mode<synchronous>, transform_indices = @transform_3, window_bounds = array<i64: 1, 128>}, {transform_indices = @transform_4, window_bounds = array<i64: 16, 128>}]} {
    %c0 = arith.constant 0 : index
    %c0_0 = arith.constant 0 : index
    %0 = vector.load %arg1[%c0, %c0_0] : memref<16x128xf32, #tpu.memory_space<vmem>>, vector<16x128xf32>
    %c0_1 = arith.constant 0 : index
    %c0_2 = arith.constant 0 : index
    %1 = vector.load %arg2[%c0_1, %c0_2] : memref<16x128xf32, #tpu.memory_space<vmem>>, vector<16x128xf32>
    %2 = arith.addf %0, %1 : vector<16x128xf32>
    %3 = tpu.iota {dimensions = array<i32: 1>} : vector<16x128xi32>
    %c32_i32 = arith.constant 32 : i32
    %4 = vector.broadcast %c32_i32 : i32 to vector<16x128xi32>
    %5 = arith.cmpi slt, %3, %4 : vector<16x128xi32>
    %cst = arith.constant 0.000000e+00 : f32
    %6 = vector.broadcast %cst : f32 to vector<16x128xf32>
    %7 = arith.select %5, %2, %6 : vector<16x128xi1>, vector<16x128xf32>
    %cst_3 = arith.constant dense<0.000000e+00> : vector<16xf32>
    %8 = vector.multi_reduction <add>, %7, %cst_3 [1] : vector<16x128xf32> to vector<16xf32>
    %9 = vector.shape_cast %8 : vector<16xf32> to vector<16x1xf32>
    %cst_4 = arith.constant 3.125000e-02 : f32
    %10 = vector.broadcast %cst_4 : f32 to vector<16x1xf32>
    %11 = arith.mulf %9, %10 : vector<16x1xf32>
    %12 = vector.broadcast %11 : vector<16x1xf32> to vector<16x128xf32>
    %13 = arith.subf %2, %12 : vector<16x128xf32>
    %cst_5 = arith.constant 0.000000e+00 : f32
    %14 = vector.broadcast %cst_5 : f32 to vector<16x128xf32>
    %15 = arith.select %5, %13, %14 : vector<16x128xi1>, vector<16x128xf32>
    %16 = arith.mulf %15, %15 : vector<16x128xf32>
    %cst_6 = arith.constant dense<0.000000e+00> : vector<16xf32>
    %17 = vector.multi_reduction <add>, %16, %cst_6 [1] : vector<16x128xf32> to vector<16xf32>
    %18 = vector.shape_cast %17 : vector<16xf32> to vector<16x1xf32>
    %cst_7 = arith.constant 3.125000e-02 : f32
    %19 = vector.broadcast %cst_7 : f32 to vector<16x1xf32>
    %20 = arith.mulf %18, %19 : vector<16x1xf32>
    %cst_8 = arith.constant 9.99999974E-6 : f32
    %21 = vector.broadcast %cst_8 : f32 to vector<16x1xf32>
    %22 = arith.addf %20, %21 : vector<16x1xf32>
    %23 = math.rsqrt %22 : vector<16x1xf32>
    %24 = vector.broadcast %23 : vector<16x1xf32> to vector<16x128xf32>
    %25 = arith.mulf %15, %24 : vector<16x128xf32>
    %c0_9 = arith.constant 0 : index
    %c0_10 = arith.constant 0 : index
    %26 = vector.load %arg3[%c0_9, %c0_10] : memref<1x128xf32, #tpu.memory_space<vmem>>, vector<1x128xf32>
    %27 = vector.broadcast %26 : vector<1x128xf32> to vector<16x128xf32>
    %28 = arith.mulf %25, %27 : vector<16x128xf32>
    %c0_11 = arith.constant 0 : index
    %c0_12 = arith.constant 0 : index
    %29 = vector.load %arg4[%c0_11, %c0_12] : memref<1x128xf32, #tpu.memory_space<vmem>>, vector<1x128xf32>
    %30 = vector.broadcast %29 : vector<1x128xf32> to vector<16x128xf32>
    %31 = arith.addf %28, %30 : vector<16x128xf32>
    %c0_13 = arith.constant 0 : index
    %c0_14 = arith.constant 0 : index
    %32 = vector.load %arg5[%c0_13, %c0_14] : memref<16x128xf32, #tpu.memory_space<vmem>>, vector<16x128xf32>
    tpu.vector_store %arg5[%c0_13, %c0_14], %31 {strides = array<i32>} : memref<16x128xf32, #tpu.memory_space<vmem>>, vector<16x128xf32>,
    return
  }
  func.func @transform_0(%arg0: i32) -> (i32, i32) {
    %c0_i32 = arith.constant 0 : i32
    %c0_i32_0 = arith.constant 0 : i32
    return %arg0, %c0_i32 : i32, i32
  }
  func.func @transform_1(%arg0: i32) -> (i32, i32) {
    %c0_i32 = arith.constant 0 : i32
    %c0_i32_0 = arith.constant 0 : i32
    return %arg0, %c0_i32 : i32, i32
  }
  func.func @transform_2(%arg0: i32) -> (i32, i32) {
    %c0_i32 = arith.constant 0 : i32
    %c0_i32_0 = arith.constant 0 : i32
    %c0_i32_1 = arith.constant 0 : i32
    return %c0_i32, %c0_i32_0 : i32, i32
  }
  func.func @transform_3(%arg0: i32) -> (i32, i32) {
    %c0_i32 = arith.constant 0 : i32
    %c0_i32_0 = arith.constant 0 : i32
    %c0_i32_1 = arith.constant 0 : i32
    return %c0_i32, %c0_i32_0 : i32, i32
  }
  func.func @transform_4(%arg0: i32) -> (i32, i32) {
    %c0_i32 = arith.constant 0 : i32
    %c0_i32_0 = arith.constant 0 : i32
    return %arg0, %c0_i32 : i32, i32
  }
}

module attributes {stable_mosaic.version = 11 : i64} {
  func.func @_linear_kernel(%arg0: i32, %arg1: i32, %arg2: i32, %arg3: memref<16x128xf32, #tpu.memory_space<vmem>>, %arg4: memref<128x128xf32, #tpu.memory_space<vmem>>, %arg5: memref<1x128xf32, #tpu.memory_space<vmem>>, %arg6: memref<16x128xf32, #tpu.memory_space<vmem>>, %arg7: memref<16x128xf32, #tpu.memory_space<vmem>>) attributes {dimension_semantics = [#tpu.dimension_semantics<parallel>, #tpu.dimension_semantics<parallel>, #tpu.dimension_semantics<arbitrary>], iteration_bounds = array<i64: 1, 1, 1>, scalar_prefetch = 0 : i64, scratch_operands = 1 : i64, tpu.core_type = #tpu.core_type<tc>, window_params = [{transform_indices = @transform_0, window_bounds = array<i64: 16, 128>}, {transform_indices = @transform_1, window_bounds = array<i64: 128, 128>}, {transform_indices = @transform_2, window_bounds = array<i64: 1, 128>}, {transform_indices = @transform_3, window_bounds = array<i64: 16, 128>}]} {
    %c0_i32 = arith.constant 0 : i32
    %0 = arith.cmpi eq, %arg2, %c0_i32 : i32
    %1 = arith.extui %0 : i1 to i32
    %c0_i32_0 = arith.constant 0 : i32
    %2 = arith.cmpi ne, %1, %c0_i32_0 : i32
    scf.if %2 {
      %cst_10 = arith.constant 0.000000e+00 : f32
      %12 = vector.broadcast %cst_10 : f32 to vector<16x128xf32>
      %c0_11 = arith.constant 0 : index
      %c0_12 = arith.constant 0 : index
      %13 = vector.load %arg7[%c0_11, %c0_12] : memref<16x128xf32, #tpu.memory_space<vmem>>, vector<16x128xf32>
      tpu.vector_store %arg7[%c0_11, %c0_12], %12 {strides = array<i32>} : memref<16x128xf32, #tpu.memory_space<vmem>>, vector<16x128xf32>,
    } else {
    }
    %c0 = arith.constant 0 : index
    %c0_1 = arith.constant 0 : index
    %3 = vector.load %arg7[%c0, %c0_1] : memref<16x128xf32, #tpu.memory_space<vmem>>, vector<16x128xf32>
    %c0_2 = arith.constant 0 : index
    %c0_3 = arith.constant 0 : index
    %4 = vector.load %arg3[%c0_2, %c0_3] : memref<16x128xf32, #tpu.memory_space<vmem>>, vector<16x128xf32>
    %c0_4 = arith.constant 0 : index
    %c0_5 = arith.constant 0 : index
    %5 = vector.load %arg4[%c0_4, %c0_5] : memref<128x128xf32, #tpu.memory_space<vmem>>, vector<128x128xf32>
    %cst = arith.constant dense<0.000000e+00> : vector<16x128xf32>
    %6 = tpu.matmul %4, %5, %cst {dimension_numbers = #tpu.dot_dimension_numbers<[1], [0], [0], [1], [0, 0, 1, 1], [], []>, precision = #tpu.contract_precision<fp32>} : vector<16x128xf32>, vector<128x128xf32>, vector<16x128xf32> -> vector<16x128xf32>
    %7 = arith.addf %3, %6 : vector<16x128xf32>
    %c0_6 = arith.constant 0 : index
    %c0_7 = arith.constant 0 : index
    %8 = vector.load %arg7[%c0_6, %c0_7] : memref<16x128xf32, #tpu.memory_space<vmem>>, vector<16x128xf32>
    tpu.vector_store %arg7[%c0_6, %c0_7], %7 {strides = array<i32>} : memref<16x128xf32, #tpu.memory_space<vmem>>, vector<16x128xf32>,
    %c0_i32_8 = arith.constant 0 : i32
    %9 = arith.cmpi eq, %arg2, %c0_i32_8 : i32
    %10 = arith.extui %9 : i1 to i32
    %c0_i32_9 = arith.constant 0 : i32
    %11 = arith.cmpi ne, %10, %c0_i32_9 : i32
    scf.if %11 {
      %c0_10 = arith.constant 0 : index
      %c0_11 = arith.constant 0 : index
      %12 = vector.load %arg7[%c0_10, %c0_11] : memref<16x128xf32, #tpu.memory_space<vmem>>, vector<16x128xf32>
      %c0_12 = arith.constant 0 : index
      %c0_13 = arith.constant 0 : index
      %13 = vector.load %arg5[%c0_12, %c0_13] : memref<1x128xf32, #tpu.memory_space<vmem>>, vector<1x128xf32>
      %14 = vector.broadcast %13 : vector<1x128xf32> to vector<16x128xf32>
      %15 = arith.addf %12, %14 : vector<16x128xf32>
      %cst_14 = arith.constant 0.000000e+00 : f32
      %16 = vector.broadcast %cst_14 : f32 to vector<16x128xf32>
      %17 = arith.maximumf %15, %16 : vector<16x128xf32>
      %c0_15 = arith.constant 0 : index
      %c0_16 = arith.constant 0 : index
      %18 = vector.load %arg6[%c0_15, %c0_16] : memref<16x128xf32, #tpu.memory_space<vmem>>, vector<16x128xf32>
      tpu.vector_store %arg6[%c0_15, %c0_16], %17 {strides = array<i32>} : memref<16x128xf32, #tpu.memory_space<vmem>>, vector<16x128xf32>,
    } else {
    }
    return
  }
  func.func @transform_0(%arg0: i32, %arg1: i32, %arg2: i32) -> (i32, i32) {
    %c0_i32 = arith.constant 0 : i32
    return %arg0, %arg2 : i32, i32
  }
  func.func @transform_1(%arg0: i32, %arg1: i32, %arg2: i32) -> (i32, i32) {
    %c0_i32 = arith.constant 0 : i32
    return %arg2, %arg1 : i32, i32
  }
  func.func @transform_2(%arg0: i32, %arg1: i32, %arg2: i32) -> (i32, i32) {
    %c0_i32 = arith.constant 0 : i32
    %c0_i32_0 = arith.constant 0 : i32
    return %c0_i32, %arg1 : i32, i32
  }
  func.func @transform_3(%arg0: i32, %arg1: i32, %arg2: i32) -> (i32, i32) {
    %c0_i32 = arith.constant 0 : i32
    return %arg0, %arg1 : i32, i32
  }
}

</mosaic_0001>

<bundles_post_ra>
// kernel: encoder_layer_forward.8
= control target key start
LH: loop header
LB: loop body
LE: loop exit
PB: predicated region body
PF: predicated region fallthrough
CT: control target
= control target key end

     0   :  { %s1618_s1 = inlined_call_operand.vmem [shape: f32[128,128], index: 1, kind: input, shape index: {}]   ;;  %s1619_s0 = inlined_call_operand.vmem [shape: f32[16,128], index: 0, kind: input, shape index: {}]   ;;  %s1620_s2 = inlined_call_operand.vmem [shape: f32[1,128], index: 2, kind: input, shape index: {}]   ;;  %s1621_s3 = inlined_call_operand.vmem [shape: f32[16,128], index: 3, kind: output, shape index: {}]  }
   0x1   :  { %v24_v0 = vld [vmem:[%s1618_s1] sm:$0xff]  ;;  %v25_v1 = vld [vmem:[%s1618_s1 + $0x8] sm:$0xff]  ;;  %v26_v2 = vld [vmem:[%s1618_s1 + $0x10] sm:$0xff] }
   0x2   :  { %v41_v3 = vand.u32 4294901760, %v24_v0  ;;  %v44_v4 = vand.u32 4294901760, %v25_v1  ;;  %v1301_v5 = vld [vmem:[%s1618_s1 + $0x18] sm:$0xff]  ;;  %v47_v6 = vand.u32 4294901760, %v26_v2  ;;  %v1306_v7 = vld [vmem:[%s1618_s1 + $0x20] sm:$0xff]  ;;  %v1311_v8 = vld [vmem:[%s1618_s1 + $0x28] sm:$0xff] }
   0x3   :  { %v50_v9 = vand.u32 4294901760, %v1301_v5  ;;  %v53_v11 = vand.u32 4294901760, %v1306_v7  ;;  %v56_v12 = vand.u32 4294901760, %v1311_v8  ;;  %v1323_v14 = vld [vmem:[%s1618_s1 + $0x30] sm:$0xff]  ;;  %v1328_v15 = vld [vmem:[%s1618_s1 + $0x38] sm:$0xff]  ;;  %v22_v16 = vld [vmem:[%s1619_s0] sm:$0xff] }
   0x4   :  { %v1314_v10 = vpack.c.bf16 %v44_v4, %v41_v3  ;;  %v1337_v17 = vand.u32 4294901760, %v22_v16  ;;  %v59_v19 = vand.u32 4294901760, %v1323_v14  ;;  %v62_v20 = vand.u32 4294901760, %v1328_v15  ;;  %v1352_v21 = vld [vmem:[%s1618_s1 + $0x40] sm:$0xff]  ;;  %v1357_v22 = vld [vmem:[%s1618_s1 + $0x48] sm:$0xff]  ;;  %v1378_v28 = vld [vmem:[%s1618_s1 + $0x50] sm:$0xff] }
   0x5   :  { %v1318_v13 = vpack.c.bf16 %v50_v9, %v47_v6  ;;  %v1345_v18 = vpack.c.bf16 %v56_v12, %v53_v11  ;;  %v65_v26 = vand.u32 4294901760, %v1352_v21  ;;  %v68_v27 = vand.u32 4294901760, %v1357_v22  ;;  %v1383_v29 = vld [vmem:[%s1618_s1 + $0x58] sm:$0xff]  ;;  %v23_v32 = vld [vmem:[%s1619_s0 + $0x8] sm:$0xff]  ;;  %v1404_v36 = vld [vmem:[%s1618_s1 + $0x60] sm:$0xff] }
   0x6   :  { %1068 = vmatprep.subr.bf16.mxu1 %v1314_v10  ;;  %1164 = vmatprep.subr.bf16.mxu0 %v1314_v10  ;;  %v1360_v23 = vsub.f32 %v22_v16, %v1337_v17  ;;  %v1371_v25 = vpack.c.bf16 %v62_v20, %v59_v19  ;;  %v71_v31 = vand.u32 4294901760, %v1378_v28  ;;  %v74_v35 = vand.u32 4294901760, %v1383_v29  ;;  %v1409_v37 = vld [vmem:[%s1618_s1 + $0x68] sm:$0xff]  ;;  %v1424_v43 = vld [vmem:[%s1618_s1 + $0x70] sm:$0xff]  ;;  %v1429_v44 = vld [vmem:[%s1618_s1 + $0x78] sm:$0xff] }
   0x7   :  { %1070 = vmatpush3.bf16.msra.mxu1 %v1314_v10  ;;  %1166 = vmatpush3.bf16.msra.mxu0 %v1314_v10  ;;  %v1398_v34 = vpack.c.bf16 %v68_v27, %v65_v26  ;;  %v1411_v38 = vsub.f32 %v24_v0, %v41_v3  ;;  %v1413_v39 = vsub.f32 %v25_v1, %v44_v4  ;;  %v1415_v40 = vand.u32 4294901760, %v23_v32 }
   0x8   :  { %1072 = vmatprep.subr.bf16.mxu1 %v1318_v13  ;;  %1168 = vmatprep.subr.bf16.mxu0 %v1318_v13  ;;  %v123_v24 = vand.u32 4294901760, %v1360_v23  ;;  %v77_v41 = vand.u32 4294901760, %v1404_v36  ;;  %v80_v42 = vand.u32 4294901760, %v1409_v37  ;;  %v1431_v45 = vsub.f32 %v26_v2, %v47_v6 }
   0x9   :  { %v1439_v46 = vpack.c.bf16 %v74_v35, %v71_v31  ;;  %v144_v47 = vand.u32 4294901760, %v1411_v38  ;;  %v151_v48 = vand.u32 4294901760, %v1413_v39  ;;  %v1444_v49 = vsub.f32 %v1301_v5, %v50_v9 }
   0xa   :  { %v124_v30 = vsub.f32 %v1360_v23, %v123_v24  ;;  %994 = vmatprep.mubr.f32.mxu0 %v123_v24  ;;  %v83_v50 = vand.u32 4294901760, %v1424_v43  ;;  %v86_v51 = vand.u32 4294901760, %v1429_v44  ;;  %v1449_v52 = vsub.f32 %v23_v32, %v1415_v40 }
   0xb   :  { %1074 = vmatpush3.bf16.msra.mxu1 %v1318_v13  ;;  %1170 = vmatpush3.bf16.msra.mxu0 %v1318_v13  ;;  %v1457_v53 = vpack.c.bf16 %v80_v42, %v77_v41  ;;  %v158_v54 = vand.u32 4294901760, %v1431_v45  ;;  %v1463_v55 = vsub.f32 %v1306_v7, %v53_v11  ;;  %v145_v56 = vsub.f32 %v1411_v38, %v144_v47 }
   0xc   :  { %1076 = vmatprep.subr.bf16.mxu1 %v1345_v18  ;;  %1172 = vmatprep.subr.bf16.mxu0 %v1345_v18  ;;  %v125_v33 = vand.u32 4294901760, %v124_v30  ;;  %v152_v57 = vsub.f32 %v1413_v39, %v151_v48  ;;  %v165_v58 = vand.u32 4294901760, %v1444_v49  ;;  %v1473_v59 = vsub.f32 %v1311_v8, %v56_v12 }
   0xd   :  { %v1479_v60 = vpack.c.bf16 %v86_v51, %v83_v50  ;;  %v133_v61 = vand.u32 4294901760, %v1449_v52  ;;  %v159_v62 = vsub.f32 %v1431_v45, %v158_v54  ;;  %v172_v63 = vand.u32 4294901760, %v1463_v55 }
   0xe   :  { %889 = vmatprep.mubr.f32.mxu1 %v125_v33  ;;  %v1489_v0 = vsub.f32 %v1323_v14, %v59_v19  ;;  %v1494_v1 = vsub.f32 %v1328_v15, %v62_v20  ;;  %v146_v2 = vand.u32 4294901760, %v145_v56  ;;  %v153_v3 = vand.u32 4294901760, %v152_v57 }
   0xf   :  { %1078 = vmatpush3.bf16.msra.mxu1 %v1345_v18  ;;  %1174 = vmatpush3.bf16.msra.mxu0 %v1345_v18  ;;  %v166_v4 = vsub.f32 %v1444_v49, %v165_v58  ;;  %v179_v5 = vand.u32 4294901760, %v1473_v59  ;;  %v1195_v6 = vpack.c.bf16 %v151_v48, %v144_v47  ;;  %v134_v7 = vsub.f32 %v1449_v52, %v133_v61 }
  0x10   :  { %1080 = vmatprep.subr.bf16.mxu1 %v1371_v25  ;;  %1176 = vmatprep.subr.bf16.mxu0 %v1371_v25  ;;  %v1504_v8 = vsub.f32 %v1352_v21, %v65_v26  ;;  %v160_v9 = vand.u32 4294901760, %v159_v62  ;;  %v173_v11 = vsub.f32 %v1463_v55, %v172_v63  ;;  %v186_v12 = vand.u32 4294901760, %v1489_v0 }
  0x11   :  { %v193_v14 = vand.u32 4294901760, %v1494_v1  ;;  %v1099_v15 = vpack.c.bf16 %v153_v3, %v146_v2  ;;  %v167_v16 = vand.u32 4294901760, %v166_v4  ;;  %v180_v19 = vsub.f32 %v1473_v59, %v179_v5 }
  0x12   :  { %v1517_v20 = vsub.f32 %v1357_v22, %v68_v27  ;;  %v135_v21 = vand.u32 4294901760, %v134_v7  ;;  %v1199_v24 = vpack.c.bf16 %v165_v58, %v158_v54  ;;  %v200_v26 = vand.u32 4294901760, %v1504_v8 }
  0x13   :  { %1082 = vmatpush3.bf16.msra.mxu1 %v1371_v25  ;;  %1178 = vmatpush3.bf16.msra.mxu0 %v1371_v25  ;;  %v1523_v30 = vsub.f32 %v1378_v28, %v71_v31  ;;  %v187_v32 = vsub.f32 %v1489_v0, %v186_v12  ;;  %v194_v33 = vsub.f32 %v1494_v1, %v193_v14  ;;  %v174_v47 = vand.u32 4294901760, %v173_v11 }
  0x14   :  { %1084 = vmatprep.subr.bf16.mxu1 %v1398_v34  ;;  %1180 = vmatprep.subr.bf16.mxu0 %v1398_v34  ;;  %v1532_v22 = vsub.f32 %v1383_v29, %v74_v35  ;;  %v1103_v27 = vpack.c.bf16 %v167_v16, %v160_v9  ;;  %v181_v48 = vand.u32 4294901760, %v180_v19  ;;  %v207_v28 = vand.u32 4294901760, %v1517_v20 }
  0x15   :  { %v1203_v31 = vpack.c.bf16 %v179_v5, %v172_v63  ;;  %v201_v54 = vsub.f32 %v1504_v8, %v200_v26  ;;  %v1539_v56 = vsub.f32 %v1404_v36, %v77_v41  ;;  %v188_v29 = vand.u32 4294901760, %v187_v32 }
  0x16   :  { %v195_v35 = vand.u32 4294901760, %v194_v33  ;;  %v214_v57 = vand.u32 4294901760, %v1523_v30  ;;  %v221_v58 = vand.u32 4294901760, %v1532_v22  ;;  %v1107_v62 = vpack.c.bf16 %v181_v48, %v174_v47 }
  0x17   :  { %1086 = vmatpush3.bf16.msra.mxu1 %v1398_v34  ;;  %1182 = vmatpush3.bf16.msra.mxu0 %v1398_v34  ;;  %v1547_v63 = vsub.f32 %v1409_v37, %v80_v42  ;;  %v1207_v36 = vpack.c.bf16 %v193_v14, %v186_v12  ;;  %v202_v41 = vand.u32 4294901760, %v201_v54  ;;  %v228_v5 = vand.u32 4294901760, %v1539_v56 }
  0x18   :  { %1088 = vmatprep.subr.bf16.mxu1 %v1439_v46  ;;  %1184 = vmatprep.subr.bf16.mxu0 %v1439_v46  ;;  %v1111_v2 = vpack.c.bf16 %v195_v35, %v188_v29  ;;  %v215_v3 = vsub.f32 %v1523_v30, %v214_v57  ;;  %v222_v4 = vsub.f32 %v1532_v22, %v221_v58 }
  0x19   :  { %v235_v37 = vand.u32 4294901760, %v1547_v63  ;;  %v1558_v42 = vsub.f32 %v1424_v43, %v83_v50  ;;  %v1563_v7 = vsub.f32 %v1429_v44, %v86_v51  ;;  %v1211_v9 = vpack.c.bf16 %v207_v28, %v200_v26 }
  0x1a   :  { %v216_v11 = vand.u32 4294901760, %v215_v3  ;;  %v223_v12 = vand.u32 4294901760, %v222_v4  ;;  %v229_v14 = vsub.f32 %v1539_v56, %v228_v5  ;;  %v1215_v51 = vpack.c.bf16 %v221_v58, %v214_v57 }
  0x1b   :  { %1090 = vmatpush3.bf16.msra.mxu1 %v1439_v46  ;;  %1186 = vmatpush3.bf16.msra.mxu0 %v1439_v46  ;;  %v236_v16 = vsub.f32 %v1547_v63, %v235_v37  ;;  %v242_v43 = vand.u32 4294901760, %v1558_v42  ;;  %v249_v50 = vand.u32 4294901760, %v1563_v7  ;;  %v1219_v33 = vpack.c.bf16 %v235_v37, %v228_v5 }
  0x1c   :  { %1092 = vmatprep.subr.bf16.mxu1 %v1457_v53  ;;  %1188 = vmatprep.subr.bf16.mxu0 %v1457_v53  ;;  %v1119_v44 = vpack.c.bf16 %v223_v12, %v216_v11  ;;  %v230_v19 = vand.u32 4294901760, %v229_v14  ;;  %v1135_v54 = vpack.c.bf16 %v1444_v49, %v1431_v45 }
  0x1d   :  { %v250_v26 = vsub.f32 %v1563_v7, %v249_v50 }
  0x1f   :  { %1094 = vmatpush3.bf16.msra.mxu1 %v1457_v53  ;;  %1190 = vmatpush3.bf16.msra.mxu0 %v1457_v53  ;;  %v251_v47 = vand.u32 4294901760, %v250_v26 }
  0x20   :  { %1096 = vmatprep.subr.bf16.mxu1 %v1479_v60  ;;  %1192 = vmatprep.subr.bf16.mxu0 %v1479_v60 }
  0x23   :  { %1098 = vmatpush3.bf16.msra.mxu1 %v1479_v60  ;;  %1194 = vmatpush3.bf16.msra.mxu0 %v1479_v60 }
  0x24   :  { %1100 = vmatprep.subr.bf16.mxu1 %v1099_v15  ;;  %1196 = vmatprep.subr.bf16.mxu0 %v1195_v6 }
  0x26   :  { %890 = vmatmul.mubr.f32.vlgmr.msra.gmra.mrb[0].mxu1 %v135_v21  ;;  %995 = vmatmul.mubr.f32.vlgmr.msra.gmra.mrb[0].mxu0 %v133_v61  ;;  %v208_v61 = vsub.f32 %v1517_v20, %v207_v28  ;;  %v237_v21 = vand.u32 4294901760, %v236_v16  ;;  %v1223_v28 = vpack.c.bf16 %v249_v50, %v242_v43 }
  0x27   :  { %1102 = vmatpush3.bf16.msra.mxu1 %v1099_v15  ;;  %1198 = vmatpush3.bf16.msra.mxu0 %v1195_v6 }
  0x28   :  { %1104 = vmatprep.subr.bf16.mxu1 %v1103_v27  ;;  %1200 = vmatprep.subr.bf16.mxu0 %v1199_v24  ;;  %v209_v6 = vand.u32 4294901760, %v208_v61  ;;  %v1123_v32 = vpack.c.bf16 %v237_v21, %v230_v19 }
  0x29   :  { %924 = vmatprep.mubr.f32.mxu1 %v1337_v17  ;;  %1029 = vmatprep.mubr.f32.mxu0 %v1337_v17 }
  0x2a   :  { %v1115_v15 = vpack.c.bf16 %v209_v6, %v202_v41 }
  0x2b   :  { %1106 = vmatpush3.bf16.msra.mxu1 %v1103_v27  ;;  %1202 = vmatpush3.bf16.msra.mxu0 %v1199_v24  ;;  %v243_v24 = vsub.f32 %v1558_v42, %v242_v43 }
  0x2c   :  { %1108 = vmatprep.subr.bf16.mxu1 %v1107_v62  ;;  %1204 = vmatprep.subr.bf16.mxu0 %v1203_v31 }
  0x2d   :  { %v244_v27 = vand.u32 4294901760, %v243_v24 }
  0x2f   :  { %1110 = vmatpush3.bf16.msra.mxu1 %v1107_v62  ;;  %1206 = vmatpush3.bf16.msra.mxu0 %v1203_v31  ;;  %v1127_v48 = vpack.c.bf16 %v251_v47, %v244_v27  ;;  %v1131_v31 = vpack.c.bf16 %v1413_v39, %v1411_v38  ;;  %v1139_v38 = vpack.c.bf16 %v1473_v59, %v1463_v55 }
  0x30   :  { %1112 = vmatprep.subr.bf16.mxu1 %v1111_v2  ;;  %1208 = vmatprep.subr.bf16.mxu0 %v1207_v36  ;;  %v1143_v39 = vpack.c.bf16 %v1494_v1, %v1489_v0 }
  0x33   :  { %1114 = vmatpush3.bf16.msra.mxu1 %v1111_v2  ;;  %1210 = vmatpush3.bf16.msra.mxu0 %v1207_v36 }
  0x34   :  { %1116 = vmatprep.subr.bf16.mxu1 %v1115_v15  ;;  %1212 = vmatprep.subr.bf16.mxu0 %v1211_v9 }
  0x37   :  { %1118 = vmatpush3.bf16.msra.mxu1 %v1115_v15  ;;  %1214 = vmatpush3.bf16.msra.mxu0 %v1211_v9 }
  0x38   :  { %1120 = vmatprep.subr.bf16.mxu1 %v1119_v44  ;;  %1216 = vmatprep.subr.bf16.mxu0 %v1215_v51 }
  0x3b   :  { %1122 = vmatpush3.bf16.msra.mxu1 %v1119_v44  ;;  %1218 = vmatpush3.bf16.msra.mxu0 %v1215_v51 }
  0x3c   :  { %1124 = vmatprep.subr.bf16.mxu1 %v1123_v32  ;;  %1220 = vmatprep.subr.bf16.mxu0 %v1219_v33 }
  0x3f   :  { %1126 = vmatpush3.bf16.msra.mxu1 %v1123_v32  ;;  %1222 = vmatpush3.bf16.msra.mxu0 %v1219_v33 }
  0x40   :  { %1128 = vmatprep.subr.bf16.mxu1 %v1127_v48  ;;  %1224 = vmatprep.subr.bf16.mxu0 %v1223_v28 }
  0x43   :  { %1130 = vmatpush3.bf16.msra.mxu1 %v1127_v48  ;;  %1226 = vmatpush3.bf16.msra.mxu0 %v1223_v28 }
  0x44   :  { %1132 = vmatprep.subr.bf16.mxu1 %v1131_v31  ;;  %1228 = vmatprep.subr.bf16.mxu0 %v1314_v10 }
  0x46   :  { %925 = vmatmul.mubr.f32.vlgmr.msra.gmra.mrb[0].mxu1 %v1415_v40  ;;  %1030 = vmatmul.mubr.f32.vlgmr.msra.gmra.mrb[0].mxu0 %v1415_v40 }
  0x47   :  { %1134 = vmatpush3.bf16.msra.mxu1 %v1131_v31  ;;  %1230 = vmatpush3.bf16.msra.mxu0 %v1314_v10  ;;  %v1147_v10 = vpack.c.bf16 %v1517_v20, %v1504_v8 }
  0x48   :  { %1136 = vmatprep.subr.bf16.mxu1 %v1135_v54  ;;  %1232 = vmatprep.subr.bf16.mxu0 %v1318_v13 }
  0x49   :  { %959 = vmatprep.mubr.f32.mxu1 %v1360_v23  ;;  %1064 = vmatprep.mubr.f32.mxu0 %v1337_v17  ;;  %v1155_v17 = vpack.c.bf16 %v1547_v63, %v1539_v56 }
  0x4b   :  { %1138 = vmatpush3.bf16.msra.mxu1 %v1135_v54  ;;  %1234 = vmatpush3.bf16.msra.mxu0 %v1318_v13  ;;  %v1151_v13 = vpack.c.bf16 %v1532_v22, %v1523_v30 }
  0x4c   :  { %1140 = vmatprep.subr.bf16.mxu1 %v1139_v38  ;;  %1236 = vmatprep.subr.bf16.mxu0 %v1345_v18 }
  0x4f   :  { %1142 = vmatpush3.bf16.msra.mxu1 %v1139_v38  ;;  %1238 = vmatpush3.bf16.msra.mxu0 %v1345_v18  ;;  %v1159_v18 = vpack.c.bf16 %v1563_v7, %v1558_v42 }
  0x50   :  { %1144 = vmatprep.subr.bf16.mxu1 %v1143_v39  ;;  %1240 = vmatprep.subr.bf16.mxu0 %v1371_v25 }
  0x53   :  { %1146 = vmatpush3.bf16.msra.mxu1 %v1143_v39  ;;  %1242 = vmatpush3.bf16.msra.mxu0 %v1371_v25 }
  0x54   :  { %1148 = vmatprep.subr.bf16.mxu1 %v1147_v10  ;;  %1244 = vmatprep.subr.bf16.mxu0 %v1398_v34 }
  0x57   :  { %1150 = vmatpush3.bf16.msra.mxu1 %v1147_v10  ;;  %1246 = vmatpush3.bf16.msra.mxu0 %v1398_v34  ;;  %v748_v34 = vld [vmem:[%s1620_s2] ss:$0 sm:$0xff] }
  0x58   :  { %1152 = vmatprep.subr.bf16.mxu1 %v1151_v13  ;;  %1248 = vmatprep.subr.bf16.mxu0 %v1439_v46 }
  0x5b   :  { %1154 = vmatpush3.bf16.msra.mxu1 %v1151_v13  ;;  %1250 = vmatpush3.bf16.msra.mxu0 %v1439_v46 }
  0x5c   :  { %1156 = vmatprep.subr.bf16.mxu1 %v1155_v17  ;;  %1252 = vmatprep.subr.bf16.mxu0 %v1457_v53 }
  0x5f   :  { %1158 = vmatpush3.bf16.msra.mxu1 %v1155_v17  ;;  %1254 = vmatpush3.bf16.msra.mxu0 %v1457_v53 }
  0x60   :  { %1160 = vmatprep.subr.bf16.mxu1 %v1159_v18  ;;  %1256 = vmatprep.subr.bf16.mxu0 %v1479_v60 }
  0x63   :  { %1162 = vmatpush3.bf16.msra.mxu1 %v1159_v18  ;;  %1258 = vmatpush3.bf16.msra.mxu0 %v1479_v60 }
  0x66   :  { %960 = vmatmul.mubr.f32.vlgmr.msra.gmra.mrb[0].mxu1 %v1449_v52  ;;  %1065 = vmatmul.mubr.f32.vlgmr.msra.gmra.mrb[0].mxu0 %v1415_v40 }
 0x139   :  { %v961_v23 = vpop.f32.mrb[0].mxu1  ;;  %v1066_v25 = vpop.f32.mrb[0].mxu0 }
 0x13a   :  { %v1259_v45 = vadd.f32 %v1066_v25, %v961_v23  ;;  %v398_v46 = vpop.f32.mrb[1].mxu1  ;;  %v714_v49 = vpop.f32.mrb[1].mxu0 }
 0x13b   :  { %v1260_v53 = vadd.f32 %v714_v49, %v398_v46 }
 0x13c   :  { %v741_v55 = vadd.f32 %v1259_v45, %v748_v34 }
 0x13d   :  { %v740_v59 = vadd.f32 %v1260_v53, %v748_v34 }
 0x13e   :  { %743 = vst [vmem:[%s1621_s3 + $0x8] sm:$0xff] %v741_v55 }
 0x13f   :  { %742 = vst [vmem:[%s1621_s3] sm:$0xff] %v740_v59 }

// kernel: encoder_layer_forward.9
= control target key start
LH: loop header
LB: loop body
LE: loop exit
PB: predicated region body
PF: predicated region fallthrough
CT: control target
= control target key end

     0   :  { %8 = vsyncpa [#allocation4], 0  ;;  %s1675_s0 = inlined_call_operand.vmem [shape: f32[16,128], index: 0, kind: input, shape index: {}]   ;;  %s1676_s1 = inlined_call_operand.hbm [shape: f32[128,128], index: 1, kind: input, shape index: {}]   ;;  %s1677_s2 = inlined_call_operand.hbm [shape: f32[1,128], index: 2, kind: input, shape index: {}]   ;;  %s1678_s3 = inlined_call_operand.vmem [shape: f32[16,128], index: 3, kind: output, shape index: {}]  }
   0x1   :  { %9 = vsyncpa [#allocation6], 0  ;;  %s1349_s12 = smov [#allocation3]   ;;  %s1301_s16 = scalar_lea.hbm %s1676_s1, 2048 }
   0x2   :  { %s17_s13 = sshll.u32 %s1349_s12, 4  ;;  %p1302_p0 = scmp.ne.s32.totalorder %s1676_s1, %s1301_s16  ;;  %s18_s13 = int_to_ptr.vmem [resolvable:$true] %s17_s13 }
   0x3   :  { %p1305_p1 = scmp.lt.u32.totalorder %s1301_s16, %s1676_s1 }
   0x5   :  { %p1307_p2 = pnand %p1305_p1, %p1302_p0 }
   0x7   :  { %1310 = shalt.err (!%p1307_p2)
}
   0x8   :  { %s1311_s21 = scalar_lea.vmem %s18_s13, 2048  ;;  %p1316_p4 = scmp.lt.s32.totalorder %s18_s13, %s18_s13 }
   0x9   :  { %p1312_p3 = scmp.ne.s32.totalorder %s18_s13, %s1311_s21  ;;  %p1317_p5 = scmp.lt.s32.totalorder %s1311_s21, %s1311_s21 }
   0xb   :  { %p1318_p6 = por %p1317_p5, %p1316_p4 }
   0xd   :  { %p1319_p7 = pnand %p1318_p6, %p1312_p3 }
   0xf   :  { %1322 = shalt.err (!%p1319_p7)
}
  0x10   :  { %s1350_s22 = smov 128   ;;  %s1351_s23 = smov 8  }
  0x11   :  { %23 = dma.hbm_to_vmem [thread:$0]  %s1676_s1, 2048, %s18_s13, [#allocation4], %s1350_s22, %s1350_s22, %s1351_s23  }
  0x12   :  { %s1352_s26 = smov [#allocation5]   ;;  %s1323_s30 = scalar_lea.hbm %s1677_s2, 16 }
  0x13   :  { %s30_s27 = sshll.u32 %s1352_s26, 4  ;;  %p1324_p8 = scmp.ne.s32.totalorder %s1677_s2, %s1323_s30  ;;  %s31_s27 = int_to_ptr.vmem [resolvable:$true] %s30_s27 }
  0x14   :  { %p1327_p9 = scmp.lt.u32.totalorder %s1323_s30, %s1677_s2 }
  0x16   :  { %p1329_p10 = pnand %p1327_p9, %p1324_p8 }
  0x18   :  { %1332 = shalt.err (!%p1329_p10)
}
  0x19   :  { %s1333_s8 = scalar_lea.vmem %s31_s27, 16  ;;  %s1337_s1 = scalar_lea.vmem %s31_s27, 32 }
  0x1a   :  { %p1334_p11 = scmp.ne.s32.totalorder %s31_s27, %s1333_s8  ;;  %p1338_p12 = scmp.lt.s32.totalorder %s31_s27, %s31_s27 }
  0x1b   :  { %p1339_p13 = scmp.lt.s32.totalorder %s1337_s1, %s1333_s8 }
  0x1d   :  { %p1340_p0 = por %p1339_p13, %p1338_p12 }
  0x1f   :  { %p1341_p1 = pnand %p1340_p0, %p1334_p11 }
  0x21   :  { %1344 = shalt.err (!%p1341_p1)
}
  0x22   :  { %33 = dma.hbm_to_vmem [thread:$0]  %s1677_s2, 16, %s31_s27, [#allocation6]  }
  0x23   :  { %1345 = dma.done.wait [#allocation4], 2048  }
  0x24   :  { %1346 = vsyncadd [#allocation4], 4294965248 }
  0x25   :  { %1347 = dma.done.wait [#allocation6], 16  }
  0x26   :  { %1348 = vsyncadd [#allocation6], 4294967280  ;;  %v50_v0 = vld [vmem:[#allocation3] sm:$0xff]  ;;  %v51_v1 = vld [vmem:[#allocation3 + $0x8] sm:$0xff] }
  0x27   :  { %v52_v2 = vld [vmem:[#allocation3 + $0x10] sm:$0xff]  ;;  %v67_v3 = vand.u32 4294901760, %v50_v0  ;;  %v70_v4 = vand.u32 4294901760, %v51_v1  ;;  %v1397_v5 = vld [vmem:[#allocation3 + $0x18] sm:$0xff]  ;;  %v1399_v7 = vld [vmem:[#allocation3 + $0x20] sm:$0xff] }
  0x28   :  { %v73_v6 = vand.u32 4294901760, %v52_v2  ;;  %v1401_v8 = vld [vmem:[#allocation3 + $0x28] sm:$0xff]  ;;  %v76_v9 = vand.u32 4294901760, %v1397_v5  ;;  %v79_v11 = vand.u32 4294901760, %v1399_v7  ;;  %v1410_v14 = vld [vmem:[#allocation3 + $0x30] sm:$0xff]  ;;  %v1412_v15 = vld [vmem:[#allocation3 + $0x38] sm:$0xff] }
  0x29   :  { %v1404_v10 = vpack.c.bf16 %v70_v4, %v67_v3  ;;  %v82_v12 = vand.u32 4294901760, %v1401_v8  ;;  %v48_v16 = vld [vmem:[%s1675_s0] sm:$0xff]  ;;  %v85_v19 = vand.u32 4294901760, %v1410_v14  ;;  %v88_v20 = vand.u32 4294901760, %v1412_v15  ;;  %v1435_v22 = vld [vmem:[#allocation3 + $0x48] sm:$0xff]  ;;  %v1453_v28 = vld [vmem:[#allocation3 + $0x50] sm:$0xff] }
  0x2a   :  { %v1408_v13 = vpack.c.bf16 %v76_v9, %v73_v6  ;;  %v1421_v17 = vand.u32 4294901760, %v48_v16  ;;  %v1433_v21 = vld [vmem:[#allocation3 + $0x40] sm:$0xff]  ;;  %v94_v27 = vand.u32 4294901760, %v1435_v22  ;;  %v1455_v29 = vld [vmem:[#allocation3 + $0x58] sm:$0xff]  ;;  %v97_v31 = vand.u32 4294901760, %v1453_v28  ;;  %v49_v33 = vld [vmem:[%s1675_s0 + $0x8] sm:$0xff] }
  0x2b   :  { %1096 = vmatprep.subr.bf16.mxu1 %v1404_v10  ;;  %1192 = vmatprep.subr.bf16.mxu0 %v1404_v10  ;;  %v1429_v18 = vpack.c.bf16 %v82_v12, %v79_v11  ;;  %v1449_v25 = vpack.c.bf16 %v88_v20, %v85_v19  ;;  %v91_v26 = vand.u32 4294901760, %v1433_v21  ;;  %v100_v35 = vand.u32 4294901760, %v1455_v29  ;;  %v1473_v36 = vld [vmem:[#allocation3 + $0x60] sm:$0xff]  ;;  %v1475_v37 = vld [vmem:[#allocation3 + $0x68] sm:$0xff]  ;;  %v1487_v43 = vld [vmem:[#allocation3 + $0x70] sm:$0xff] }
  0x2c   :  { %1098 = vmatpush3.bf16.msra.mxu1 %v1404_v10  ;;  %1194 = vmatpush3.bf16.msra.mxu0 %v1404_v10  ;;  %v1438_v23 = vsub.f32 %v48_v16, %v1421_v17  ;;  %v1477_v38 = vsub.f32 %v50_v0, %v67_v3  ;;  %v1479_v39 = vsub.f32 %v51_v1, %v70_v4  ;;  %v1481_v40 = vand.u32 4294901760, %v49_v33  ;;  %v1489_v44 = vld [vmem:[#allocation3 + $0x78] sm:$0xff] }
  0x2d   :  { %1100 = vmatprep.subr.bf16.mxu1 %v1408_v13  ;;  %1196 = vmatprep.subr.bf16.mxu0 %v1408_v13  ;;  %v1470_v34 = vpack.c.bf16 %v94_v27, %v91_v26  ;;  %v103_v41 = vand.u32 4294901760, %v1473_v36  ;;  %v106_v42 = vand.u32 4294901760, %v1475_v37  ;;  %v1491_v45 = vsub.f32 %v52_v2, %v73_v6 }
  0x2e   :  { %v149_v24 = vand.u32 4294901760, %v1438_v23  ;;  %v1499_v46 = vpack.c.bf16 %v100_v35, %v97_v31  ;;  %v170_v47 = vand.u32 4294901760, %v1477_v38  ;;  %v177_v48 = vand.u32 4294901760, %v1479_v39 }
  0x2f   :  { %v1504_v49 = vsub.f32 %v1397_v5, %v76_v9  ;;  %v109_v50 = vand.u32 4294901760, %v1487_v43  ;;  %v112_v51 = vand.u32 4294901760, %v1489_v44  ;;  %v1509_v52 = vsub.f32 %v49_v33, %v1481_v40 }
  0x30   :  { %1102 = vmatpush3.bf16.msra.mxu1 %v1408_v13  ;;  %1198 = vmatpush3.bf16.msra.mxu0 %v1408_v13  ;;  %v150_v30 = vsub.f32 %v1438_v23, %v149_v24  ;;  %v1517_v53 = vpack.c.bf16 %v106_v42, %v103_v41  ;;  %v184_v54 = vand.u32 4294901760, %v1491_v45  ;;  %v1523_v55 = vsub.f32 %v1399_v7, %v79_v11 }
  0x31   :  { %1104 = vmatprep.subr.bf16.mxu1 %v1429_v18  ;;  %1200 = vmatprep.subr.bf16.mxu0 %v1429_v18  ;;  %v171_v56 = vsub.f32 %v1477_v38, %v170_v47  ;;  %v178_v57 = vsub.f32 %v1479_v39, %v177_v48  ;;  %v191_v58 = vand.u32 4294901760, %v1504_v49  ;;  %v1533_v59 = vsub.f32 %v1401_v8, %v82_v12 }
  0x32   :  { %1022 = vmatprep.mubr.f32.mxu0 %v149_v24  ;;  %v151_v32 = vand.u32 4294901760, %v150_v30  ;;  %v1539_v60 = vpack.c.bf16 %v112_v51, %v109_v50  ;;  %v159_v61 = vand.u32 4294901760, %v1509_v52  ;;  %v185_v62 = vsub.f32 %v1491_v45, %v184_v54 }
  0x33   :  { %v198_v63 = vand.u32 4294901760, %v1523_v55  ;;  %v1549_v0 = vsub.f32 %v1410_v14, %v85_v19  ;;  %v1554_v1 = vsub.f32 %v1412_v15, %v88_v20  ;;  %v172_v2 = vand.u32 4294901760, %v171_v56 }
  0x34   :  { %1106 = vmatpush3.bf16.msra.mxu1 %v1429_v18  ;;  %1202 = vmatpush3.bf16.msra.mxu0 %v1429_v18  ;;  %v179_v3 = vand.u32 4294901760, %v178_v57  ;;  %v192_v4 = vsub.f32 %v1504_v49, %v191_v58  ;;  %v205_v5 = vand.u32 4294901760, %v1533_v59  ;;  %v1223_v6 = vpack.c.bf16 %v177_v48, %v170_v47 }
  0x35   :  { %1108 = vmatprep.subr.bf16.mxu1 %v1449_v25  ;;  %1204 = vmatprep.subr.bf16.mxu0 %v1449_v25  ;;  %v160_v7 = vsub.f32 %v1509_v52, %v159_v61  ;;  %v1564_v8 = vsub.f32 %v1433_v21, %v91_v26  ;;  %v186_v9 = vand.u32 4294901760, %v185_v62  ;;  %v199_v11 = vsub.f32 %v1523_v55, %v198_v63 }
  0x36   :  { %917 = vmatprep.mubr.f32.mxu1 %v151_v32  ;;  %v212_v12 = vand.u32 4294901760, %v1549_v0  ;;  %v219_v14 = vand.u32 4294901760, %v1554_v1  ;;  %v1127_v15 = vpack.c.bf16 %v179_v3, %v172_v2  ;;  %v193_v16 = vand.u32 4294901760, %v192_v4 }
  0x37   :  { %v206_v19 = vsub.f32 %v1533_v59, %v205_v5  ;;  %v1577_v20 = vsub.f32 %v1435_v22, %v94_v27  ;;  %v161_v21 = vand.u32 4294901760, %v160_v7  ;;  %v1227_v24 = vpack.c.bf16 %v191_v58, %v184_v54 }
  0x38   :  { %1110 = vmatpush3.bf16.msra.mxu1 %v1449_v25  ;;  %1206 = vmatpush3.bf16.msra.mxu0 %v1449_v25  ;;  %v226_v26 = vand.u32 4294901760, %v1564_v8  ;;  %v1583_v30 = vsub.f32 %v1453_v28, %v97_v31  ;;  %v213_v32 = vsub.f32 %v1549_v0, %v212_v12  ;;  %v220_v33 = vsub.f32 %v1554_v1, %v219_v14 }
  0x39   :  { %1112 = vmatprep.subr.bf16.mxu1 %v1470_v34  ;;  %1208 = vmatprep.subr.bf16.mxu0 %v1470_v34  ;;  %v1592_v22 = vsub.f32 %v1455_v29, %v100_v35  ;;  %v1131_v27 = vpack.c.bf16 %v193_v16, %v186_v9  ;;  %v200_v47 = vand.u32 4294901760, %v199_v11  ;;  %v207_v48 = vand.u32 4294901760, %v206_v19 }
  0x3a   :  { %v233_v28 = vand.u32 4294901760, %v1577_v20  ;;  %v1231_v31 = vpack.c.bf16 %v205_v5, %v198_v63  ;;  %v227_v54 = vsub.f32 %v1564_v8, %v226_v26  ;;  %v1599_v56 = vsub.f32 %v1473_v36, %v103_v41 }
  0x3b   :  { %v214_v29 = vand.u32 4294901760, %v213_v32  ;;  %v221_v35 = vand.u32 4294901760, %v220_v33  ;;  %v240_v57 = vand.u32 4294901760, %v1583_v30  ;;  %v247_v58 = vand.u32 4294901760, %v1592_v22 }
  0x3c   :  { %1114 = vmatpush3.bf16.msra.mxu1 %v1470_v34  ;;  %1210 = vmatpush3.bf16.msra.mxu0 %v1470_v34  ;;  %v1135_v62 = vpack.c.bf16 %v207_v48, %v200_v47  ;;  %v1607_v63 = vsub.f32 %v1475_v37, %v106_v42  ;;  %v1235_v36 = vpack.c.bf16 %v219_v14, %v212_v12  ;;  %v228_v41 = vand.u32 4294901760, %v227_v54 }
  0x3d   :  { %1116 = vmatprep.subr.bf16.mxu1 %v1499_v46  ;;  %1212 = vmatprep.subr.bf16.mxu0 %v1499_v46  ;;  %v1139_v2 = vpack.c.bf16 %v221_v35, %v214_v29  ;;  %v241_v3 = vsub.f32 %v1583_v30, %v240_v57  ;;  %v248_v4 = vsub.f32 %v1592_v22, %v247_v58  ;;  %v254_v5 = vand.u32 4294901760, %v1599_v56 }
  0x3e   :  { %v261_v37 = vand.u32 4294901760, %v1607_v63  ;;  %v1618_v42 = vsub.f32 %v1487_v43, %v109_v50  ;;  %v1623_v7 = vsub.f32 %v1489_v44, %v112_v51  ;;  %v1239_v9 = vpack.c.bf16 %v233_v28, %v226_v26 }
  0x3f   :  { %v242_v11 = vand.u32 4294901760, %v241_v3  ;;  %v249_v12 = vand.u32 4294901760, %v248_v4  ;;  %v255_v14 = vsub.f32 %v1599_v56, %v254_v5  ;;  %v1243_v51 = vpack.c.bf16 %v247_v58, %v240_v57 }
  0x40   :  { %1118 = vmatpush3.bf16.msra.mxu1 %v1499_v46  ;;  %1214 = vmatpush3.bf16.msra.mxu0 %v1499_v46  ;;  %v262_v16 = vsub.f32 %v1607_v63, %v261_v37  ;;  %v268_v43 = vand.u32 4294901760, %v1618_v42  ;;  %v275_v50 = vand.u32 4294901760, %v1623_v7  ;;  %v1247_v33 = vpack.c.bf16 %v261_v37, %v254_v5 }
  0x41   :  { %1120 = vmatprep.subr.bf16.mxu1 %v1517_v53  ;;  %1216 = vmatprep.subr.bf16.mxu0 %v1517_v53  ;;  %v1147_v44 = vpack.c.bf16 %v249_v12, %v242_v11  ;;  %v256_v19 = vand.u32 4294901760, %v255_v14  ;;  %v1163_v54 = vpack.c.bf16 %v1504_v49, %v1491_v45 }
  0x42   :  { %v276_v26 = vsub.f32 %v1623_v7, %v275_v50 }
  0x44   :  { %1122 = vmatpush3.bf16.msra.mxu1 %v1517_v53  ;;  %1218 = vmatpush3.bf16.msra.mxu0 %v1517_v53  ;;  %v277_v47 = vand.u32 4294901760, %v276_v26 }
  0x45   :  { %1124 = vmatprep.subr.bf16.mxu1 %v1539_v60  ;;  %1220 = vmatprep.subr.bf16.mxu0 %v1539_v60 }
  0x48   :  { %1126 = vmatpush3.bf16.msra.mxu1 %v1539_v60  ;;  %1222 = vmatpush3.bf16.msra.mxu0 %v1539_v60 }
  0x49   :  { %1128 = vmatprep.subr.bf16.mxu1 %v1127_v15  ;;  %1224 = vmatprep.subr.bf16.mxu0 %v1223_v6 }
  0x4b   :  { %918 = vmatmul.mubr.f32.vlgmr.msra.gmra.mrb[0].mxu1 %v161_v21  ;;  %1023 = vmatmul.mubr.f32.vlgmr.msra.gmra.mrb[0].mxu0 %v159_v61  ;;  %v234_v61 = vsub.f32 %v1577_v20, %v233_v28  ;;  %v263_v21 = vand.u32 4294901760, %v262_v16  ;;  %v1251_v28 = vpack.c.bf16 %v275_v50, %v268_v43 }
  0x4c   :  { %1130 = vmatpush3.bf16.msra.mxu1 %v1127_v15  ;;  %1226 = vmatpush3.bf16.msra.mxu0 %v1223_v6 }
  0x4d   :  { %1132 = vmatprep.subr.bf16.mxu1 %v1131_v27  ;;  %1228 = vmatprep.subr.bf16.mxu0 %v1227_v24  ;;  %v235_v6 = vand.u32 4294901760, %v234_v61  ;;  %v1151_v32 = vpack.c.bf16 %v263_v21, %v256_v19 }
  0x4e   :  { %952 = vmatprep.mubr.f32.mxu1 %v1421_v17  ;;  %1057 = vmatprep.mubr.f32.mxu0 %v1421_v17 }
  0x4f   :  { %v1143_v15 = vpack.c.bf16 %v235_v6, %v228_v41 }
  0x50   :  { %1134 = vmatpush3.bf16.msra.mxu1 %v1131_v27  ;;  %1230 = vmatpush3.bf16.msra.mxu0 %v1227_v24  ;;  %v269_v24 = vsub.f32 %v1618_v42, %v268_v43 }
  0x51   :  { %1136 = vmatprep.subr.bf16.mxu1 %v1135_v62  ;;  %1232 = vmatprep.subr.bf16.mxu0 %v1231_v31 }
  0x52   :  { %v270_v27 = vand.u32 4294901760, %v269_v24 }
  0x54   :  { %1138 = vmatpush3.bf16.msra.mxu1 %v1135_v62  ;;  %1234 = vmatpush3.bf16.msra.mxu0 %v1231_v31  ;;  %v1155_v48 = vpack.c.bf16 %v277_v47, %v270_v27  ;;  %v1159_v31 = vpack.c.bf16 %v1479_v39, %v1477_v38  ;;  %v1167_v38 = vpack.c.bf16 %v1533_v59, %v1523_v55 }
  0x55   :  { %1140 = vmatprep.subr.bf16.mxu1 %v1139_v2  ;;  %1236 = vmatprep.subr.bf16.mxu0 %v1235_v36  ;;  %v1171_v39 = vpack.c.bf16 %v1554_v1, %v1549_v0 }
  0x58   :  { %1142 = vmatpush3.bf16.msra.mxu1 %v1139_v2  ;;  %1238 = vmatpush3.bf16.msra.mxu0 %v1235_v36 }
  0x59   :  { %1144 = vmatprep.subr.bf16.mxu1 %v1143_v15  ;;  %1240 = vmatprep.subr.bf16.mxu0 %v1239_v9 }
  0x5c   :  { %1146 = vmatpush3.bf16.msra.mxu1 %v1143_v15  ;;  %1242 = vmatpush3.bf16.msra.mxu0 %v1239_v9 }
  0x5d   :  { %1148 = vmatprep.subr.bf16.mxu1 %v1147_v44  ;;  %1244 = vmatprep.subr.bf16.mxu0 %v1243_v51 }
  0x60   :  { %1150 = vmatpush3.bf16.msra.mxu1 %v1147_v44  ;;  %1246 = vmatpush3.bf16.msra.mxu0 %v1243_v51 }
  0x61   :  { %1152 = vmatprep.subr.bf16.mxu1 %v1151_v32  ;;  %1248 = vmatprep.subr.bf16.mxu0 %v1247_v33 }
  0x64   :  { %1154 = vmatpush3.bf16.msra.mxu1 %v1151_v32  ;;  %1250 = vmatpush3.bf16.msra.mxu0 %v1247_v33 }
  0x65   :  { %1156 = vmatprep.subr.bf16.mxu1 %v1155_v48  ;;  %1252 = vmatprep.subr.bf16.mxu0 %v1251_v28 }
  0x68   :  { %1158 = vmatpush3.bf16.msra.mxu1 %v1155_v48  ;;  %1254 = vmatpush3.bf16.msra.mxu0 %v1251_v28 }
  0x69   :  { %1160 = vmatprep.subr.bf16.mxu1 %v1159_v31  ;;  %1256 = vmatprep.subr.bf16.mxu0 %v1404_v10 }
  0x6b   :  { %953 = vmatmul.mubr.f32.vlgmr.msra.gmra.mrb[0].mxu1 %v1481_v40  ;;  %1058 = vmatmul.mubr.f32.vlgmr.msra.gmra.mrb[0].mxu0 %v1481_v40 }
  0x6c   :  { %1162 = vmatpush3.bf16.msra.mxu1 %v1159_v31  ;;  %1258 = vmatpush3.bf16.msra.mxu0 %v1404_v10  ;;  %v1175_v10 = vpack.c.bf16 %v1577_v20, %v1564_v8 }
  0x6d   :  { %1164 = vmatprep.subr.bf16.mxu1 %v1163_v54  ;;  %1260 = vmatprep.subr.bf16.mxu0 %v1408_v13 }
  0x6e   :  { %987 = vmatprep.mubr.f32.mxu1 %v1438_v23  ;;  %1092 = vmatprep.mubr.f32.mxu0 %v1421_v17  ;;  %v1183_v17 = vpack.c.bf16 %v1607_v63, %v1599_v56 }
  0x70   :  { %1166 = vmatpush3.bf16.msra.mxu1 %v1163_v54  ;;  %1262 = vmatpush3.bf16.msra.mxu0 %v1408_v13  ;;  %v1179_v13 = vpack.c.bf16 %v1592_v22, %v1583_v30 }
  0x71   :  { %1168 = vmatprep.subr.bf16.mxu1 %v1167_v38  ;;  %1264 = vmatprep.subr.bf16.mxu0 %v1429_v18 }
  0x74   :  { %1170 = vmatpush3.bf16.msra.mxu1 %v1167_v38  ;;  %1266 = vmatpush3.bf16.msra.mxu0 %v1429_v18  ;;  %v1187_v18 = vpack.c.bf16 %v1623_v7, %v1618_v42 }
  0x75   :  { %1172 = vmatprep.subr.bf16.mxu1 %v1171_v39  ;;  %1268 = vmatprep.subr.bf16.mxu0 %v1449_v25 }
  0x78   :  { %1174 = vmatpush3.bf16.msra.mxu1 %v1171_v39  ;;  %1270 = vmatpush3.bf16.msra.mxu0 %v1449_v25 }
  0x79   :  { %1176 = vmatprep.subr.bf16.mxu1 %v1175_v10  ;;  %1272 = vmatprep.subr.bf16.mxu0 %v1470_v34 }
  0x7c   :  { %1178 = vmatpush3.bf16.msra.mxu1 %v1175_v10  ;;  %1274 = vmatpush3.bf16.msra.mxu0 %v1470_v34  ;;  %v776_v34 = vld [vmem:[#allocation5] ss:$0 sm:$0xff] }
  0x7d   :  { %1180 = vmatprep.subr.bf16.mxu1 %v1179_v13  ;;  %1276 = vmatprep.subr.bf16.mxu0 %v1499_v46 }
  0x80   :  { %1182 = vmatpush3.bf16.msra.mxu1 %v1179_v13  ;;  %1278 = vmatpush3.bf16.msra.mxu0 %v1499_v46 }
  0x81   :  { %1184 = vmatprep.subr.bf16.mxu1 %v1183_v17  ;;  %1280 = vmatprep.subr.bf16.mxu0 %v1517_v53 }
  0x84   :  { %1186 = vmatpush3.bf16.msra.mxu1 %v1183_v17  ;;  %1282 = vmatpush3.bf16.msra.mxu0 %v1517_v53 }
  0x85   :  { %1188 = vmatprep.subr.bf16.mxu1 %v1187_v18  ;;  %1284 = vmatprep.subr.bf16.mxu0 %v1539_v60 }
  0x88   :  { %1190 = vmatpush3.bf16.msra.mxu1 %v1187_v18  ;;  %1286 = vmatpush3.bf16.msra.mxu0 %v1539_v60 }
  0x8b   :  { %988 = vmatmul.mubr.f32.vlgmr.msra.gmra.mrb[0].mxu1 %v1509_v52  ;;  %1093 = vmatmul.mubr.f32.vlgmr.msra.gmra.mrb[0].mxu0 %v1481_v40 }
 0x15e   :  { %v989_v23 = vpop.f32.mrb[0].mxu1  ;;  %v1094_v25 = vpop.f32.mrb[0].mxu0 }
 0x15f   :  { %v1287_v45 = vadd.f32 %v1094_v25, %v989_v23  ;;  %v424_v46 = vpop.f32.mrb[1].mxu1  ;;  %v740_v49 = vpop.f32.mrb[1].mxu0 }
 0x160   :  { %v1288_v55 = vadd.f32 %v740_v49, %v424_v46 }
 0x161   :  { %v767_v59 = vadd.f32 %v1287_v45, %v776_v34 }
 0x162   :  { %v766_v0 = vadd.f32 %v1288_v55, %v776_v34 }
 0x163   :  { %769 = vst [vmem:[%s1678_s3 + $0x8] sm:$0xff] %v767_v59 }
 0x164   :  { %768 = vst [vmem:[%s1678_s3] sm:$0xff] %v766_v0 }
 0x165   :  { %774 = vsyncpa [#allocation4], 1 }
 0x166   :  { %775 = vsyncpa [#allocation6], 1 }

// kernel: encoder_layer_forward.12
= control target key start
LH: loop header
LB: loop body
LE: loop exit
PB: predicated region body
PF: predicated region fallthrough
CT: control target
= control target key end

     0   :  { %v23_v0 = vlaneseq  ;;  %s131_s0 = inlined_call_operand.vmem [shape: f32[16,128], index: 0, kind: input, shape index: {}]   ;;  %s132_s1 = inlined_call_operand.vmem [shape: f32[16,128], index: 1, kind: input, shape index: {}]   ;;  %s133_s2 = inlined_call_operand.vmem [shape: f32[1,128], index: 2, kind: input, shape index: {}]   ;;  %s134_s3 = inlined_call_operand.vmem [shape: f32[1,128], index: 3, kind: input, shape index: {}]   ;;  %s135_s4 = inlined_call_operand.vmem [shape: f32[16,128], index: 4, kind: output, shape index: {}]  }
   0x1   :  { %v17_v1 = vld [vmem:[%s131_s0] sm:$0xff]  ;;  %v18_v3 = vld [vmem:[%s131_s0 + $0x8] sm:$0xff] }
   0x2   :  { %v19_v2 = vld [vmem:[%s132_s1] sm:$0xff]  ;;  %v24_v5 = vand.u32 127, %v23_v0  ;;  %v20_v6 = vld [vmem:[%s132_s1 + $0x8] sm:$0xff] }
   0x3   :  { %v21_v4 = vadd.f32 %v19_v2, %v17_v1  ;;  %v22_v7 = vadd.f32 %v20_v6, %v18_v3  ;;  %v76_v27 = vld [vmem:[%s133_s2] ss:$0 sm:$0xff] }
   0x4   :  { %vm25_vm0 = vcmp.lt.s32.totalorder %v24_v5, 32  ;;  %v77_v29 = vld [vmem:[%s134_s3] ss:$0 sm:$0xff] }
   0x5   :  { %v26_v8 = vsel %vm25_vm0, %v21_v4, 0.0  ;;  %v27_v9 = vsel %vm25_vm0, %v22_v7, 0.0 }
   0x6   :  { %28 = vadd.xlane.f32.xlu0 %v26_v8 }
   0xa   :  { %30 = vadd.xlane.f32.xlu0 %v27_v9 }
  0x93   :  { %v29_v10 = vpop.xlane.xlu0 %28 }
  0x94   :  { %v32_v11 = vmul.f32 0.03125, %v29_v10 }
  0x96   :  { %v34_v12 = vsub.f32 %v21_v4, %v32_v11 }
  0x97   :  { %v31_v13 = vpop.xlane.xlu0 %30 }
  0x98   :  { %v33_v14 = vmul.f32 0.03125, %v31_v13  ;;  %v36_v15 = vsel %vm25_vm0, %v34_v12, 0.0 }
  0x99   :  { %v38_v16 = vmul.f32 %v36_v15, %v36_v15 }
  0x9a   :  { %v35_v17 = vsub.f32 %v22_v7, %v33_v14 }
  0x9b   :  { %40 = vadd.xlane.f32.xlu1 %v38_v16 }
  0x9c   :  { %v37_v18 = vsel %vm25_vm0, %v35_v17, 0.0 }
  0x9d   :  { %v39_v19 = vmul.f32 %v37_v18, %v37_v18 }
  0x9f   :  { %42 = vadd.xlane.f32.xlu1 %v39_v19 }
 0x128   :  { %v41_v20 = vpop.xlane.xlu1 %40 }
 0x129   :  { %v44_v21 = vmul.f32 0.03125, %v41_v20 }
 0x12b   :  { %v46_v22 = vadd.f32 1e-05, %v44_v21 }
 0x12c   :  { %v43_v23 = vpop.xlane.xlu1 %42 }
 0x12d   :  { %78 = vrsqrt.f32 %v46_v22  ;;  %v45_v24 = vmul.f32 0.03125, %v43_v23 }
 0x12f   :  { %v47_v25 = vadd.f32 1e-05, %v45_v24 }
 0x131   :  { %80 = vrsqrt.f32 %v47_v25 }
 0x137   :  { %v79_v26 = vpop.eup %78 }
 0x138   :  { %v50_v28 = vmul.f32 %v79_v26, %v36_v15 }
 0x13a   :  { %v59_v30 = vmul.f32 %v76_v27, %v50_v28 }
 0x13b   :  { %v81_v31 = vpop.eup %80 }
 0x13c   :  { %v68_v32 = vadd.f32 %v77_v29, %v59_v30  ;;  %v51_v33 = vmul.f32 %v81_v31, %v37_v18 }
 0x13e   :  { %70 = vst [vmem:[%s135_s4] sm:$0xff] %v68_v32  ;;  %v60_v34 = vmul.f32 %v76_v27, %v51_v33 }
 0x140   :  { %v69_v35 = vadd.f32 %v77_v29, %v60_v34 }
 0x142   :  { %71 = vst [vmem:[%s135_s4 + $0x8] sm:$0xff] %v69_v35 }

// kernel: encoder_layer_forward.13
= control target key start
LH: loop header
LB: loop body
LE: loop exit
PB: predicated region body
PF: predicated region fallthrough
CT: control target
= control target key end

     0   :  { %s1620_s1 = inlined_call_operand.vmem [shape: f32[128,128], index: 1, kind: input, shape index: {}]   ;;  %s1621_s0 = inlined_call_operand.vmem [shape: f32[16,128], index: 0, kind: input, shape index: {}]   ;;  %s1622_s2 = inlined_call_operand.vmem [shape: f32[1,128], index: 2, kind: input, shape index: {}]   ;;  %s1623_s3 = inlined_call_operand.vmem [shape: f32[16,128], index: 3, kind: output, shape index: {}]  }
   0x1   :  { %v24_v0 = vld [vmem:[%s1620_s1] sm:$0xff]  ;;  %v25_v1 = vld [vmem:[%s1620_s1 + $0x8] sm:$0xff]  ;;  %v26_v2 = vld [vmem:[%s1620_s1 + $0x10] sm:$0xff] }
   0x2   :  { %v41_v3 = vand.u32 4294901760, %v24_v0  ;;  %v44_v4 = vand.u32 4294901760, %v25_v1  ;;  %v1303_v5 = vld [vmem:[%s1620_s1 + $0x18] sm:$0xff]  ;;  %v47_v6 = vand.u32 4294901760, %v26_v2  ;;  %v1308_v7 = vld [vmem:[%s1620_s1 + $0x20] sm:$0xff]  ;;  %v1313_v8 = vld [vmem:[%s1620_s1 + $0x28] sm:$0xff] }
   0x3   :  { %v50_v9 = vand.u32 4294901760, %v1303_v5  ;;  %v53_v11 = vand.u32 4294901760, %v1308_v7  ;;  %v56_v12 = vand.u32 4294901760, %v1313_v8  ;;  %v1325_v14 = vld [vmem:[%s1620_s1 + $0x30] sm:$0xff]  ;;  %v1330_v15 = vld [vmem:[%s1620_s1 + $0x38] sm:$0xff]  ;;  %v22_v16 = vld [vmem:[%s1621_s0] sm:$0xff] }
   0x4   :  { %v1316_v10 = vpack.c.bf16 %v44_v4, %v41_v3  ;;  %v1339_v17 = vand.u32 4294901760, %v22_v16  ;;  %v59_v19 = vand.u32 4294901760, %v1325_v14  ;;  %v62_v20 = vand.u32 4294901760, %v1330_v15  ;;  %v1354_v21 = vld [vmem:[%s1620_s1 + $0x40] sm:$0xff]  ;;  %v1359_v22 = vld [vmem:[%s1620_s1 + $0x48] sm:$0xff]  ;;  %v1380_v28 = vld [vmem:[%s1620_s1 + $0x50] sm:$0xff] }
   0x5   :  { %v1320_v13 = vpack.c.bf16 %v50_v9, %v47_v6  ;;  %v1347_v18 = vpack.c.bf16 %v56_v12, %v53_v11  ;;  %v65_v26 = vand.u32 4294901760, %v1354_v21  ;;  %v68_v27 = vand.u32 4294901760, %v1359_v22  ;;  %v1385_v29 = vld [vmem:[%s1620_s1 + $0x58] sm:$0xff]  ;;  %v23_v32 = vld [vmem:[%s1621_s0 + $0x8] sm:$0xff]  ;;  %v1406_v36 = vld [vmem:[%s1620_s1 + $0x60] sm:$0xff] }
   0x6   :  { %1070 = vmatprep.subr.bf16.mxu1 %v1316_v10  ;;  %1166 = vmatprep.subr.bf16.mxu0 %v1316_v10  ;;  %v1362_v23 = vsub.f32 %v22_v16, %v1339_v17  ;;  %v1373_v25 = vpack.c.bf16 %v62_v20, %v59_v19  ;;  %v71_v31 = vand.u32 4294901760, %v1380_v28  ;;  %v74_v35 = vand.u32 4294901760, %v1385_v29  ;;  %v1411_v37 = vld [vmem:[%s1620_s1 + $0x68] sm:$0xff]  ;;  %v1426_v43 = vld [vmem:[%s1620_s1 + $0x70] sm:$0xff]  ;;  %v1431_v44 = vld [vmem:[%s1620_s1 + $0x78] sm:$0xff] }
   0x7   :  { %1072 = vmatpush3.bf16.msra.mxu1 %v1316_v10  ;;  %1168 = vmatpush3.bf16.msra.mxu0 %v1316_v10  ;;  %v1400_v34 = vpack.c.bf16 %v68_v27, %v65_v26  ;;  %v1413_v38 = vsub.f32 %v24_v0, %v41_v3  ;;  %v1415_v39 = vsub.f32 %v25_v1, %v44_v4  ;;  %v1417_v40 = vand.u32 4294901760, %v23_v32 }
   0x8   :  { %1074 = vmatprep.subr.bf16.mxu1 %v1320_v13  ;;  %1170 = vmatprep.subr.bf16.mxu0 %v1320_v13  ;;  %v123_v24 = vand.u32 4294901760, %v1362_v23  ;;  %v77_v41 = vand.u32 4294901760, %v1406_v36  ;;  %v80_v42 = vand.u32 4294901760, %v1411_v37  ;;  %v1433_v45 = vsub.f32 %v26_v2, %v47_v6 }
   0x9   :  { %v1441_v46 = vpack.c.bf16 %v74_v35, %v71_v31  ;;  %v144_v47 = vand.u32 4294901760, %v1413_v38  ;;  %v151_v48 = vand.u32 4294901760, %v1415_v39  ;;  %v1446_v49 = vsub.f32 %v1303_v5, %v50_v9 }
   0xa   :  { %v124_v30 = vsub.f32 %v1362_v23, %v123_v24  ;;  %996 = vmatprep.mubr.f32.mxu0 %v123_v24  ;;  %v83_v50 = vand.u32 4294901760, %v1426_v43  ;;  %v86_v51 = vand.u32 4294901760, %v1431_v44  ;;  %v1451_v52 = vsub.f32 %v23_v32, %v1417_v40 }
   0xb   :  { %1076 = vmatpush3.bf16.msra.mxu1 %v1320_v13  ;;  %1172 = vmatpush3.bf16.msra.mxu0 %v1320_v13  ;;  %v1459_v53 = vpack.c.bf16 %v80_v42, %v77_v41  ;;  %v158_v54 = vand.u32 4294901760, %v1433_v45  ;;  %v1465_v55 = vsub.f32 %v1308_v7, %v53_v11  ;;  %v145_v56 = vsub.f32 %v1413_v38, %v144_v47 }
   0xc   :  { %1078 = vmatprep.subr.bf16.mxu1 %v1347_v18  ;;  %1174 = vmatprep.subr.bf16.mxu0 %v1347_v18  ;;  %v125_v33 = vand.u32 4294901760, %v124_v30  ;;  %v152_v57 = vsub.f32 %v1415_v39, %v151_v48  ;;  %v165_v58 = vand.u32 4294901760, %v1446_v49  ;;  %v1475_v59 = vsub.f32 %v1313_v8, %v56_v12 }
   0xd   :  { %v1481_v60 = vpack.c.bf16 %v86_v51, %v83_v50  ;;  %v133_v61 = vand.u32 4294901760, %v1451_v52  ;;  %v159_v62 = vsub.f32 %v1433_v45, %v158_v54  ;;  %v172_v63 = vand.u32 4294901760, %v1465_v55 }
   0xe   :  { %891 = vmatprep.mubr.f32.mxu1 %v125_v33  ;;  %v1491_v0 = vsub.f32 %v1325_v14, %v59_v19  ;;  %v1496_v1 = vsub.f32 %v1330_v15, %v62_v20  ;;  %v146_v2 = vand.u32 4294901760, %v145_v56  ;;  %v153_v3 = vand.u32 4294901760, %v152_v57 }
   0xf   :  { %1080 = vmatpush3.bf16.msra.mxu1 %v1347_v18  ;;  %1176 = vmatpush3.bf16.msra.mxu0 %v1347_v18  ;;  %v166_v4 = vsub.f32 %v1446_v49, %v165_v58  ;;  %v179_v5 = vand.u32 4294901760, %v1475_v59  ;;  %v1197_v6 = vpack.c.bf16 %v151_v48, %v144_v47  ;;  %v134_v7 = vsub.f32 %v1451_v52, %v133_v61 }
  0x10   :  { %1082 = vmatprep.subr.bf16.mxu1 %v1373_v25  ;;  %1178 = vmatprep.subr.bf16.mxu0 %v1373_v25  ;;  %v1506_v8 = vsub.f32 %v1354_v21, %v65_v26  ;;  %v160_v9 = vand.u32 4294901760, %v159_v62  ;;  %v173_v11 = vsub.f32 %v1465_v55, %v172_v63  ;;  %v186_v12 = vand.u32 4294901760, %v1491_v0 }
  0x11   :  { %v193_v14 = vand.u32 4294901760, %v1496_v1  ;;  %v1101_v15 = vpack.c.bf16 %v153_v3, %v146_v2  ;;  %v167_v16 = vand.u32 4294901760, %v166_v4  ;;  %v180_v19 = vsub.f32 %v1475_v59, %v179_v5 }
  0x12   :  { %v1519_v20 = vsub.f32 %v1359_v22, %v68_v27  ;;  %v135_v21 = vand.u32 4294901760, %v134_v7  ;;  %v1201_v24 = vpack.c.bf16 %v165_v58, %v158_v54  ;;  %v200_v26 = vand.u32 4294901760, %v1506_v8 }
  0x13   :  { %1084 = vmatpush3.bf16.msra.mxu1 %v1373_v25  ;;  %1180 = vmatpush3.bf16.msra.mxu0 %v1373_v25  ;;  %v1525_v30 = vsub.f32 %v1380_v28, %v71_v31  ;;  %v187_v32 = vsub.f32 %v1491_v0, %v186_v12  ;;  %v194_v33 = vsub.f32 %v1496_v1, %v193_v14  ;;  %v174_v47 = vand.u32 4294901760, %v173_v11 }
  0x14   :  { %1086 = vmatprep.subr.bf16.mxu1 %v1400_v34  ;;  %1182 = vmatprep.subr.bf16.mxu0 %v1400_v34  ;;  %v1534_v22 = vsub.f32 %v1385_v29, %v74_v35  ;;  %v1105_v27 = vpack.c.bf16 %v167_v16, %v160_v9  ;;  %v181_v48 = vand.u32 4294901760, %v180_v19  ;;  %v207_v28 = vand.u32 4294901760, %v1519_v20 }
  0x15   :  { %v1205_v31 = vpack.c.bf16 %v179_v5, %v172_v63  ;;  %v201_v54 = vsub.f32 %v1506_v8, %v200_v26  ;;  %v1541_v56 = vsub.f32 %v1406_v36, %v77_v41  ;;  %v188_v29 = vand.u32 4294901760, %v187_v32 }
  0x16   :  { %v195_v35 = vand.u32 4294901760, %v194_v33  ;;  %v214_v57 = vand.u32 4294901760, %v1525_v30  ;;  %v221_v58 = vand.u32 4294901760, %v1534_v22  ;;  %v1109_v62 = vpack.c.bf16 %v181_v48, %v174_v47 }
  0x17   :  { %1088 = vmatpush3.bf16.msra.mxu1 %v1400_v34  ;;  %1184 = vmatpush3.bf16.msra.mxu0 %v1400_v34  ;;  %v1549_v63 = vsub.f32 %v1411_v37, %v80_v42  ;;  %v1209_v36 = vpack.c.bf16 %v193_v14, %v186_v12  ;;  %v202_v41 = vand.u32 4294901760, %v201_v54  ;;  %v228_v5 = vand.u32 4294901760, %v1541_v56 }
  0x18   :  { %1090 = vmatprep.subr.bf16.mxu1 %v1441_v46  ;;  %1186 = vmatprep.subr.bf16.mxu0 %v1441_v46  ;;  %v1113_v2 = vpack.c.bf16 %v195_v35, %v188_v29  ;;  %v215_v3 = vsub.f32 %v1525_v30, %v214_v57  ;;  %v222_v4 = vsub.f32 %v1534_v22, %v221_v58 }
  0x19   :  { %v235_v37 = vand.u32 4294901760, %v1549_v63  ;;  %v1560_v42 = vsub.f32 %v1426_v43, %v83_v50  ;;  %v1565_v7 = vsub.f32 %v1431_v44, %v86_v51  ;;  %v1213_v9 = vpack.c.bf16 %v207_v28, %v200_v26 }
  0x1a   :  { %v216_v11 = vand.u32 4294901760, %v215_v3  ;;  %v223_v12 = vand.u32 4294901760, %v222_v4  ;;  %v229_v14 = vsub.f32 %v1541_v56, %v228_v5  ;;  %v1217_v51 = vpack.c.bf16 %v221_v58, %v214_v57 }
  0x1b   :  { %1092 = vmatpush3.bf16.msra.mxu1 %v1441_v46  ;;  %1188 = vmatpush3.bf16.msra.mxu0 %v1441_v46  ;;  %v236_v16 = vsub.f32 %v1549_v63, %v235_v37  ;;  %v242_v43 = vand.u32 4294901760, %v1560_v42  ;;  %v249_v50 = vand.u32 4294901760, %v1565_v7  ;;  %v1221_v33 = vpack.c.bf16 %v235_v37, %v228_v5 }
  0x1c   :  { %1094 = vmatprep.subr.bf16.mxu1 %v1459_v53  ;;  %1190 = vmatprep.subr.bf16.mxu0 %v1459_v53  ;;  %v1121_v44 = vpack.c.bf16 %v223_v12, %v216_v11  ;;  %v230_v19 = vand.u32 4294901760, %v229_v14  ;;  %v1137_v54 = vpack.c.bf16 %v1446_v49, %v1433_v45 }
  0x1d   :  { %v250_v26 = vsub.f32 %v1565_v7, %v249_v50 }
  0x1f   :  { %1096 = vmatpush3.bf16.msra.mxu1 %v1459_v53  ;;  %1192 = vmatpush3.bf16.msra.mxu0 %v1459_v53  ;;  %v251_v47 = vand.u32 4294901760, %v250_v26 }
  0x20   :  { %1098 = vmatprep.subr.bf16.mxu1 %v1481_v60  ;;  %1194 = vmatprep.subr.bf16.mxu0 %v1481_v60 }
  0x23   :  { %1100 = vmatpush3.bf16.msra.mxu1 %v1481_v60  ;;  %1196 = vmatpush3.bf16.msra.mxu0 %v1481_v60 }
  0x24   :  { %1102 = vmatprep.subr.bf16.mxu1 %v1101_v15  ;;  %1198 = vmatprep.subr.bf16.mxu0 %v1197_v6 }
  0x26   :  { %892 = vmatmul.mubr.f32.vlgmr.msra.gmra.mrb[0].mxu1 %v135_v21  ;;  %997 = vmatmul.mubr.f32.vlgmr.msra.gmra.mrb[0].mxu0 %v133_v61  ;;  %v208_v61 = vsub.f32 %v1519_v20, %v207_v28  ;;  %v237_v21 = vand.u32 4294901760, %v236_v16  ;;  %v1225_v28 = vpack.c.bf16 %v249_v50, %v242_v43 }
  0x27   :  { %1104 = vmatpush3.bf16.msra.mxu1 %v1101_v15  ;;  %1200 = vmatpush3.bf16.msra.mxu0 %v1197_v6 }
  0x28   :  { %1106 = vmatprep.subr.bf16.mxu1 %v1105_v27  ;;  %1202 = vmatprep.subr.bf16.mxu0 %v1201_v24  ;;  %v209_v6 = vand.u32 4294901760, %v208_v61  ;;  %v1125_v32 = vpack.c.bf16 %v237_v21, %v230_v19 }
  0x29   :  { %926 = vmatprep.mubr.f32.mxu1 %v1339_v17  ;;  %1031 = vmatprep.mubr.f32.mxu0 %v1339_v17 }
  0x2a   :  { %v1117_v15 = vpack.c.bf16 %v209_v6, %v202_v41 }
  0x2b   :  { %1108 = vmatpush3.bf16.msra.mxu1 %v1105_v27  ;;  %1204 = vmatpush3.bf16.msra.mxu0 %v1201_v24  ;;  %v243_v24 = vsub.f32 %v1560_v42, %v242_v43 }
  0x2c   :  { %1110 = vmatprep.subr.bf16.mxu1 %v1109_v62  ;;  %1206 = vmatprep.subr.bf16.mxu0 %v1205_v31 }
  0x2d   :  { %v244_v27 = vand.u32 4294901760, %v243_v24 }
  0x2f   :  { %1112 = vmatpush3.bf16.msra.mxu1 %v1109_v62  ;;  %1208 = vmatpush3.bf16.msra.mxu0 %v1205_v31  ;;  %v1129_v48 = vpack.c.bf16 %v251_v47, %v244_v27  ;;  %v1133_v31 = vpack.c.bf16 %v1415_v39, %v1413_v38  ;;  %v1141_v38 = vpack.c.bf16 %v1475_v59, %v1465_v55 }
  0x30   :  { %1114 = vmatprep.subr.bf16.mxu1 %v1113_v2  ;;  %1210 = vmatprep.subr.bf16.mxu0 %v1209_v36  ;;  %v1145_v39 = vpack.c.bf16 %v1496_v1, %v1491_v0 }
  0x33   :  { %1116 = vmatpush3.bf16.msra.mxu1 %v1113_v2  ;;  %1212 = vmatpush3.bf16.msra.mxu0 %v1209_v36 }
  0x34   :  { %1118 = vmatprep.subr.bf16.mxu1 %v1117_v15  ;;  %1214 = vmatprep.subr.bf16.mxu0 %v1213_v9 }
  0x37   :  { %1120 = vmatpush3.bf16.msra.mxu1 %v1117_v15  ;;  %1216 = vmatpush3.bf16.msra.mxu0 %v1213_v9 }
  0x38   :  { %1122 = vmatprep.subr.bf16.mxu1 %v1121_v44  ;;  %1218 = vmatprep.subr.bf16.mxu0 %v1217_v51 }
  0x3b   :  { %1124 = vmatpush3.bf16.msra.mxu1 %v1121_v44  ;;  %1220 = vmatpush3.bf16.msra.mxu0 %v1217_v51 }
  0x3c   :  { %1126 = vmatprep.subr.bf16.mxu1 %v1125_v32  ;;  %1222 = vmatprep.subr.bf16.mxu0 %v1221_v33 }
  0x3f   :  { %1128 = vmatpush3.bf16.msra.mxu1 %v1125_v32  ;;  %1224 = vmatpush3.bf16.msra.mxu0 %v1221_v33 }
  0x40   :  { %1130 = vmatprep.subr.bf16.mxu1 %v1129_v48  ;;  %1226 = vmatprep.subr.bf16.mxu0 %v1225_v28 }
  0x43   :  { %1132 = vmatpush3.bf16.msra.mxu1 %v1129_v48  ;;  %1228 = vmatpush3.bf16.msra.mxu0 %v1225_v28 }
  0x44   :  { %1134 = vmatprep.subr.bf16.mxu1 %v1133_v31  ;;  %1230 = vmatprep.subr.bf16.mxu0 %v1316_v10 }
  0x46   :  { %927 = vmatmul.mubr.f32.vlgmr.msra.gmra.mrb[0].mxu1 %v1417_v40  ;;  %1032 = vmatmul.mubr.f32.vlgmr.msra.gmra.mrb[0].mxu0 %v1417_v40 }
  0x47   :  { %1136 = vmatpush3.bf16.msra.mxu1 %v1133_v31  ;;  %1232 = vmatpush3.bf16.msra.mxu0 %v1316_v10  ;;  %v1149_v10 = vpack.c.bf16 %v1519_v20, %v1506_v8 }
  0x48   :  { %1138 = vmatprep.subr.bf16.mxu1 %v1137_v54  ;;  %1234 = vmatprep.subr.bf16.mxu0 %v1320_v13 }
  0x49   :  { %961 = vmatprep.mubr.f32.mxu1 %v1362_v23  ;;  %1066 = vmatprep.mubr.f32.mxu0 %v1339_v17  ;;  %v1157_v17 = vpack.c.bf16 %v1549_v63, %v1541_v56 }
  0x4b   :  { %1140 = vmatpush3.bf16.msra.mxu1 %v1137_v54  ;;  %1236 = vmatpush3.bf16.msra.mxu0 %v1320_v13  ;;  %v1153_v13 = vpack.c.bf16 %v1534_v22, %v1525_v30 }
  0x4c   :  { %1142 = vmatprep.subr.bf16.mxu1 %v1141_v38  ;;  %1238 = vmatprep.subr.bf16.mxu0 %v1347_v18 }
  0x4f   :  { %1144 = vmatpush3.bf16.msra.mxu1 %v1141_v38  ;;  %1240 = vmatpush3.bf16.msra.mxu0 %v1347_v18  ;;  %v1161_v18 = vpack.c.bf16 %v1565_v7, %v1560_v42 }
  0x50   :  { %1146 = vmatprep.subr.bf16.mxu1 %v1145_v39  ;;  %1242 = vmatprep.subr.bf16.mxu0 %v1373_v25 }
  0x53   :  { %1148 = vmatpush3.bf16.msra.mxu1 %v1145_v39  ;;  %1244 = vmatpush3.bf16.msra.mxu0 %v1373_v25 }
  0x54   :  { %1150 = vmatprep.subr.bf16.mxu1 %v1149_v10  ;;  %1246 = vmatprep.subr.bf16.mxu0 %v1400_v34 }
  0x57   :  { %1152 = vmatpush3.bf16.msra.mxu1 %v1149_v10  ;;  %1248 = vmatpush3.bf16.msra.mxu0 %v1400_v34  ;;  %v750_v34 = vld [vmem:[%s1622_s2] ss:$0 sm:$0xff] }
  0x58   :  { %1154 = vmatprep.subr.bf16.mxu1 %v1153_v13  ;;  %1250 = vmatprep.subr.bf16.mxu0 %v1441_v46 }
  0x5b   :  { %1156 = vmatpush3.bf16.msra.mxu1 %v1153_v13  ;;  %1252 = vmatpush3.bf16.msra.mxu0 %v1441_v46 }
  0x5c   :  { %1158 = vmatprep.subr.bf16.mxu1 %v1157_v17  ;;  %1254 = vmatprep.subr.bf16.mxu0 %v1459_v53 }
  0x5f   :  { %1160 = vmatpush3.bf16.msra.mxu1 %v1157_v17  ;;  %1256 = vmatpush3.bf16.msra.mxu0 %v1459_v53 }
  0x60   :  { %1162 = vmatprep.subr.bf16.mxu1 %v1161_v18  ;;  %1258 = vmatprep.subr.bf16.mxu0 %v1481_v60 }
  0x63   :  { %1164 = vmatpush3.bf16.msra.mxu1 %v1161_v18  ;;  %1260 = vmatpush3.bf16.msra.mxu0 %v1481_v60 }
  0x66   :  { %962 = vmatmul.mubr.f32.vlgmr.msra.gmra.mrb[0].mxu1 %v1451_v52  ;;  %1067 = vmatmul.mubr.f32.vlgmr.msra.gmra.mrb[0].mxu0 %v1417_v40 }
 0x139   :  { %v963_v23 = vpop.f32.mrb[0].mxu1  ;;  %v1068_v25 = vpop.f32.mrb[0].mxu0 }
 0x13a   :  { %v1261_v45 = vadd.f32 %v1068_v25, %v963_v23  ;;  %v398_v46 = vpop.f32.mrb[1].mxu1  ;;  %v714_v49 = vpop.f32.mrb[1].mxu0 }
 0x13b   :  { %v1262_v53 = vadd.f32 %v714_v49, %v398_v46 }
 0x13c   :  { %v741_v55 = vadd.f32 %v1261_v45, %v750_v34 }
 0x13d   :  { %v740_v59 = vadd.f32 %v1262_v53, %v750_v34 }
 0x13e   :  { %v743_v0 = vmax.f32 %v741_v55, 0.0 }
 0x13f   :  { %v742_v1 = vmax.f32 %v740_v59, 0.0 }
 0x140   :  { %745 = vst [vmem:[%s1623_s3 + $0x8] sm:$0xff] %v743_v0 }
 0x141   :  { %744 = vst [vmem:[%s1623_s3] sm:$0xff] %v742_v1 }

// kernel: encoder_layer_forward.10
= control target key start
LH: loop header
LB: loop body
LE: loop exit
PB: predicated region body
PF: predicated region fallthrough
CT: control target
= control target key end

     0   :  { %s4640_s9 = smov 0   ;;  %s4642_s10 = smov 0   ;;  %s4967_s0 = inlined_call_operand.vmem [shape: f32[16,128], index: 0, kind: input, shape index: {}]   ;;  %s4968_s1 = inlined_call_operand.vmem [shape: f32[16,128], index: 1, kind: input, shape index: {}]   ;;  %s4969_s2 = inlined_call_operand.vmem [shape: f32[16,128], index: 2, kind: output, shape index: {}]  }
   0x1   :  { %s4644_s11 = smov 0  }
   0x2 LB: > { %s31_s12 = sadd.s32 1, %s4608_s10  ;;  %p4147_p0 = scmp.ge.s32.totalorder %s4612_s11, 1  ;;  %s4612_s11 = sphi %s4644_s11, %s12_s11   ;;  %s4608_s10 = sphi %s4642_s10, %s4971_s10   ;;  %s4604_s9 = sphi %s4640_s9, %s4970_s9  }
   0x3   : > { %p33_p1 = scmp.ge.s32.totalorder %s31_s12, 2  ;;  %p149_p2 = scmp.lt.s32.totalorder %s4612_s11, 3 }
   0x5   : > { %s4973_s12 = smov (%p33_p1, %s31_s12), 0  ;;  %p150_p3 = pnand %p4147_p0, %p149_p2 }
   0x6   : > { %p177_p4 = scmp.lt.s32.totalorder (!%p150_p3), %s4604_s9, 1  ;;  %vm207_vm0 = vcmask (!%p150_p3), 130048   ;;  %v4614_v0 = vmov (!%p150_p3), 0.0   ;;  %vm4615_vm1 = vmmov (!%p150_p3), 0   ;;  %vm198_vm2 = vcmask (!%p150_p3), 7168   ;;  %s4618_s20 = smov (!%p150_p3), 64  }
   0x7   : > { %153 = sbr.rel (%p150_p3) target bundleno = 1663 (0x67f), region = 28  ;;  %4249 = vmatprep.subr.mxu0 (!%p150_p3), %v4614_v0  ;;  %208 = vst.msk [vmem:[#allocation4] sm:$0xff] (!%p150_p3), %vm207_vm0, %v4614_v0  ;;  %209 = vst.msk [vmem:[#allocation4 + $0x8] sm:$0xff] (!%p150_p3), %vm207_vm0, %v4614_v0  ;;  %4251 = vmatprep.mubr.msk.f32.mxu0 (!%p150_p3), %vm4615_vm1, %v4614_v0  ;;  %v4616_v15 = vmov (!%p150_p3), -inf   ;;  %vm668_vm3 = vcmask (!%p150_p3), 64512   ;;  %v4617_v19 = vmov (!%p150_p3), 0  }
   0x8   : > { %210 = vst.msk [vmem:[#allocation4 + $0x10] sm:$0xff] (!%p150_p3), %vm207_vm0, %v4614_v0  ;;  %211 = vst.msk [vmem:[#allocation4 + $0x18] sm:$0xff] (!%p150_p3), %vm207_vm0, %v4614_v0  ;;  %4279 = vmatprep.subr.mxu1 (!%p150_p3), %v4614_v0  ;;  %4281 = vmatprep.mubr.msk.f32.mxu1 (!%p150_p3), %vm4615_vm1, %v4614_v0  ;;  %s4619_s21 = smov (!%p150_p3), 112   ;;  %s4620_s22 = smov (!%p150_p3), 96   ;;  %vm4056_vm4 = vcmask (!%p150_p3), 261120   ;;  %vm4058_vm5 = vcmask (!%p150_p3), 392192  }
   0x9   : > { %199 = vst.msk [vmem:[#allocation2] sm:$0xff] (!%p150_p3), %vm198_vm2, %v4616_v15  ;;  %200 = vst.msk [vmem:[#allocation2 + $0x8] sm:$0xff] (!%p150_p3), %vm198_vm2, %v4616_v15  ;;  %4564 = vset.pattern.permute.xlu0 (!%p150_p3), %v4617_v19  ;;  %4565 = vset.pattern.permute.xlu1 (!%p150_p3), %v4617_v19  ;;  %s4621_s23 = smov (!%p150_p3), 80   ;;  %s4622_s24 = smov (!%p150_p3), 48   ;;  %vm4060_vm6 = vcmask (!%p150_p3), 523264  }
   0xa   : > { %201 = vst.msk [vmem:[#allocation2 + $0x10] sm:$0xff] (!%p150_p3), %vm198_vm2, %v4616_v15  ;;  %202 = vst.msk [vmem:[#allocation2 + $0x18] sm:$0xff] (!%p150_p3), %vm198_vm2, %v4616_v15  ;;  %s4623_s25 = smov (!%p150_p3), 32   ;;  %s4624_s26 = smov (!%p150_p3), 16  }
   0xb   : > { %203 = vst.msk [vmem:[#allocation3] sm:$0xff] (!%p150_p3), %vm198_vm2, %v4614_v0  ;;  %204 = vst.msk [vmem:[#allocation3 + $0x8] sm:$0xff] (!%p150_p3), %vm198_vm2, %v4614_v0 }
   0xc   : > { %205 = vst.msk [vmem:[#allocation3 + $0x10] sm:$0xff] (!%p150_p3), %vm198_vm2, %v4614_v0  ;;  %206 = vst.msk [vmem:[#allocation3 + $0x18] sm:$0xff] (!%p150_p3), %vm198_vm2, %v4614_v0 }
   0xe   : > { %s4975_s9 = smov (!%p177_p4, %s4604_s9), 1 }
   0xf   : > { %s4672_s13 = sshll.u32 %s4975_s9, 3 }
  0x10   : > { %s186_s16 = scalar_lea.vmem %s4968_s1, %s4672_s13  ;;  %s180_s19 = scalar_lea.vmem %s4967_s0, %s4672_s13  ;;  %v4726_v20 = vld [vmem:[#allocation2] sm:$0xff] }
  0x11   : > { %v4682_v1 = vld [vmem:[%s186_s16] sm:$0xff]  ;;  %s192_s29 = scalar_lea.vmem %s4969_s2, %s4672_s13 }
  0x12   : > { %v4684_v2 = vld [vmem:[%s180_s19] sm:$0xff]  ;;  %v219_v3 = vsel %vm207_vm0, %v4682_v1, 0  ;;  %692 = vrot.lane.b32.xlu1 %v4682_v1, %s4618_s20 }
  0x13   : > { %v216_v4 = vsel %vm207_vm0, %v4684_v2, 0  ;;  %v222_v5 = vand.u32 4294901760, %v219_v3 }
  0x14   : > { %v287_v6 = vand.u32 4294901760, %v216_v4 }
  0x15   : > { %4250 = vmatpush3.xpose.msra.mxu0 %v222_v5  ;;  %v299_v7 = vsub.f32 %v219_v3, %v222_v5 }
  0x16   : > { %v288_v8 = vsub.f32 %v216_v4, %v287_v6  ;;  %4254 = vmatprep.subr.mxu0 %v4614_v0  ;;  %1157 = vrot.lane.b32.xlu1 %v4684_v2, %s4619_s21 }
  0x17   : > { %v300_v10 = vand.u32 4294901760, %v299_v7 }
  0x18   : > { %v289_v9 = vand.u32 4294901760, %v288_v8 }
  0x19   : > { %v301_v12 = vsub.f32 %v299_v7, %v300_v10 }
  0x1a   : > { %v290_v11 = vsub.f32 %v288_v8, %v289_v9  ;;  %1160 = vrot.lane.b32.xlu1 %v4682_v1, %s4619_s21 }
  0x1b   : > { %v302_v14 = vand.u32 4294901760, %v301_v12 }
  0x1c   : > { %v291_v13 = vand.u32 4294901760, %v290_v11 }
  0x1e   : > { %4252 = vmatmul.mubr.f32.vlgmr.msra.gmra.mrb[0].mxu0 %v291_v13  ;;  %2103 = vrot.lane.b32.xlu1 %v4684_v2, %s4620_s22 }
  0x1f   : > { %4255 = vmatpush3.xpose.msra.mxu0 %v302_v14  ;;  %4256 = vmatprep.mubr.msk.f32.mxu0 %vm4615_vm1, %v4614_v0 }
  0x20   : > { %4259 = vmatprep.subr.mxu0 %v4614_v0 }
  0x22   : > { %2106 = vrot.lane.b32.xlu1 %v4682_v1, %s4620_s22 }
  0x26   : > { %4257 = vmatmul.mubr.f32.vlgmr.msra.gmra.mrb[0].mxu0 %v287_v6  ;;  %3049 = vrot.lane.b32.xlu1 %v4684_v2, %s4621_s23 }
  0x27   : > { %4260 = vmatpush3.xpose.msra.mxu0 %v299_v7  ;;  %4261 = vmatprep.mubr.msk.f32.mxu0 %vm4615_vm1, %v4614_v0 }
  0x28   : > { %4264 = vmatprep.subr.mxu0 %v4614_v0 }
  0x2a   : > { %3052 = vrot.lane.b32.xlu1 %v4682_v1, %s4621_s23 }
  0x2e   : > { %4262 = vmatmul.mubr.f32.vlgmr.msra.gmra.mrb[0].mxu0 %v288_v8 }
  0x2f   : > { %4265 = vmatpush3.xpose.msra.mxu0 %v222_v5  ;;  %4266 = vmatprep.mubr.msk.f32.mxu0 %vm4615_vm1, %v4614_v0 }
  0x30   : > { %4269 = vmatprep.subr.mxu0 %v4614_v0 }
  0x36   : > { %4267 = vmatmul.mubr.f32.vlgmr.msra.gmra.mrb[0].mxu0 %v289_v9 }
  0x37   : > { %4270 = vmatpush3.xpose.msra.mxu0 %v300_v10  ;;  %4271 = vmatprep.mubr.msk.f32.mxu0 %vm4615_vm1, %v4614_v0 }
  0x38   : > { %4274 = vmatprep.subr.mxu0 %v4614_v0 }
  0x3e   : > { %4272 = vmatmul.mubr.f32.vlgmr.msra.gmra.mrb[0].mxu0 %v287_v6 }
  0x3f   : > { %4275 = vmatpush3.xpose.msra.mxu0 %v222_v5  ;;  %4276 = vmatprep.mubr.msk.f32.mxu0 %vm4615_vm1, %v4614_v0 }
  0x40   : > { %4339 = vmatprep.subr.mxu0 %v4614_v0 }
  0x46   : > { %4277 = vmatmul.mubr.f32.vlgmr.msra.gmra.mrb[0].mxu0 %v287_v6 }
  0x47   : > { %4341 = vmatprep.mubr.msk.f32.mxu0 %vm4615_vm1, %v4614_v0 }
  0x84   : > { %v693_v24 = vpop.permute.xlu1 %692 }
  0x85   : > { %v699_v25 = vand.u32 4294901760, %v693_v24 }
  0x87   : > { %4280 = vmatpush3.msra.mxu1 %v699_v25  ;;  %v776_v29 = vsub.f32 %v693_v24, %v699_v25 }
  0x88   : > { %4284 = vmatprep.subr.mxu1 %v4614_v0  ;;  %v1158_v38 = vpop.permute.xlu1 %1157 }
  0x89   : > { %v777_v31 = vand.u32 4294901760, %v776_v29  ;;  %v1162_v43 = vsel %vm207_vm0, %v1158_v38, 0 }
  0x8a   : > { %v1232_v45 = vand.u32 4294901760, %v1162_v43 }
  0x8b   : > { %v778_v35 = vsub.f32 %v776_v29, %v777_v31 }
  0x8c   : > { %v1161_v41 = vpop.permute.xlu1 %1160  ;;  %v1233_v47 = vsub.f32 %v1162_v43, %v1232_v45 }
  0x8d   : > { %v779_v39 = vand.u32 4294901760, %v778_v35  ;;  %v1164_v42 = vsel %vm207_vm0, %v1161_v41, 0 }
  0x8e   : > { %v1167_v44 = vand.u32 4294901760, %v1164_v42  ;;  %v1234_v49 = vand.u32 4294901760, %v1233_v47 }
  0x90   : > { %v1244_v46 = vsub.f32 %v1164_v42, %v1167_v44  ;;  %v1235_v51 = vsub.f32 %v1233_v47, %v1234_v49  ;;  %v2104_v54 = vpop.permute.xlu1 %2103 }
  0x91   : > { %v2108_v57 = vsel %vm207_vm0, %v2104_v54, 0  ;;  %v4840_v54 = vld [vmem:[#allocation2 + $0x10] sm:$0xff] }
  0x92   : > { %v1245_v48 = vand.u32 4294901760, %v1244_v46  ;;  %v1236_v53 = vand.u32 4294901760, %v1235_v51  ;;  %v2178_v59 = vand.u32 4294901760, %v2108_v57 }
  0x94   : > { %v1246_v50 = vsub.f32 %v1244_v46, %v1245_v48  ;;  %v2107_v55 = vpop.permute.xlu1 %2106  ;;  %v2179_v61 = vsub.f32 %v2108_v57, %v2178_v59 }
  0x95   : > { %v2110_v56 = vsel %vm207_vm0, %v2107_v55, 0 }
  0x96   : > { %v1247_v52 = vand.u32 4294901760, %v1246_v50  ;;  %v2113_v58 = vand.u32 4294901760, %v2110_v56  ;;  %v2180_v63 = vand.u32 4294901760, %v2179_v61  ;;  %v4828_v50 = vld [vmem:[#allocation2 + $0x8] sm:$0xff] }
  0x98   : > { %v2190_v60 = vsub.f32 %v2110_v56, %v2113_v58  ;;  %v2181_v3 = vsub.f32 %v2179_v61, %v2180_v63  ;;  %v3050_v6 = vpop.permute.xlu1 %3049 }
  0x99   : > { %v3054_v9 = vsel %vm207_vm0, %v3050_v6, 0 }
  0x9a   : > { %v2191_v62 = vand.u32 4294901760, %v2190_v60  ;;  %v2182_v5 = vand.u32 4294901760, %v2181_v3  ;;  %v3124_v11 = vand.u32 4294901760, %v3054_v9 }
  0x9c   : > { %v2192_v2 = vsub.f32 %v2190_v60, %v2191_v62  ;;  %v3053_v7 = vpop.permute.xlu1 %3052  ;;  %v3125_v13 = vsub.f32 %v3054_v9, %v3124_v11 }
  0x9d   : > { %v3056_v8 = vsel %vm207_vm0, %v3053_v7, 0 }
  0x9e   : > { %v2193_v4 = vand.u32 4294901760, %v2192_v2  ;;  %v3059_v10 = vand.u32 4294901760, %v3056_v8  ;;  %v3126_v15 = vand.u32 4294901760, %v3125_v13 }
  0xa0   : > { %v3136_v12 = vsub.f32 %v3056_v8, %v3059_v10 }
  0xa2   : > { %v3137_v14 = vand.u32 4294901760, %v3136_v12 }
 0x119   : > { %v663_v16 = vpop.f32.mrb[0].mxu0 }
 0x11a   : > { %v4278_v17 = vpop.f32.mrb[1].mxu0  ;;  %v669_v18 = vsel %vm668_vm3, %v663_v16, -inf }
 0x11b   : > { %670 = vmax.xlane.f32.xlu0 %v669_v18  ;;  %v3127_v17 = vsub.f32 %v3125_v13, %v3126_v15 }
 0x11d   : > { %v3128_v19 = vand.u32 4294901760, %v3127_v17 }
 0x1a8   : > { %v671_v21 = vpop.xlane.xlu0 %670 }
 0x1a9   : > { %v4729_v22 = vmax.f32 %v4726_v20, %v671_v21 }
 0x1ab   : > { %v673_v23 = vsub.f32 %v4726_v20, %v4729_v22  ;;  %1153 = vst.msk [vmem:[#allocation2] sm:$0xff] %vm198_vm2, %v4729_v22  ;;  %678 = vperm.xlu0 %4564, %v4729_v22  }
 0x22a   : > { %v679_v26 = vpop.permute.xlu0 %678 }
 0x22b   : > { %v681_v27 = vsub.f32 %v663_v16, %v679_v26  ;;  %v3138_v16 = vsub.f32 %v3136_v12, %v3137_v14 }
 0x22d   : > { %v682_v28 = vmul.f32 1.442695, %v681_v27  ;;  %v3139_v18 = vand.u32 4294901760, %v3138_v16 }
 0x22f   : > { %4566 = vpow2.f32 %v682_v28 }
 0x239   : > { %v4739_v30 = vpop.eup %4566 }
 0x23a   : > { %v696_v32 = vsel %vm668_vm3, %v4739_v30, 0 }
 0x23b   : > { %v764_v33 = vand.u32 4294901760, %v696_v32 }
 0x23d   : > { %v765_v34 = vsub.f32 %v696_v32, %v764_v33 }
 0x23f   : > { %v766_v36 = vand.u32 4294901760, %v765_v34 }
 0x241   : > { %v767_v37 = vsub.f32 %v765_v34, %v766_v36 }
 0x243   : > { %v768_v40 = vand.u32 4294901760, %v767_v37 }
 0x245   : > { %4282 = vmatmul.mubr.f32.vlgmr.msra.gmra.mrb[0].mxu1 %v768_v40 }
 0x246   : > { %4285 = vmatpush3.msra.mxu1 %v779_v39  ;;  %4286 = vmatprep.mubr.msk.f32.mxu1 %vm4615_vm1, %v4614_v0 }
 0x247   : > { %4289 = vmatprep.subr.mxu1 %v4614_v0 }
 0x249   : > { %4287 = vmatmul.mubr.f32.vlgmr.msra.gmra.mrb[2].mxu1 %v764_v33 }
 0x24a   : > { %4290 = vmatpush3.msra.mxu1 %v776_v29  ;;  %4291 = vmatprep.mubr.msk.f32.mxu1 %vm4615_vm1, %v4614_v0 }
 0x24b   : > { %4294 = vmatprep.subr.mxu1 %v4614_v0 }
 0x24d   : > { %4292 = vmatmul.mubr.f32.vlgmr.msra.gmra.mrb[4].mxu1 %v765_v34 }
 0x24e   : > { %4295 = vmatpush3.msra.mxu1 %v699_v25  ;;  %4296 = vmatprep.mubr.msk.f32.mxu1 %vm4615_vm1, %v4614_v0 }
 0x24f   : > { %4299 = vmatprep.subr.mxu1 %v4614_v0 }
 0x251   : > { %4297 = vmatmul.mubr.f32.vlgmr.msra.gmra.mrb[6].mxu1 %v766_v36 }
 0x252   : > { %4300 = vmatpush3.msra.mxu1 %v777_v31  ;;  %4301 = vmatprep.mubr.msk.f32.mxu1 %vm4615_vm1, %v4614_v0 }
 0x253   : > { %4304 = vmatprep.subr.mxu1 %v4614_v0 }
 0x255   : > { %4302 = vmatmul.mubr.f32.vlgmr.msra.gmra.mrb[8].mxu1 %v764_v33 }
 0x256   : > { %4305 = vmatpush3.msra.mxu1 %v699_v25  ;;  %4306 = vmatprep.mubr.msk.f32.mxu1 %vm4615_vm1, %v4614_v0 }
 0x257   : > { %4309 = vmatprep.subr.mxu1 %v4614_v0 }
 0x259   : > { %4307 = vmatmul.mubr.f32.vlgmr.msra.gmra.mrb[10].mxu1 %v764_v33 }
 0x25a   : > { %4311 = vmatprep.mubr.msk.f32.mxu1 %vm4615_vm1, %v4614_v0 }
 0x25d   : > { %4310 = vmatpush3.xpose.msra.mxu1 %v1167_v44 }
 0x25e   : > { %4314 = vmatprep.subr.mxu1 %v4614_v0 }
 0x260   : > { %4312 = vmatmul.mubr.f32.vlgmr.msra.gmra.mrb[12].mxu1 %v1236_v53 }
 0x261   : > { %4315 = vmatpush3.xpose.msra.mxu1 %v1247_v52  ;;  %4316 = vmatprep.mubr.msk.f32.mxu1 %vm4615_vm1, %v4614_v0 }
 0x262   : > { %4319 = vmatprep.subr.mxu1 %v4614_v0 }
 0x268   : > { %4317 = vmatmul.mubr.f32.vlgmr.msra.gmra.mrb[12].mxu1 %v1232_v45 }
 0x269   : > { %4320 = vmatpush3.xpose.msra.mxu1 %v1244_v46  ;;  %4321 = vmatprep.mubr.msk.f32.mxu1 %vm4615_vm1, %v4614_v0 }
 0x26a   : > { %4324 = vmatprep.subr.mxu1 %v4614_v0 }
 0x270   : > { %4322 = vmatmul.mubr.f32.vlgmr.msra.gmra.mrb[12].mxu1 %v1233_v47 }
 0x271   : > { %4325 = vmatpush3.xpose.msra.mxu1 %v1167_v44  ;;  %4326 = vmatprep.mubr.msk.f32.mxu1 %vm4615_vm1, %v4614_v0 }
 0x272   : > { %4329 = vmatprep.subr.mxu1 %v4614_v0 }
 0x278   : > { %4327 = vmatmul.mubr.f32.vlgmr.msra.gmra.mrb[12].mxu1 %v1234_v49 }
 0x279   : > { %4330 = vmatpush3.xpose.msra.mxu1 %v1245_v48  ;;  %4331 = vmatprep.mubr.msk.f32.mxu1 %vm4615_vm1, %v4614_v0 }
 0x27a   : > { %4334 = vmatprep.subr.mxu1 %v4614_v0 }
 0x280   : > { %4332 = vmatmul.mubr.f32.vlgmr.msra.gmra.mrb[12].mxu1 %v1232_v45 }
 0x281   : > { %4335 = vmatpush3.xpose.msra.mxu1 %v1167_v44  ;;  %4336 = vmatprep.mubr.msk.f32.mxu1 %vm4615_vm1, %v4614_v0 }
 0x282   : > { %4369 = vmatprep.subr.mxu1 %v4614_v0 }
 0x288   : > { %4337 = vmatmul.mubr.f32.vlgmr.msra.gmra.mrb[12].mxu1 %v1232_v45 }
 0x289   : > { %4370 = vmatpush3.xpose.msra.mxu1 %v2113_v58  ;;  %4371 = vmatprep.mubr.msk.f32.mxu1 %vm4615_vm1, %v4614_v0 }
 0x28a   : > { %4374 = vmatprep.subr.mxu1 %v4614_v0 }
 0x28c   : > { %4372 = vmatmul.mubr.f32.vlgmr.msra.gmra.mrb[14].mxu1 %v2182_v5 }
 0x28d   : > { %4375 = vmatpush3.xpose.msra.mxu1 %v2193_v4  ;;  %4376 = vmatprep.mubr.msk.f32.mxu1 %vm4615_vm1, %v4614_v0 }
 0x28e   : > { %4379 = vmatprep.subr.mxu1 %v4614_v0 }
 0x294   : > { %4377 = vmatmul.mubr.f32.vlgmr.msra.gmra.mrb[14].mxu1 %v2178_v59 }
 0x295   : > { %4380 = vmatpush3.xpose.msra.mxu1 %v2190_v60  ;;  %4381 = vmatprep.mubr.msk.f32.mxu1 %vm4615_vm1, %v4614_v0 }
 0x296   : > { %4384 = vmatprep.subr.mxu1 %v4614_v0 }
 0x29c   : > { %4382 = vmatmul.mubr.f32.vlgmr.msra.gmra.mrb[14].mxu1 %v2179_v61 }
 0x29d   : > { %4385 = vmatpush3.xpose.msra.mxu1 %v2113_v58  ;;  %4386 = vmatprep.mubr.msk.f32.mxu1 %vm4615_vm1, %v4614_v0 }
 0x29e   : > { %4389 = vmatprep.subr.mxu1 %v4614_v0 }
 0x2a4   : > { %4387 = vmatmul.mubr.f32.vlgmr.msra.gmra.mrb[14].mxu1 %v2180_v63 }
 0x2a5   : > { %4390 = vmatpush3.xpose.msra.mxu1 %v2191_v62  ;;  %4391 = vmatprep.mubr.msk.f32.mxu1 %vm4615_vm1, %v4614_v0 }
 0x2a6   : > { %4394 = vmatprep.subr.mxu1 %v4614_v0 }
 0x2ac   : > { %4392 = vmatmul.mubr.f32.vlgmr.msra.gmra.mrb[14].mxu1 %v2178_v59 }
 0x2ad   : > { %4395 = vmatpush3.xpose.msra.mxu1 %v2113_v58  ;;  %4396 = vmatprep.mubr.msk.f32.mxu1 %vm4615_vm1, %v4614_v0  ;;  %v4850_v58 = vld [vmem:[#allocation2 + $0x18] sm:$0xff] }
 0x2ae   : > { %4429 = vmatprep.subr.mxu1 %v4614_v0 }
 0x2b4   : > { %4397 = vmatmul.mubr.f32.vlgmr.msra.gmra.mrb[14].mxu1 %v2178_v59 }
 0x2b5   : > { %4430 = vmatpush3.xpose.msra.mxu1 %v3059_v10  ;;  %4431 = vmatprep.mubr.msk.f32.mxu1 %vm4615_vm1, %v4614_v0 }
 0x2b6   : > { %4434 = vmatprep.subr.mxu1 %v4614_v0 }
 0x2b8   : > { %4432 = vmatmul.mubr.f32.vlgmr.msra.gmra.mrb[16].mxu1 %v3128_v19 }
 0x2b9   : > { %4435 = vmatpush3.xpose.msra.mxu1 %v3139_v18  ;;  %4436 = vmatprep.mubr.msk.f32.mxu1 %vm4615_vm1, %v4614_v0 }
 0x2ba   : > { %4439 = vmatprep.subr.mxu1 %v4614_v0 }
 0x2c0   : > { %4437 = vmatmul.mubr.f32.vlgmr.msra.gmra.mrb[16].mxu1 %v3124_v11 }
 0x2c1   : > { %4440 = vmatpush3.xpose.msra.mxu1 %v3136_v12  ;;  %4441 = vmatprep.mubr.msk.f32.mxu1 %vm4615_vm1, %v4614_v0 }
 0x2c2   : > { %4444 = vmatprep.subr.mxu1 %v4614_v0 }
 0x2c8   : > { %4442 = vmatmul.mubr.f32.vlgmr.msra.gmra.mrb[16].mxu1 %v3125_v13 }
 0x2c9   : > { %4445 = vmatpush3.xpose.msra.mxu1 %v3059_v10  ;;  %4446 = vmatprep.mubr.msk.f32.mxu1 %vm4615_vm1, %v4614_v0 }
 0x2ca   : > { %4449 = vmatprep.subr.mxu1 %v4614_v0 }
 0x2d0   : > { %4447 = vmatmul.mubr.f32.vlgmr.msra.gmra.mrb[16].mxu1 %v3126_v15 }
 0x2d1   : > { %4450 = vmatpush3.xpose.msra.mxu1 %v3137_v14  ;;  %4451 = vmatprep.mubr.msk.f32.mxu1 %vm4615_vm1, %v4614_v0 }
 0x2d2   : > { %4454 = vmatprep.subr.mxu1 %v4614_v0 }
 0x2d8   : > { %4452 = vmatmul.mubr.f32.vlgmr.msra.gmra.mrb[16].mxu1 %v3124_v11 }
 0x2d9   : > { %4455 = vmatpush3.xpose.msra.mxu1 %v3059_v10  ;;  %4456 = vmatprep.mubr.msk.f32.mxu1 %vm4615_vm1, %v4614_v0 }
 0x2e0   : > { %4457 = vmatmul.mubr.f32.vlgmr.msra.gmra.mrb[16].mxu1 %v3124_v11 }
 0x318   : > { %v770_v21 = vpop.f32.mrb[0].mxu1 }
 0x319   : > { %v4283_v24 = vpop.f32.mrb[1].mxu1 }
 0x31a   : > { %v674_v24 = vmul.f32 1.442695, %v673_v23 }
 0x31c   : > { %v846_v25 = vpop.f32.mrb[2].mxu1 }
 0x31d   : > { %v847_v26 = vadd.f32 %v846_v25, %v770_v21  ;;  %v4288_v27 = vpop.f32.mrb[3].mxu1 }
 0x320   : > { %v920_v28 = vpop.f32.mrb[4].mxu1 }
 0x321   : > { %v921_v29 = vadd.f32 %v920_v28, %v847_v26  ;;  %v4293_v31 = vpop.f32.mrb[5].mxu1 }
 0x324   : > { %v994_v32 = vpop.f32.mrb[6].mxu1 }
 0x325   : > { %v995_v33 = vadd.f32 %v994_v32, %v921_v29  ;;  %v4298_v34 = vpop.f32.mrb[7].mxu1 }
 0x328   : > { %v1068_v35 = vpop.f32.mrb[8].mxu1 }
 0x329   : > { %v1069_v36 = vadd.f32 %v1068_v35, %v995_v33  ;;  %v4303_v37 = vpop.f32.mrb[9].mxu1 }
 0x32c   : > { %v1140_v38 = vpop.f32.mrb[10].mxu1 }
 0x32d   : > { %v4817_v39 = vadd.f32 %v1140_v38, %v1069_v36  ;;  %v4308_v40 = vpop.f32.mrb[11].mxu1 }
 0x35b   : > { %v1608_v41 = vpop.f32.mrb[12].mxu1 }
 0x35c   : > { %v4338_v42 = vpop.f32.mrb[13].mxu1  ;;  %v1614_v43 = vsel %vm668_vm3, %v1608_v41, -inf }
 0x35d   : > { %1615 = vmax.xlane.f32.xlu1 %v1614_v43 }
 0x387   : > { %v4820_v44 = vpop.f32.mrb[14].mxu1 }
 0x388   : > { %v4398_v45 = vpop.f32.mrb[15].mxu1  ;;  %v2560_v46 = vsel %vm668_vm3, %v4820_v44, -inf }
 0x389   : > { %2561 = vmax.xlane.f32.xlu0 %v2560_v46 }
 0x3b3   : > { %v4824_v47 = vpop.f32.mrb[16].mxu1 }
 0x3b4   : > { %v4458_v48 = vpop.f32.mrb[17].mxu1  ;;  %v3506_v49 = vsel %vm668_vm3, %v4824_v47, -inf }
 0x3b5   : > { %3507 = vmax.xlane.f32.xlu1 %v3506_v49 }
 0x3ea   : > { %v1616_v51 = vpop.xlane.xlu1 %1615 }
 0x3eb   : > { %v4831_v52 = vmax.f32 %v4828_v50, %v1616_v51  ;;  %v686_v51 = vsel %vm668_vm3, %v4739_v30, 0.0 }
 0x3ed   : > { %v1618_v53 = vsub.f32 %v4828_v50, %v4831_v52  ;;  %2099 = vst.msk [vmem:[#allocation2 + $0x8] sm:$0xff] %vm198_vm2, %v4831_v52  ;;  %1623 = vperm.xlu1 %4565, %v4831_v52   ;;  %v1630_v52 = vld [vmem:[#allocation3 + $0x8] sm:$0xff] }
 0x3ef   : > { %v1619_v30 = vmul.f32 1.442695, %v1618_v53 }
 0x3f1   : > { %1637 = vrot.lane.b32.xlu1 %v4682_v1, %s4622_s24 }
 0x416   : > { %v2562_v55 = vpop.xlane.xlu0 %2561 }
 0x417   : > { %v4843_v56 = vmax.f32 %v4840_v54, %v2562_v55 }
 0x419   : > { %v2564_v57 = vsub.f32 %v4840_v54, %v4843_v56  ;;  %3045 = vst.msk [vmem:[#allocation2 + $0x10] sm:$0xff] %vm198_vm2, %v4843_v56  ;;  %2569 = vperm.xlu0 %4564, %v4843_v56  }
 0x41b   : > { %v2565_v25 = vmul.f32 1.442695, %v2564_v57 }
 0x442   : > { %v3508_v59 = vpop.xlane.xlu1 %3507 }
 0x443   : > { %v3509_v60 = vmax.f32 %v4850_v58, %v3508_v59 }
 0x445   : > { %v3510_v61 = vsub.f32 %v4850_v58, %v3509_v60  ;;  %3991 = vst.msk [vmem:[#allocation2 + $0x18] sm:$0xff] %vm198_vm2, %v3509_v60  ;;  %3515 = vperm.xlu1 %4565, %v3509_v60  }
 0x447   : > { %v3511_v26 = vmul.f32 1.442695, %v3510_v61 }
 0x449   : > { %2583 = vrot.lane.b32.xlu1 %v4682_v1, %s4623_s25 }
 0x44d   : > { %3529 = vrot.lane.b32.xlu1 %v4682_v1, %s4624_s26 }
 0x46c   : > { %v1624_v62 = vpop.permute.xlu1 %1623 }
 0x46d   : > { %v1626_v63 = vsub.f32 %v1608_v41, %v1624_v62 }
 0x46f   : > { %v1627_v2 = vmul.f32 1.442695, %v1626_v63 }
 0x470   : > { %v1638_v3 = vpop.permute.xlu1 %1637 }
 0x471   : > { %4568 = vpow2.f32 %v1627_v2  ;;  %v1644_v4 = vand.u32 4294901760, %v1638_v3 }
 0x473   : > { %4340 = vmatpush3.msra.mxu0 %v1644_v4  ;;  %v1721_v5 = vsub.f32 %v1638_v3, %v1644_v4 }
 0x474   : > { %4344 = vmatprep.subr.mxu0 %v4614_v0 }
 0x475   : > { %v1722_v9 = vand.u32 4294901760, %v1721_v5 }
 0x477   : > { %v1723_v1 = vsub.f32 %v1721_v5, %v1722_v9 }
 0x479   : > { %v1724_v14 = vand.u32 4294901760, %v1723_v1 }
 0x47b   : > { %v4569_v6 = vpop.eup %4568 }
 0x47c   : > { %v1641_v7 = vsel %vm668_vm3, %v4569_v6, 0  ;;  %v1632_v8 = vsel %vm668_vm3, %v4569_v6, 0.0 }
 0x47d   : > { %v1709_v10 = vand.u32 4294901760, %v1641_v7  ;;  %1633 = vadd.xlane.f32.xlu0 %v1632_v8 }
 0x47f   : > { %v1710_v11 = vsub.f32 %v1641_v7, %v1709_v10  ;;  %v2576_v7 = vld [vmem:[#allocation3 + $0x10] sm:$0xff] }
 0x481   : > { %v1711_v12 = vand.u32 4294901760, %v1710_v11 }
 0x483   : > { %v1712_v13 = vsub.f32 %v1710_v11, %v1711_v12 }
 0x485   : > { %v1713_v15 = vand.u32 4294901760, %v1712_v13 }
 0x487   : > { %4342 = vmatmul.mubr.f32.vlgmr.msra.gmra.mrb[2].mxu0 %v1713_v15 }
 0x488   : > { %4345 = vmatpush3.msra.mxu0 %v1724_v14  ;;  %4346 = vmatprep.mubr.msk.f32.mxu0 %vm4615_vm1, %v4614_v0 }
 0x489   : > { %4349 = vmatprep.subr.mxu0 %v4614_v0 }
 0x48b   : > { %4347 = vmatmul.mubr.f32.vlgmr.msra.gmra.mrb[4].mxu0 %v1709_v10 }
 0x48c   : > { %4350 = vmatpush3.msra.mxu0 %v1721_v5  ;;  %4351 = vmatprep.mubr.msk.f32.mxu0 %vm4615_vm1, %v4614_v0 }
 0x48d   : > { %4354 = vmatprep.subr.mxu0 %v4614_v0 }
 0x48f   : > { %4352 = vmatmul.mubr.f32.vlgmr.msra.gmra.mrb[6].mxu0 %v1710_v11 }
 0x490   : > { %4355 = vmatpush3.msra.mxu0 %v1644_v4  ;;  %4356 = vmatprep.mubr.msk.f32.mxu0 %vm4615_vm1, %v4614_v0 }
 0x491   : > { %4359 = vmatprep.subr.mxu0 %v4614_v0 }
 0x493   : > { %4357 = vmatmul.mubr.f32.vlgmr.msra.gmra.mrb[8].mxu0 %v1711_v12 }
 0x494   : > { %4360 = vmatpush3.msra.mxu0 %v1722_v9  ;;  %4361 = vmatprep.mubr.msk.f32.mxu0 %vm4615_vm1, %v4614_v0 }
 0x495   : > { %4364 = vmatprep.subr.mxu0 %v4614_v0 }
 0x497   : > { %4362 = vmatmul.mubr.f32.vlgmr.msra.gmra.mrb[10].mxu0 %v1709_v10 }
 0x498   : > { %v2570_v16 = vpop.permute.xlu0 %2569  ;;  %4365 = vmatpush3.msra.mxu0 %v1644_v4  ;;  %4366 = vmatprep.mubr.msk.f32.mxu0 %vm4615_vm1, %v4614_v0 }
 0x499   : > { %v2572_v17 = vsub.f32 %v4820_v44, %v2570_v16  ;;  %4399 = vmatprep.subr.mxu0 %v4614_v0  ;;  %v3522_v16 = vld [vmem:[#allocation3 + $0x18] sm:$0xff] }
 0x49b   : > { %v2573_v18 = vmul.f32 1.442695, %v2572_v17  ;;  %4367 = vmatmul.mubr.f32.vlgmr.msra.gmra.mrb[12].mxu0 %v1709_v10 }
 0x49c   : > { %4401 = vmatprep.mubr.msk.f32.mxu0 %vm4615_vm1, %v4614_v0 }
 0x49d   : > { %4570 = vpow2.f32 %v2573_v18 }
 0x49e   : > { %4572 = vpow2.f32 %v674_v24 }
 0x49f   : > { %4574 = vpow2.f32 %v2565_v25  ;;  %v684_v25 = vld [vmem:[#allocation3] sm:$0xff] }
 0x4a0   : > { %4576 = vpow2.f32 %v3511_v26 }
 0x4a7   : > { %v4571_v19 = vpop.eup %4570 }
 0x4a8   : > { %v2578_v21 = vsel %vm668_vm3, %v4571_v19, 0.0  ;;  %v2587_v27 = vsel %vm668_vm3, %v4571_v19, 0  ;;  %v4888_v28 = vpop.eup %4572 }
 0x4a9   : > { %2579 = vadd.xlane.f32.xlu1 %v2578_v21  ;;  %v2655_v29 = vand.u32 4294901760, %v2587_v27  ;;  %v4891_v31 = vpop.eup %4574 }
 0x4aa   : > { %v4894_v22 = vpop.eup %4576  ;;  %v2577_v8 = vmul.f32 %v4891_v31, %v2576_v7 }
 0x4ab   : > { %v2656_v20 = vsub.f32 %v2587_v27, %v2655_v29  ;;  %v3523_v19 = vmul.f32 %v4894_v22, %v3522_v16 }
 0x4ad   : > { %v2657_v23 = vand.u32 4294901760, %v2656_v20 }
 0x4af   : > { %v2658_v34 = vsub.f32 %v2656_v20, %v2657_v23 }
 0x4b1   : > { %v2659_v38 = vand.u32 4294901760, %v2658_v34 }
 0x4ba   : > { %1147 = vperm.xlu1 %4565, %v4888_v28  }
 0x4be   : > { %3039 = vperm.xlu1 %4565, %v4891_v31  }
 0x4c2   : > { %3985 = vperm.xlu1 %4565, %v4894_v22  }
 0x4c4   : > { %v3516_v32 = vpop.permute.xlu1 %3515 }
 0x4c5   : > { %v3518_v33 = vsub.f32 %v4824_v47, %v3516_v32 }
 0x4c7   : > { %v3519_v35 = vmul.f32 1.442695, %v3518_v33 }
 0x4c8   : > { %v2584_v36 = vpop.permute.xlu1 %2583 }
 0x4c9   : > { %4578 = vpow2.f32 %v3519_v35  ;;  %v2590_v37 = vand.u32 4294901760, %v2584_v36 }
 0x4ca   : > { %4580 = vpow2.f32 %v1619_v30 }
 0x4cb   : > { %v2667_v40 = vsub.f32 %v2584_v36, %v2590_v37  ;;  %4400 = vmatpush3.msra.mxu0 %v2590_v37  ;;  %v2090_v36 = vld [vmem:[#allocation4 + $0x8] sm:$0xff] }
 0x4cc   : > { %4402 = vmatmul.mubr.f32.vlgmr.msra.gmra.mrb[14].mxu0 %v2659_v38  ;;  %4404 = vmatprep.subr.mxu0 %v4614_v0  ;;  %v3530_v44 = vpop.permute.xlu1 %3529 }
 0x4cd   : > { %v2668_v41 = vand.u32 4294901760, %v2667_v40  ;;  %4406 = vmatprep.mubr.msk.f32.mxu0 %vm4615_vm1, %v4614_v0  ;;  %v3536_v48 = vand.u32 4294901760, %v3530_v44 }
 0x4cf   : > { %v2669_v42 = vsub.f32 %v2667_v40, %v2668_v41  ;;  %v3613_v54 = vsub.f32 %v3530_v44, %v3536_v48 }
 0x4d1   : > { %v2670_v43 = vand.u32 4294901760, %v2669_v42  ;;  %v3614_v56 = vand.u32 4294901760, %v3613_v54 }
 0x4d3   : > { %v4579_v45 = vpop.eup %4578  ;;  %4405 = vmatpush3.msra.mxu0 %v2670_v43  ;;  %v3615_v58 = vsub.f32 %v3613_v54, %v3614_v56 }
 0x4d4   : > { %v3533_v46 = vsel %vm668_vm3, %v4579_v45, 0  ;;  %4407 = vmatmul.mubr.f32.vlgmr.msra.gmra.mrb[16].mxu0 %v2655_v29  ;;  %v3524_v47 = vsel %vm668_vm3, %v4579_v45, 0.0  ;;  %4409 = vmatprep.subr.mxu0 %v4614_v0  ;;  %v4581_v50 = vpop.eup %4580 }
 0x4d5   : > { %3525 = vadd.xlane.f32.xlu0 %v3524_v47  ;;  %4410 = vmatpush3.msra.mxu0 %v2667_v40  ;;  %v3601_v49 = vand.u32 4294901760, %v3533_v46  ;;  %v3616_v60 = vand.u32 4294901760, %v3615_v58  ;;  %v1631_v53 = vmul.f32 %v4581_v50, %v1630_v52 }
 0x4d6   : > { %4411 = vmatprep.mubr.msk.f32.mxu0 %vm4615_vm1, %v4614_v0  ;;  %4414 = vmatprep.subr.mxu0 %v4614_v0 }
 0x4d7   : > { %v3602_v55 = vsub.f32 %v3533_v46, %v3601_v49 }
 0x4d8   : > { %4412 = vmatmul.mubr.f32.vlgmr.msra.gmra.mrb[18].mxu0 %v2656_v20 }
 0x4d9   : > { %687 = vadd.xlane.f32.xlu0 %v686_v51  ;;  %4415 = vmatpush3.msra.mxu0 %v2590_v37  ;;  %v3603_v57 = vand.u32 4294901760, %v3602_v55 }
 0x4da   : > { %4416 = vmatprep.mubr.msk.f32.mxu0 %vm4615_vm1, %v4614_v0  ;;  %4419 = vmatprep.subr.mxu0 %v4614_v0 }
 0x4db   : > { %v3604_v59 = vsub.f32 %v3602_v55, %v3603_v57 }
 0x4dc   : > { %4417 = vmatmul.mubr.f32.vlgmr.msra.gmra.mrb[20].mxu0 %v2657_v23 }
 0x4dd   : > { %4420 = vmatpush3.msra.mxu0 %v2668_v41  ;;  %4421 = vmatprep.mubr.msk.f32.mxu0 %vm4615_vm1, %v4614_v0  ;;  %v3605_v61 = vand.u32 4294901760, %v3604_v59 }
 0x4de   : > { %4424 = vmatprep.subr.mxu0 %v4614_v0 }
 0x4e0   : > { %4422 = vmatmul.mubr.f32.vlgmr.msra.gmra.mrb[22].mxu0 %v2655_v29 }
 0x4e1   : > { %4425 = vmatpush3.msra.mxu0 %v2590_v37  ;;  %4426 = vmatprep.mubr.msk.f32.mxu0 %vm4615_vm1, %v4614_v0 }
 0x4e2   : > { %4459 = vmatprep.subr.mxu0 %v4614_v0 }
 0x4e4   : > { %4427 = vmatmul.mubr.f32.vlgmr.msra.gmra.mrb[24].mxu0 %v2655_v29 }
 0x4e5   : > { %4460 = vmatpush3.msra.mxu0 %v3536_v48  ;;  %4461 = vmatprep.mubr.msk.f32.mxu0 %vm4615_vm1, %v4614_v0 }
 0x4e6   : > { %4464 = vmatprep.subr.mxu0 %v4614_v0 }
 0x4e8   : > { %4462 = vmatmul.mubr.f32.vlgmr.msra.gmra.mrb[26].mxu0 %v3605_v61 }
 0x4e9   : > { %4465 = vmatpush3.msra.mxu0 %v3616_v60  ;;  %4466 = vmatprep.mubr.msk.f32.mxu0 %vm4615_vm1, %v4614_v0 }
 0x4ea   : > { %4469 = vmatprep.subr.mxu0 %v4614_v0 }
 0x4ec   : > { %4467 = vmatmul.mubr.f32.vlgmr.msra.gmra.mrb[28].mxu0 %v3601_v49 }
 0x4ed   : > { %4470 = vmatpush3.msra.mxu0 %v3613_v54  ;;  %4471 = vmatprep.mubr.msk.f32.mxu0 %vm4615_vm1, %v4614_v0 }
 0x4ee   : > { %4474 = vmatprep.subr.mxu0 %v4614_v0 }
 0x4ef   : > { %2093 = vperm.xlu0 %4564, %v4581_v50  }
 0x4f0   : > { %4472 = vmatmul.mubr.f32.vlgmr.msra.gmra.mrb[30].mxu0 %v3602_v55 }
 0x4f1   : > { %4475 = vmatpush3.msra.mxu0 %v3536_v48  ;;  %4476 = vmatprep.mubr.msk.f32.mxu0 %vm4615_vm1, %v4614_v0 }
 0x4f2   : > { %4479 = vmatprep.subr.mxu0 %v4614_v0 }
 0x4f4   : > { %4477 = vmatmul.mubr.f32.vlgmr.msra.gmra.mrb[32].mxu0 %v3603_v57 }
 0x4f5   : > { %4480 = vmatpush3.msra.mxu0 %v3614_v56  ;;  %4481 = vmatprep.mubr.msk.f32.mxu0 %vm4615_vm1, %v4614_v0 }
 0x4f6   : > { %4484 = vmatprep.subr.mxu0 %v4614_v0 }
 0x4f8   : > { %4482 = vmatmul.mubr.f32.vlgmr.msra.gmra.mrb[34].mxu0 %v3601_v49 }
 0x4f9   : > { %4485 = vmatpush3.msra.mxu0 %v3536_v48  ;;  %4486 = vmatprep.mubr.msk.f32.mxu0 %vm4615_vm1, %v4614_v0  ;;  %v1144_v0 = vld [vmem:[#allocation4] sm:$0xff] }
 0x4fc   : > { %4487 = vmatmul.mubr.f32.vlgmr.msra.gmra.mrb[36].mxu0 %v3601_v49 }
 0x50a   : > { %v1634_v62 = vpop.xlane.xlu0 %1633 }
 0x50b   : > { %v1635_v63 = vadd.f32 %v1634_v62, %v1631_v53 }
 0x50d   : > { %1636 = vst.msk [vmem:[#allocation3 + $0x8] sm:$0xff] %vm198_vm2, %v1635_v63 }
 0x514   : > { %v4007_v2 = vld [vmem:[#allocation3 + $0x8] sm:$0xff] }
 0x515   : > { %4582 = vrcp.f32 %v4007_v2 }
 0x51f   : > { %v4583_v3 = vpop.eup %4582 }
 0x520   : > { %v4009_v4 = vmul.f32 %v4583_v3, %v4007_v2 }
 0x522   : > { %v4010_v5 = vsub.f32 2.0, %v4009_v4 }
 0x524   : > { %v4011_v6 = vmul.f32 %v4583_v3, %v4010_v5 }
 0x526   : > { %4015 = vperm.xlu1 %4565, %v4011_v6  }
 0x536   : > { %v2580_v9 = vpop.xlane.xlu1 %2579 }
 0x537   : > { %v2581_v10 = vadd.f32 %v2580_v9, %v2577_v8 }
 0x539   : > { %2582 = vst.msk [vmem:[#allocation3 + $0x10] sm:$0xff] %vm198_vm2, %v2581_v10 }
 0x53a   : > { %v1148_v11 = vpop.permute.xlu1 %1147 }
 0x53b   : > { %v1150_v1 = vmul.f32 %v1148_v11, %v1144_v0 }
 0x53d   : > { %v1151_v12 = vadd.f32 %v1150_v1, %v4817_v39  ;;  %v685_v39 = vmul.f32 %v4888_v28, %v684_v25 }
 0x53e   : > { %v3040_v60 = vpop.permute.xlu1 %3039 }
 0x53f   : > { %1152 = vst.msk [vmem:[#allocation4] sm:$0xff] %vm207_vm0, %v1151_v12  ;;  %v3036_v12 = vld [vmem:[#allocation4 + $0x10] sm:$0xff] }
 0x540   : > { %v4019_v38 = vld [vmem:[#allocation3 + $0x10] sm:$0xff] }
 0x542   : > { %v3986_v52 = vpop.permute.xlu1 %3985 }
 0x55a   : > { %v1715_v13 = vpop.f32.mrb[2].mxu0 }
 0x55b   : > { %v4343_v14 = vpop.f32.mrb[3].mxu0 }
 0x55c   : > { %v3042_v14 = vmul.f32 %v3040_v60, %v3036_v12 }
 0x55e   : > { %v1791_v15 = vpop.f32.mrb[4].mxu0 }
 0x55f   : > { %v1792_v17 = vadd.f32 %v1791_v15, %v1715_v13  ;;  %v4348_v18 = vpop.f32.mrb[5].mxu0 }
 0x562   : > { %v3526_v21 = vpop.xlane.xlu0 %3525  ;;  %v1865_v24 = vpop.f32.mrb[6].mxu0 }
 0x563   : > { %v3527_v26 = vadd.f32 %v3526_v21, %v3523_v19  ;;  %v1866_v27 = vadd.f32 %v1865_v24, %v1792_v17  ;;  %v4353_v29 = vpop.f32.mrb[7].mxu0 }
 0x565   : > { %3528 = vst.msk [vmem:[#allocation3 + $0x18] sm:$0xff] %vm198_vm2, %v3527_v26 }
 0x566   : > { %v688_v31 = vpop.xlane.xlu0 %687  ;;  %v1939_v20 = vpop.f32.mrb[8].mxu0 }
 0x567   : > { %v689_v23 = vadd.f32 %v688_v31, %v685_v39  ;;  %v1940_v32 = vadd.f32 %v1939_v20, %v1866_v27  ;;  %v4358_v33 = vpop.f32.mrb[9].mxu0 }
 0x569   : > { %691 = vst.msk [vmem:[#allocation3] sm:$0xff] %vm198_vm2, %v689_v23 }
 0x56a   : > { %v2013_v34 = vpop.f32.mrb[10].mxu0 }
 0x56b   : > { %v2014_v35 = vadd.f32 %v2013_v34, %v1940_v32  ;;  %v4363_v22 = vpop.f32.mrb[11].mxu0  ;;  %v3982_v34 = vld [vmem:[#allocation4 + $0x18] sm:$0xff] }
 0x56c   : > { %v4031_v37 = vld [vmem:[#allocation3 + $0x18] sm:$0xff]  ;;  %v3988_v22 = vmul.f32 %v3986_v52, %v3982_v34 }
 0x56d   : > { %4584 = vrcp.f32 %v4031_v37 }
 0x56e   : > { %v2094_v40 = vpop.permute.xlu0 %2093  ;;  %v2085_v41 = vpop.f32.mrb[12].mxu0  ;;  %4586 = vrcp.f32 %v4019_v38 }
 0x56f   : > { %v2096_v42 = vmul.f32 %v2094_v40, %v2090_v36  ;;  %v2086_v43 = vadd.f32 %v2085_v41, %v2014_v35  ;;  %v4368_v44 = vpop.f32.mrb[13].mxu0 }
 0x570   : > { %v3995_v28 = vld [vmem:[#allocation3] sm:$0xff] }
 0x571   : > { %v2097_v45 = vadd.f32 %v2096_v42, %v2086_v43  ;;  %4588 = vrcp.f32 %v3995_v28 }
 0x573   : > { %2098 = vst.msk [vmem:[#allocation4 + $0x8] sm:$0xff] %vm207_vm0, %v2097_v45 }
 0x577   : > { %v4585_v46 = vpop.eup %4584 }
 0x578   : > { %v4033_v47 = vmul.f32 %v4585_v46, %v4031_v37  ;;  %v4587_v48 = vpop.eup %4586 }
 0x579   : > { %v4021_v56 = vmul.f32 %v4587_v48, %v4019_v38 }
 0x57a   : > { %v4034_v49 = vsub.f32 2.0, %v4033_v47  ;;  %v4012_v62 = vld [vmem:[#allocation4 + $0x8] sm:$0xff] }
 0x57b   : > { %v4589_v51 = vpop.eup %4588  ;;  %v4022_v58 = vsub.f32 2.0, %v4021_v56 }
 0x57c   : > { %v4035_v54 = vmul.f32 %v4585_v46, %v4034_v49  ;;  %v3997_v55 = vmul.f32 %v4589_v51, %v3995_v28  ;;  %v4000_v46 = vld [vmem:[#allocation4] sm:$0xff] }
 0x57d   : > { %v4023_v59 = vmul.f32 %v4587_v48, %v4022_v58 }
 0x57e   : > { %4039 = vperm.xlu1 %4565, %v4035_v54   ;;  %v3998_v57 = vsub.f32 2.0, %v3997_v55 }
 0x580   : > { %v3999_v30 = vmul.f32 %v4589_v51, %v3998_v57 }
 0x582   : > { %4003 = vperm.xlu0 %4564, %v3999_v30  }
 0x586   : > { %4027 = vperm.xlu0 %4564, %v4023_v59  }
 0x59f   : > { %v2661_v61 = vpop.f32.mrb[14].mxu0 }
 0x5a0   : > { %v4403_v50 = vpop.f32.mrb[15].mxu0 }
 0x5a5   : > { %v4016_v53 = vpop.permute.xlu1 %4015 }
 0x5a6   : > { %v4018_v63 = vmul.f32 %v4016_v53, %v4012_v62 }
 0x5a7   : > { %v2737_v2 = vpop.f32.mrb[16].mxu0 }
 0x5a8   : > { %v2738_v3 = vadd.f32 %v2737_v2, %v2661_v61  ;;  %4044 = vrot.lane.b32.xlu0 %v4018_v63, %s4624_s26  ;;  %v4408_v4 = vpop.f32.mrb[17].mxu0 }
 0x5ab   : > { %v2811_v5 = vpop.f32.mrb[18].mxu0 }
 0x5ac   : > { %v2812_v6 = vadd.f32 %v2811_v5, %v2738_v3  ;;  %v4413_v7 = vpop.f32.mrb[19].mxu0 }
 0x5af   : > { %v2885_v8 = vpop.f32.mrb[20].mxu0 }
 0x5b0   : > { %v2886_v9 = vadd.f32 %v2885_v8, %v2812_v6  ;;  %v4418_v10 = vpop.f32.mrb[21].mxu0 }
 0x5b3   : > { %v2959_v0 = vpop.f32.mrb[22].mxu0 }
 0x5b4   : > { %v2960_v11 = vadd.f32 %v2959_v0, %v2886_v9  ;;  %v4423_v1 = vpop.f32.mrb[23].mxu0 }
 0x5b7   : > { %v3031_v13 = vpop.f32.mrb[24].mxu0 }
 0x5b8   : > { %v3032_v15 = vadd.f32 %v3031_v13, %v2960_v11  ;;  %v4428_v16 = vpop.f32.mrb[25].mxu0 }
 0x5ba   : > { %v3043_v17 = vadd.f32 %v3042_v14, %v3032_v15 }
 0x5bb   : > { %v3607_v18 = vpop.f32.mrb[26].mxu0 }
 0x5bc   : > { %3044 = vst.msk [vmem:[#allocation4 + $0x10] sm:$0xff] %vm207_vm0, %v3043_v17  ;;  %v4463_v19 = vpop.f32.mrb[27].mxu0 }
 0x5bf   : > { %v3683_v21 = vpop.f32.mrb[28].mxu0 }
 0x5c0   : > { %v3684_v24 = vadd.f32 %v3683_v21, %v3607_v18  ;;  %v4468_v25 = vpop.f32.mrb[29].mxu0 }
 0x5c3   : > { %v3757_v26 = vpop.f32.mrb[30].mxu0  ;;  %v4024_v28 = vld [vmem:[#allocation4 + $0x10] sm:$0xff] }
 0x5c4   : > { %v3758_v27 = vadd.f32 %v3757_v26, %v3684_v24  ;;  %v4473_v29 = vpop.f32.mrb[31].mxu0 }
 0x5c7   : > { %v3831_v39 = vpop.f32.mrb[32].mxu0 }
 0x5c8   : > { %v3832_v31 = vadd.f32 %v3831_v39, %v3758_v27  ;;  %v4478_v20 = vpop.f32.mrb[33].mxu0 }
 0x5cb   : > { %v3905_v23 = vpop.f32.mrb[34].mxu0 }
 0x5cc   : > { %v3906_v32 = vadd.f32 %v3905_v23, %v3832_v31  ;;  %v4483_v33 = vpop.f32.mrb[35].mxu0 }
 0x5cf   : > { %v3977_v35 = vpop.f32.mrb[36].mxu0 }
 0x5d0   : > { %v3978_v36 = vadd.f32 %v3977_v35, %v3906_v32  ;;  %v4488_v37 = vpop.f32.mrb[37].mxu0 }
 0x5d2   : > { %v3989_v38 = vadd.f32 %v3988_v22, %v3978_v36 }
 0x5d4   : > { %3990 = vst.msk [vmem:[#allocation4 + $0x18] sm:$0xff] %vm207_vm0, %v3989_v38 }
 0x5db   : > { %v4036_v41 = vld [vmem:[#allocation4 + $0x18] sm:$0xff] }
 0x5fd   : > { %v4040_v40 = vpop.permute.xlu1 %4039 }
 0x5fe   : > { %v4042_v42 = vmul.f32 %v4040_v40, %v4036_v41 }
 0x600   : > { %4052 = vrot.lane.b32.xlu0 %v4042_v42, %s4622_s24 }
 0x601   : > { %v4004_v43 = vpop.permute.xlu0 %4003 }
 0x602   : > { %v4006_v48 = vmul.f32 %v4004_v43, %v4000_v46 }
 0x605   : > { %v4028_v44 = vpop.permute.xlu0 %4027 }
 0x606   : > { %v4030_v45 = vmul.f32 %v4028_v44, %v4024_v28 }
 0x608   : > { %4048 = vrot.lane.b32.xlu1 %v4030_v45, %s4623_s25 }
 0x61a   : > { %v4045_v47 = vpop.permute.xlu0 %4044 }
 0x61b   : > { %v4055_v49 = vsel %vm207_vm0, %v4006_v48, %v4045_v47 }
 0x672   : > { %v4053_v54 = vpop.permute.xlu0 %4052 }
 0x67a   : > { %v4049_v51 = vpop.permute.xlu1 %4048 }
 0x67b   : > { %v4057_v55 = vsel %vm4056_vm4, %v4055_v49, %v4049_v51 }
 0x67c   : > { %v4059_v56 = vsel %vm4058_vm5, %v4057_v55, %v4053_v54 }
 0x67d   : > { %v4061_v57 = vsel %vm4060_vm6, %v4059_v56, 0.0 }
 0x67e   : > { %4062 = vst [vmem:[%s192_s29] sm:$0xff] %v4061_v57 }
 0x67f PF: > { %s12_s11 = sadd.s32 1, %s4612_s11   ;;  %s4970_s9 = smov %s4608_s10 }
 0x680   : > { %p9_p5 = scmp.ge.s32.totalorder %s12_s11, 4   ;;  %s4971_s10 = smov %s4973_s12 }
 0x682   :  { %11 = sbr.rel (!%p9_p5) target bundleno = 2 (0x2), region = 78 }

</bundles_post_ra>
